<compile_context>
chip_gen: v7x
topology: tpu7x:2x2x1
jax: 0.10.0
libtpu: 0.0.40
codegen_flags: <defaults>
</compile_context>

<pallas_src>
import functools

import jax
import jax.numpy as jnp
import numpy as np
from jax.experimental import pallas as pl
from jax.experimental.pallas import tpu as pltpu

PAD = 4    # temporal padding of the (9,1) convs
KT = 9     # temporal kernel size


# ----------------------------------------------------------------------------
# Kernel 1: unit_gtcn_5 branch sum (pre-BN), one batch element per grid step.
# ----------------------------------------------------------------------------
def gcn_kernel(x_ref, lmat_ref, rmat_ref, blk_ref, aeff_ref,
               wbig_ref, bbig_ref, bdsum_ref, yg_ref, xpad_ref, e_ref,
               *, ns, ic, oc, V):
    f32 = jnp.float32
    C, TV = x_ref.shape
    PV = PAD * V
    nab = 2 * ns * ic

    # In-kernel temporal zero padding: clear only the two small pad slabs
    # (every step, so megacore/parallel execution never sees stale scratch),
    # then overwrite the centre with this step's activations.
    xpad_ref[:, 0:PV] = jnp.zeros((C, PV), f32)
    xpad_ref[:, PV + TV:PV + TV + PV] = jnp.zeros((C, PV), f32)
    xpad_ref[:, PV:PV + TV] = x_ref[...]

    # One long-K matmul produces every 1x1 conv, every (9,1) conv and every
    # conv_d output at once: rows = [conv_a/b | conv_T1/T2 | conv_d], columns
    # indexed by (tap k, channel c) against the 9 shifted windows (im2col).
    xim = jnp.concatenate(
        [xpad_ref[:, k * V:k * V + TV] for k in range(KT)], axis=0)   # (9C, TV)
    feat = (jnp.dot(wbig_ref[...], xim, preferred_element_type=f32)
            + bbig_ref[...])

    ab = feat[0:nab, :]               # 1x1 conv_a (scaled) / conv_b outputs
    tt = feat[nab:2 * nab, :]         # (9,1) conv_T1 (scaled) / conv_T2 outputs
    xd = feat[2 * nab:, :]            # conv_d outputs, (ns*oc, TV)

    lmat = lmat_ref[...]              # (TV, V)  lmat[p, w] = (p % V == w)
    rmat = rmat_ref[...]              # (V, TV)  rmat[v, p] = (p % V == v)
    blk = blk_ref[...]                # (TV, TV) same-time-block mask

    def softmax0(s):                  # softmax over dim -2 of a (V, V) score
        s = s - jnp.max(s, axis=0, keepdims=True)
        e = jnp.exp(s)
        return e * pl.reciprocal(jnp.sum(e, axis=0, keepdims=True), approx=True)

    def score(fa, fb):                # (ic,TV) x (ic,TV) -> (V,V)
        g = jax.lax.dot_general(fa, fb, (((0,), (0,)), ((), ())),
                                preferred_element_type=f32)       # (TV, TV)
        rg = jnp.dot(rmat, g * blk, preferred_element_type=f32)   # (V, TV)
        return jnp.dot(rg, lmat, preferred_element_type=f32)      # (V, V)

    for i in range(ns):
        a_lo = 2 * i * ic             # conv_a / conv_T1 rows (scale folded in)
        b_lo = a_lo + ic              # conv_b / conv_T2 rows
        sa = score(ab[a_lo:a_lo + ic, :], ab[b_lo:b_lo + ic, :])
        st = score(tt[a_lo:a_lo + ic, :], tt[b_lo:b_lo + ic, :])
        a1 = aeff_ref[i] + softmax0(sa) + softmax0(st)            # (V, V)
        # E_i = kron(I_T, a1) written into the stacked VMEM scratch block.
        e_ref[i * TV:(i + 1) * TV, :] = (
            jnp.dot(jnp.dot(lmat, a1, preferred_element_type=f32), rmat,
                    preferred_element_type=f32) * blk)

    # Single stacked graph application: (oc, ns*TV) @ (ns*TV, TV).
    xd_cat = jnp.concatenate([xd[i * oc:(i + 1) * oc, :] for i in range(ns)],
                             axis=1)
    yg_ref[...] = (jnp.dot(xd_cat, e_ref[...], preferred_element_type=f32)
                   + bdsum_ref[...])


# ----------------------------------------------------------------------------
# Kernel 2: fused [gcn BN affine + identity residual + ReLU] + unit_tcn's
# (9,1) conv as one long-K matmul from an in-kernel zero-padded scratch.
# ----------------------------------------------------------------------------
def tcn_kernel(yg_ref, x_ref, sc_ref, sh_ref, wtf_ref, bt_ref,
               u_ref, hpad_ref, *, V):
    f32 = jnp.float32
    oc, TV = yg_ref.shape
    PV = PAD * V

    h = jnp.maximum(yg_ref[...] * sc_ref[...] + sh_ref[...] + x_ref[...], 0.0)

    hpad_ref[:, 0:PV] = jnp.zeros((oc, PV), f32)
    hpad_ref[:, PV + TV:PV + TV + PV] = jnp.zeros((oc, PV), f32)
    hpad_ref[:, PV:PV + TV] = h

    him = jnp.concatenate(
        [hpad_ref[:, k * V:k * V + TV] for k in range(KT)], axis=0)  # (9*oc, TV)
    u_ref[...] = (jnp.dot(wtf_ref[...], him, preferred_element_type=f32)
                  + bt_ref[...])


# ----------------------------------------------------------------------------
# Glue: index constants, weight packing (parameter-only) and wrappers.
# ----------------------------------------------------------------------------
def _index_constants(T, V):
    TV = T * V
    idx = np.arange(TV)
    lmat = (idx[:, None] % V == np.arange(V)[None, :]).astype(np.float32)
    rmat = np.ascontiguousarray(lmat.T)
    blk = ((idx[:, None] // V) == (idx[None, :] // V)).astype(np.float32)
    return jnp.asarray(lmat), jnp.asarray(rmat), jnp.asarray(blk)


def _gcn_weight_pack(p, T):
    ns, ic, c = p["wa"].shape
    oc = p["wd"].shape[1]
    scale = 1.0 / float(ic * T)       # 1/(inter_c*T) folded into the a-side
    KC = KT * c
    nab = 2 * ns * ic

    # rows [0, nab): interleaved [a_0, b_0, a_1, b_1, ...] 1x1 weights,
    # placed at the central temporal tap of the stacked (row, k*c+ch) matrix.
    wab = jnp.stack([p["wa"] * scale, p["wb"]], axis=1).reshape(nab, c)
    bab = jnp.stack([p["ba"] * scale, p["bb"]], axis=1).reshape(nab, 1)
    wab_k = jnp.zeros((nab, KC), jnp.float32).at[:, PAD * c:(PAD + 1) * c].set(wab)

    # rows [nab, 2*nab): interleaved (9,1) conv_T1/conv_T2 weights.
    wt12 = jnp.stack([p["wt1"] * scale, p["wt2"]], axis=1).reshape(nab, c, KT)
    wt_k = jnp.transpose(wt12, (0, 2, 1)).reshape(nab, KC)
    btt = jnp.stack([p["bt1"] * scale, p["bt2"]], axis=1).reshape(nab, 1)

    # rows [2*nab, ...): conv_d weights (central tap only, bias added later).
    wd_k = jnp.zeros((ns * oc, KC), jnp.float32).at[:, PAD * c:(PAD + 1) * c].set(
        p["wd"].reshape(ns * oc, c))

    wbig = jnp.concatenate([wab_k, wt_k, wd_k], axis=0)
    bbig = jnp.concatenate([bab, btt, jnp.zeros((ns * oc, 1), jnp.float32)],
                           axis=0)
    bdsum = jnp.sum(p["bd"], axis=0).reshape(oc, 1)

    aeff = (4.0 * p["A"] * p["A"] - p["A"]
            - 2.0 * jnp.eye(p["A"].shape[-1], dtype=jnp.float32)[None] + p["pa"])
    return aeff, wbig, bbig, bdsum


def gcn_branch_sum(x, p):
    n, c, T, V = x.shape
    ns, ic, _ = p["wa"].shape
    oc = p["wd"].shape[1]
    TV = T * V
    x_cm = x.reshape(n, c, TV)

    lmat, rmat, blk = _index_constants(T, V)
    aeff, wbig, bbig, bdsum = _gcn_weight_pack(p, T)
    nrow, KC = wbig.shape

    kernel = functools.partial(gcn_kernel, ns=ns, ic=ic, oc=oc, V=V)
    yg = pl.pallas_call(
        kernel,
        out_shape=jax.ShapeDtypeStruct((n, oc, TV), jnp.float32),
        grid=(n,),
        in_specs=[
            pl.BlockSpec((None, c, TV), lambda b: (b, 0, 0)),      # x
            pl.BlockSpec((TV, V), lambda b: (0, 0)),               # lmat
            pl.BlockSpec((V, TV), lambda b: (0, 0)),               # rmat
            pl.BlockSpec((TV, TV), lambda b: (0, 0)),              # blk mask
            pl.BlockSpec((ns, V, V), lambda b: (0, 0, 0)),         # A_eff
            pl.BlockSpec((nrow, KC), lambda b: (0, 0)),            # stacked W
            pl.BlockSpec((nrow, 1), lambda b: (0, 0)),             # stacked b
            pl.BlockSpec((oc, 1), lambda b: (0, 0)),               # sum_i bd_i
        ],
        out_specs=pl.BlockSpec((None, oc, TV), lambda b: (b, 0, 0)),
        scratch_shapes=[
            pltpu.VMEM((c, (T + 2 * PAD) * V), jnp.float32),       # padded x
            pltpu.VMEM((ns * TV, TV), jnp.float32),                # stacked E_i
        ],
        compiler_params=pltpu.CompilerParams(
            dimension_semantics=("parallel",)),
    )(x_cm, lmat, rmat, blk, aeff, wbig, bbig, bdsum)
    return yg


def tcn_conv_fused(yg, x_cm, scale1, shift1, wtf, bt, V):
    n, oc, TV = yg.shape
    KC = wtf.shape[1]
    kernel = functools.partial(tcn_kernel, V=V)
    u = pl.pallas_call(
        kernel,
        out_shape=jax.ShapeDtypeStruct((n, oc, TV), jnp.float32),
        grid=(n,),
        in_specs=[
            pl.BlockSpec((None, oc, TV), lambda b: (b, 0, 0)),     # yg
            pl.BlockSpec((None, oc, TV), lambda b: (b, 0, 0)),     # x residual
            pl.BlockSpec((oc, 1), lambda b: (0, 0)),               # BN1 scale
            pl.BlockSpec((oc, 1), lambda b: (0, 0)),               # BN1 shift
            pl.BlockSpec((oc, KC), lambda b: (0, 0)),              # tcn conv W
            pl.BlockSpec((oc, 1), lambda b: (0, 0)),               # tcn conv b
        ],
        out_specs=pl.BlockSpec((None, oc, TV), lambda b: (b, 0, 0)),
        scratch_shapes=[pltpu.VMEM((oc, TV + 2 * PAD * V), jnp.float32)],
        compiler_params=pltpu.CompilerParams(
            dimension_semantics=("parallel",)),
    )(yg, x_cm, scale1, shift1, wtf, bt)
    return u


def _bn_affine(y, gamma, beta):
    # training-mode BatchNorm (batch statistics, biased variance); y is tiny
    # (N, C, T*V), so the reduction is done in XLA (no narrow kernel outputs).
    mean = jnp.mean(y, axis=(0, 2))
    var = jnp.mean(y * y, axis=(0, 2)) - mean * mean
    inv = gamma * jax.lax.rsqrt(var + 1e-5)
    return inv.reshape(-1, 1), (beta - mean * inv).reshape(-1, 1)


def tcn_gcn_unit5_forward(x, p):
    n, c, T, V = x.shape
    oc = p["wd"].shape[1]
    # TODO(synk): only the in_channels == out_channels, stride == 1 case is
    # implemented (down(x) == x and the outer residual == x, as in the test).
    assert c == oc
    TV = T * V
    x_cm = x.reshape(n, c, TV)

    # unit_gtcn_5 branch sum; BN1 batch statistics reduced in XLA.
    yg = gcn_branch_sum(x, p)
    scale1, shift1 = _bn_affine(yg, p["gamma1"], p["beta1"])

    # fused gcn-BN/residual/ReLU + unit_tcn (9,1) conv.
    wtf = jnp.transpose(p["wt"], (0, 2, 1)).reshape(oc, KT * oc)
    bt = p["bt"].reshape(oc, 1)
    u = tcn_conv_fused(yg, x_cm, scale1, shift1, wtf, bt, V)
    scale2, shift2 = _bn_affine(u, p["gamma2"], p["beta2"])

    # tcn BN + outer identity residual + ReLU: tiny elementwise tail kept in
    # XLA so it fuses with the BN-stat reduction (saves a third pallas launch).
    out = jnp.maximum(u * scale2[None] + shift2[None] + x_cm, 0.0)
    return out.reshape(n, oc, T, V)


# ----------------------------------------------------------------------------
# Pure-JAX reference (mirrors the PyTorch forward) for verification.
# ----------------------------------------------------------------------------
def _ref_conv1x1(x, w, b):
    return jnp.einsum("oc,nctv->notv", w, x) + b[None, :, None, None]


def _ref_conv9(xp, w, b, T):
    out = sum(jnp.einsum("oc,nctv->notv", w[:, :, k], xp[:, :, k:k + T, :])
              for k in range(KT))
    return out + b[None, :, None, None]


def ref_gcn_branch_sum(x, p):
    n, c, T, V = x.shape
    ns, ic, _ = p["wa"].shape
    xp = jnp.pad(x, ((0, 0), (0, 0), (PAD, PAD), (0, 0)))
    aeff = (4.0 * p["A"] * p["A"] - p["A"]
            - 2.0 * jnp.eye(V, dtype=jnp.float32)[None] + p["pa"])
    x2 = x.reshape(n, c * T, V)
    y = 0.0
    for i in range(ns):
        a = _ref_conv1x1(x, p["wa"][i], p["ba"][i])
        b = _ref_conv1x1(x, p["wb"][i], p["bb"][i])
        s1 = jax.nn.softmax(
            jnp.matmul(jnp.transpose(a, (0, 3, 1, 2)).reshape(n, V, ic * T),
                       b.reshape(n, ic * T, V)) / (ic * T), axis=-2)
        t1 = _ref_conv9(xp, p["wt1"][i], p["bt1"][i], T)
        t2 = _ref_conv9(xp, p["wt2"][i], p["bt2"][i], T)
        s2 = jax.nn.softmax(
            jnp.matmul(jnp.transpose(t1, (0, 3, 1, 2)).reshape(n, V, ic * T),
                       t2.reshape(n, ic * T, V)) / (ic * T), axis=-2)
        a1 = aeff[i][None] + s1 + s2
        zp = jnp.matmul(x2, a1).reshape(n, c, T, V)
        z = (jnp.einsum("oc,nctv->notv", p["wd"][i], zp)
             + p["bd"][i][None, :, None, None])
        y = y + z
    return y


def _ref_bn_train(y, gamma, beta):
    mean = jnp.mean(y, axis=(0, 2, 3), keepdims=True)
    var = jnp.mean((y - mean) ** 2, axis=(0, 2, 3), keepdims=True)
    return (gamma[None, :, None, None] * (y - mean) / jnp.sqrt(var + 1e-5)
            + beta[None, :, None, None])


def ref_forward(x, p):
    n, c, T, V = x.shape
    y = ref_gcn_branch_sum(x, p)
    h = jax.nn.relu(_ref_bn_train(y, p["gamma1"], p["beta1"]) + x)
    hp = jnp.pad(h, ((0, 0), (0, 0), (PAD, PAD), (0, 0)))
    u = _ref_conv9(hp, p["wt"], p["bt"], T)
    return jax.nn.relu(_ref_bn_train(u, p["gamma2"], p["beta2"]) + x)


# ----------------------------------------------------------------------------
def init_params(key, in_c, out_c, num_subset, V):
    inter_c = out_c // 4
    ks = jax.random.split(key, 14)

    def nrm(k, shape, std):
        return jax.random.normal(k, shape, jnp.float32) * std

    std_1x1 = float(np.sqrt(2.0 / inter_c))              # kaiming fan_out 1x1
    std_t = float(np.sqrt(2.0 / (inter_c * KT)))         # kaiming fan_out (9,1)
    std_d = float(np.sqrt(2.0 / (out_c * in_c * num_subset)))  # conv_branch_init
    std_tcn = float(np.sqrt(2.0 / (out_c * KT)))

    return {
        "A": jax.random.uniform(ks[0], (num_subset, V, V), jnp.float32) * 0.5,
        "pa": jnp.full((num_subset, V, V), 1e-6, jnp.float32),
        "wa": nrm(ks[1], (num_subset, inter_c, in_c), std_1x1),
        "ba": nrm(ks[2], (num_subset, inter_c), 0.1),
        "wb": nrm(ks[3], (num_subset, inter_c, in_c), std_1x1),
        "bb": nrm(ks[4], (num_subset, inter_c), 0.1),
        "wt1": nrm(ks[5], (num_subset, inter_c, in_c, KT), std_t),
        "bt1": nrm(ks[6], (num_subset, inter_c), 0.1),
        "wt2": nrm(ks[7], (num_subset, inter_c, in_c, KT), std_t),
        "bt2": nrm(ks[8], (num_subset, inter_c), 0.1),
        "wd": nrm(ks[9], (num_subset, out_c, in_c), std_d),
        "bd": nrm(ks[10], (num_subset, out_c), 0.05),
        "gamma1": jnp.full((out_c,), 1e-6, jnp.float32),   # bn_init(gcn.bn, 1e-6)
        "beta1": jnp.zeros((out_c,), jnp.float32),
        "wt": nrm(ks[11], (out_c, out_c, KT), std_tcn),
        "bt": nrm(ks[12], (out_c,), 0.1),
        "gamma2": jnp.ones((out_c,), jnp.float32),         # bn_init(tcn.bn, 1)
        "beta2": jnp.zeros((out_c,), jnp.float32),
    }


if __name__ == "__main__":
    # T*V = 128 (full lane width); inter_c = 8 keeps all row slices 8-aligned.
    N, C_IN, C_OUT, T, V, NS = 2, 32, 32, 16, 8, 3

    key = jax.random.PRNGKey(0)
    kp, kx = jax.random.split(key)
    params = init_params(kp, C_IN, C_OUT, NS, V)
    x = jax.random.normal(kx, (N, C_IN, T, V), jnp.float32)

    fwd = jax.jit(tcn_gcn_unit5_forward)
    out = jax.block_until_ready(fwd(x, params))

    # verify against the pure-JAX reference (gcn branch sum and full forward);
    # default (single-pass bf16) matmul precision on both sides -> 2e-2 tol.
    yg = jax.block_until_ready(jax.jit(gcn_branch_sum)(x, params))
    np.testing.assert_allclose(np.asarray(yg).reshape(N, C_OUT, T, V),
                               np.asarray(ref_gcn_branch_sum(x, params)),
                               rtol=2e-2, atol=2e-2)
    np.testing.assert_allclose(np.asarray(out),
                               np.asarray(ref_forward(x, params)),
                               rtol=2e-2, atol=2e-2)

    print("KERNEL_OK")
</pallas_src>

<mosaic_0001>
module attributes {stable_mosaic.version = 11 : i64} {
  func.func @gcn_kernel(%arg0: i32, %arg1: memref<1x32x128xf32, #tpu.memory_space<vmem>>, %arg2: memref<128x8xf32, #tpu.memory_space<vmem>>, %arg3: memref<8x128xf32, #tpu.memory_space<vmem>>, %arg4: memref<128x128xf32, #tpu.memory_space<vmem>>, %arg5: memref<3x8x8xf32, #tpu.memory_space<vmem>>, %arg6: memref<192x288xf32, #tpu.memory_space<vmem>>, %arg7: memref<192x1xf32, #tpu.memory_space<vmem>>, %arg8: memref<32x1xf32, #tpu.memory_space<vmem>>, %arg9: memref<1x32x128xf32, #tpu.memory_space<vmem>>, %arg10: memref<32x192xf32, #tpu.memory_space<vmem>>, %arg11: memref<384x128xf32, #tpu.memory_space<vmem>>) attributes {dimension_semantics = [#tpu.dimension_semantics<parallel>], iteration_bounds = array<i64: 2>, scalar_prefetch = 0 : i64, scratch_operands = 2 : i64, tpu.core_type = #tpu.core_type<tc>, window_params = [{transform_indices = @transform_0, window_bounds = array<i64: 1, 32, 128>}, {pipeline_mode = #tpu.pipeline_mode<synchronous>, transform_indices = @transform_1, window_bounds = array<i64: 128, 8>}, {pipeline_mode = #tpu.pipeline_mode<synchronous>, transform_indices = @transform_2, window_bounds = array<i64: 8, 128>}, {pipeline_mode = #tpu.pipeline_mode<synchronous>, transform_indices = @transform_3, window_bounds = array<i64: 128, 128>}, {pipeline_mode = #tpu.pipeline_mode<synchronous>, transform_indices = @transform_4, window_bounds = array<i64: 3, 8, 8>}, {pipeline_mode = #tpu.pipeline_mode<synchronous>, transform_indices = @transform_5, window_bounds = array<i64: 192, 288>}, {pipeline_mode = #tpu.pipeline_mode<synchronous>, transform_indices = @transform_6, window_bounds = array<i64: 192, 1>}, {pipeline_mode = #tpu.pipeline_mode<synchronous>, transform_indices = @transform_7, window_bounds = array<i64: 32, 1>}, {transform_indices = @transform_8, window_bounds = array<i64: 1, 32, 128>}]} {
    %cst = arith.constant 0.000000e+00 : f32
    %0 = vector.broadcast %cst : f32 to vector<32x32xf32>
    %c0 = arith.constant 0 : index
    %c0_0 = arith.constant 0 : index
    %1 = vector.load %arg10[%c0, %c0_0] : memref<32x192xf32, #tpu.memory_space<vmem>>, vector<32x32xf32>
    tpu.vector_store %arg10[%c0, %c0_0], %0 {strides = array<i32>} : memref<32x192xf32, #tpu.memory_space<vmem>>, vector<32x32xf32>,
    %cst_1 = arith.constant 0.000000e+00 : f32
    %2 = vector.broadcast %cst_1 : f32 to vector<32x32xf32>
    %c0_2 = arith.constant 0 : index
    %c160 = arith.constant 160 : index
    %3 = vector.load %arg10[%c0_2, %c160] : memref<32x192xf32, #tpu.memory_space<vmem>>, vector<32x32xf32>
    tpu.vector_store %arg10[%c0_2, %c160], %2 {strides = array<i32>} : memref<32x192xf32, #tpu.memory_space<vmem>>, vector<32x32xf32>,
    %c0_3 = arith.constant 0 : index
    %c0_4 = arith.constant 0 : index
    %c0_5 = arith.constant 0 : index
    %4 = vector.load %arg1[%c0_3, %c0_4, %c0_5] : memref<1x32x128xf32, #tpu.memory_space<vmem>>, vector<1x32x128xf32>
    %5 = vector.shape_cast %4 : vector<1x32x128xf32> to vector<32x128xf32>
    %c0_6 = arith.constant 0 : index
    %c32 = arith.constant 32 : index
    %6 = vector.load %arg10[%c0_6, %c32] : memref<32x192xf32, #tpu.memory_space<vmem>>, vector<32x128xf32>
    tpu.vector_store %arg10[%c0_6, %c32], %5 {strides = array<i32>} : memref<32x192xf32, #tpu.memory_space<vmem>>, vector<32x128xf32>,
    %c0_7 = arith.constant 0 : index
    %c0_8 = arith.constant 0 : index
    %7 = vector.load %arg10[%c0_7, %c0_8] : memref<32x192xf32, #tpu.memory_space<vmem>>, vector<32x128xf32>
    %c0_9 = arith.constant 0 : index
    %c8 = arith.constant 8 : index
    %8 = vector.load %arg10[%c0_9, %c8] : memref<32x192xf32, #tpu.memory_space<vmem>>, vector<32x128xf32>
    %c0_10 = arith.constant 0 : index
    %c16 = arith.constant 16 : index
    %9 = vector.load %arg10[%c0_10, %c16] : memref<32x192xf32, #tpu.memory_space<vmem>>, vector<32x128xf32>
    %c0_11 = arith.constant 0 : index
    %c24 = arith.constant 24 : index
    %10 = vector.load %arg10[%c0_11, %c24] : memref<32x192xf32, #tpu.memory_space<vmem>>, vector<32x128xf32>
    %c0_12 = arith.constant 0 : index
    %c32_13 = arith.constant 32 : index
    %11 = vector.load %arg10[%c0_12, %c32_13] : memref<32x192xf32, #tpu.memory_space<vmem>>, vector<32x128xf32>
    %c0_14 = arith.constant 0 : index
    %c40 = arith.constant 40 : index
    %12 = vector.load %arg10[%c0_14, %c40] : memref<32x192xf32, #tpu.memory_space<vmem>>, vector<32x128xf32>
    %c0_15 = arith.constant 0 : index
    %c48 = arith.constant 48 : index
    %13 = vector.load %arg10[%c0_15, %c48] : memref<32x192xf32, #tpu.memory_space<vmem>>, vector<32x128xf32>
    %c0_16 = arith.constant 0 : index
    %c56 = arith.constant 56 : index
    %14 = vector.load %arg10[%c0_16, %c56] : memref<32x192xf32, #tpu.memory_space<vmem>>, vector<32x128xf32>
    %c0_17 = arith.constant 0 : index
    %c64 = arith.constant 64 : index
    %15 = vector.load %arg10[%c0_17, %c64] : memref<32x192xf32, #tpu.memory_space<vmem>>, vector<32x128xf32>
    %16 = tpu.concatenate %7, %8, %9, %10, %11, %12, %13, %14, %15 in 0 : vector<32x128xf32>, vector<32x128xf32>, vector<32x128xf32>, vector<32x128xf32>, vector<32x128xf32>, vector<32x128xf32>, vector<32x128xf32>, vector<32x128xf32>, vector<32x128xf32> -> vector<288x128xf32>
    %c0_18 = arith.constant 0 : index
    %c0_19 = arith.constant 0 : index
    %17 = vector.load %arg6[%c0_18, %c0_19] : memref<192x288xf32, #tpu.memory_space<vmem>>, vector<192x288xf32>
    %cst_20 = arith.constant dense<0.000000e+00> : vector<192x128xf32>
    %18 = tpu.matmul %17, %16, %cst_20 {dimension_numbers = #tpu.dot_dimension_numbers<[1], [0], [0], [1], [0, 0, 1, 1], [], []>} : vector<192x288xf32>, vector<288x128xf32>, vector<192x128xf32> -> vector<192x128xf32>
    %c0_21 = arith.constant 0 : index
    %c0_22 = arith.constant 0 : index
    %19 = vector.load %arg7[%c0_21, %c0_22] : memref<192x1xf32, #tpu.memory_space<vmem>>, vector<192x1xf32>
    %20 = vector.broadcast %19 : vector<192x1xf32> to vector<192x128xf32>
    %21 = arith.addf %18, %20 : vector<192x128xf32>
    %22 = vector.extract_strided_slice %21 {offsets = [0, 0], sizes = [48, 128], strides = [1, 1]} : vector<192x128xf32> to vector<48x128xf32>
    %23 = vector.extract_strided_slice %21 {offsets = [48, 0], sizes = [48, 128], strides = [1, 1]} : vector<192x128xf32> to vector<48x128xf32>
    %24 = vector.extract_strided_slice %21 {offsets = [96, 0], sizes = [96, 128], strides = [1, 1]} : vector<192x128xf32> to vector<96x128xf32>
    %c0_23 = arith.constant 0 : index
    %c0_24 = arith.constant 0 : index
    %25 = vector.load %arg2[%c0_23, %c0_24] : memref<128x8xf32, #tpu.memory_space<vmem>>, vector<128x8xf32>
    %c0_25 = arith.constant 0 : index
    %c0_26 = arith.constant 0 : index
    %26 = vector.load %arg3[%c0_25, %c0_26] : memref<8x128xf32, #tpu.memory_space<vmem>>, vector<8x128xf32>
    %c0_27 = arith.constant 0 : index
    %c0_28 = arith.constant 0 : index
    %27 = vector.load %arg4[%c0_27, %c0_28] : memref<128x128xf32, #tpu.memory_space<vmem>>, vector<128x128xf32>
    %28 = vector.extract_strided_slice %22 {offsets = [0, 0], sizes = [8, 128], strides = [1, 1]} : vector<48x128xf32> to vector<8x128xf32>
    %29 = vector.extract_strided_slice %22 {offsets = [8, 0], sizes = [8, 128], strides = [1, 1]} : vector<48x128xf32> to vector<8x128xf32>
    %cst_29 = arith.constant dense<0.000000e+00> : vector<128x128xf32>
    %30 = tpu.matmul %28, %29, %cst_29 {dimension_numbers = #tpu.dot_dimension_numbers<[0], [0], [1], [1], [0, 1, 1, 1], [], []>} : vector<8x128xf32>, vector<8x128xf32>, vector<128x128xf32> -> vector<128x128xf32>
    %31 = arith.mulf %30, %27 : vector<128x128xf32>
    %cst_30 = arith.constant dense<0.000000e+00> : vector<8x128xf32>
    %32 = tpu.matmul %26, %31, %cst_30 {dimension_numbers = #tpu.dot_dimension_numbers<[1], [0], [0], [1], [0, 0, 1, 1], [], []>} : vector<8x128xf32>, vector<128x128xf32>, vector<8x128xf32> -> vector<8x128xf32>
    %cst_31 = arith.constant dense<0.000000e+00> : vector<8x8xf32>
    %33 = tpu.matmul %32, %25, %cst_31 {dimension_numbers = #tpu.dot_dimension_numbers<[1], [0], [0], [1], [0, 0, 1, 1], [], []>} : vector<8x128xf32>, vector<128x8xf32>, vector<8x8xf32> -> vector<8x8xf32>
    %34 = vector.extract_strided_slice %23 {offsets = [0, 0], sizes = [8, 128], strides = [1, 1]} : vector<48x128xf32> to vector<8x128xf32>
    %35 = vector.extract_strided_slice %23 {offsets = [8, 0], sizes = [8, 128], strides = [1, 1]} : vector<48x128xf32> to vector<8x128xf32>
    %cst_32 = arith.constant dense<0.000000e+00> : vector<128x128xf32>
    %36 = tpu.matmul %34, %35, %cst_32 {dimension_numbers = #tpu.dot_dimension_numbers<[0], [0], [1], [1], [0, 1, 1, 1], [], []>} : vector<8x128xf32>, vector<8x128xf32>, vector<128x128xf32> -> vector<128x128xf32>
    %37 = arith.mulf %36, %27 : vector<128x128xf32>
    %cst_33 = arith.constant dense<0.000000e+00> : vector<8x128xf32>
    %38 = tpu.matmul %26, %37, %cst_33 {dimension_numbers = #tpu.dot_dimension_numbers<[1], [0], [0], [1], [0, 0, 1, 1], [], []>} : vector<8x128xf32>, vector<128x128xf32>, vector<8x128xf32> -> vector<8x128xf32>
    %cst_34 = arith.constant dense<0.000000e+00> : vector<8x8xf32>
    %39 = tpu.matmul %38, %25, %cst_34 {dimension_numbers = #tpu.dot_dimension_numbers<[1], [0], [0], [1], [0, 0, 1, 1], [], []>} : vector<8x128xf32>, vector<128x8xf32>, vector<8x8xf32> -> vector<8x8xf32>
    %c0_35 = arith.constant 0 : index
    %c0_36 = arith.constant 0 : index
    %c0_37 = arith.constant 0 : index
    %40 = vector.load %arg5[%c0_35, %c0_36, %c0_37] : memref<3x8x8xf32, #tpu.memory_space<vmem>>, vector<1x8x8xf32>
    %41 = vector.shape_cast %40 : vector<1x8x8xf32> to vector<8x8xf32>
    %cst_38 = arith.constant dense<0xFF800000> : vector<8xf32>
    %42 = vector.multi_reduction <maximumf>, %33, %cst_38 [0] : vector<8x8xf32> to vector<8xf32>
    %43 = vector.shape_cast %42 : vector<8xf32> to vector<1x8xf32>
    %44 = vector.broadcast %43 : vector<1x8xf32> to vector<8x8xf32>
    %45 = arith.subf %33, %44 : vector<8x8xf32>
    %46 = math.exp %45 : vector<8x8xf32>
    %cst_39 = arith.constant dense<0.000000e+00> : vector<8xf32>
    %47 = vector.multi_reduction <add>, %46, %cst_39 [0] : vector<8x8xf32> to vector<8xf32>
    %48 = vector.shape_cast %47 : vector<8xf32> to vector<1x8xf32>
    %49 = tpu.reciprocal %48 {approx = true} : vector<1x8xf32> -> vector<1x8xf32>
    %50 = vector.broadcast %49 : vector<1x8xf32> to vector<8x8xf32>
    %51 = arith.mulf %46, %50 : vector<8x8xf32>
    %52 = arith.addf %41, %51 : vector<8x8xf32>
    %cst_40 = arith.constant dense<0xFF800000> : vector<8xf32>
    %53 = vector.multi_reduction <maximumf>, %39, %cst_40 [0] : vector<8x8xf32> to vector<8xf32>
    %54 = vector.shape_cast %53 : vector<8xf32> to vector<1x8xf32>
    %55 = vector.broadcast %54 : vector<1x8xf32> to vector<8x8xf32>
    %56 = arith.subf %39, %55 : vector<8x8xf32>
    %57 = math.exp %56 : vector<8x8xf32>
    %cst_41 = arith.constant dense<0.000000e+00> : vector<8xf32>
    %58 = vector.multi_reduction <add>, %57, %cst_41 [0] : vector<8x8xf32> to vector<8xf32>
    %59 = vector.shape_cast %58 : vector<8xf32> to vector<1x8xf32>
    %60 = tpu.reciprocal %59 {approx = true} : vector<1x8xf32> -> vector<1x8xf32>
    %61 = vector.broadcast %60 : vector<1x8xf32> to vector<8x8xf32>
    %62 = arith.mulf %57, %61 : vector<8x8xf32>
    %63 = arith.addf %52, %62 : vector<8x8xf32>
    %cst_42 = arith.constant dense<0.000000e+00> : vector<128x8xf32>
    %64 = tpu.matmul %25, %63, %cst_42 {dimension_numbers = #tpu.dot_dimension_numbers<[1], [0], [0], [1], [0, 0, 1, 1], [], []>} : vector<128x8xf32>, vector<8x8xf32>, vector<128x8xf32> -> vector<128x8xf32>
    %cst_43 = arith.constant dense<0.000000e+00> : vector<128x128xf32>
    %65 = tpu.matmul %64, %26, %cst_43 {dimension_numbers = #tpu.dot_dimension_numbers<[1], [0], [0], [1], [0, 0, 1, 1], [], []>} : vector<128x8xf32>, vector<8x128xf32>, vector<128x128xf32> -> vector<128x128xf32>
    %66 = arith.mulf %65, %27 : vector<128x128xf32>
    %c0_44 = arith.constant 0 : index
    %c0_45 = arith.constant 0 : index
    %67 = vector.load %arg11[%c0_44, %c0_45] : memref<384x128xf32, #tpu.memory_space<vmem>>, vector<128x128xf32>
    tpu.vector_store %arg11[%c0_44, %c0_45], %66 {strides = array<i32>} : memref<384x128xf32, #tpu.memory_space<vmem>>, vector<128x128xf32>,
    %68 = vector.extract_strided_slice %22 {offsets = [16, 0], sizes = [8, 128], strides = [1, 1]} : vector<48x128xf32> to vector<8x128xf32>
    %69 = vector.extract_strided_slice %22 {offsets = [24, 0], sizes = [8, 128], strides = [1, 1]} : vector<48x128xf32> to vector<8x128xf32>
    %cst_46 = arith.constant dense<0.000000e+00> : vector<128x128xf32>
    %70 = tpu.matmul %68, %69, %cst_46 {dimension_numbers = #tpu.dot_dimension_numbers<[0], [0], [1], [1], [0, 1, 1, 1], [], []>} : vector<8x128xf32>, vector<8x128xf32>, vector<128x128xf32> -> vector<128x128xf32>
    %71 = arith.mulf %70, %27 : vector<128x128xf32>
    %cst_47 = arith.constant dense<0.000000e+00> : vector<8x128xf32>
    %72 = tpu.matmul %26, %71, %cst_47 {dimension_numbers = #tpu.dot_dimension_numbers<[1], [0], [0], [1], [0, 0, 1, 1], [], []>} : vector<8x128xf32>, vector<128x128xf32>, vector<8x128xf32> -> vector<8x128xf32>
    %cst_48 = arith.constant dense<0.000000e+00> : vector<8x8xf32>
    %73 = tpu.matmul %72, %25, %cst_48 {dimension_numbers = #tpu.dot_dimension_numbers<[1], [0], [0], [1], [0, 0, 1, 1], [], []>} : vector<8x128xf32>, vector<128x8xf32>, vector<8x8xf32> -> vector<8x8xf32>
    %74 = vector.extract_strided_slice %23 {offsets = [16, 0], sizes = [8, 128], strides = [1, 1]} : vector<48x128xf32> to vector<8x128xf32>
    %75 = vector.extract_strided_slice %23 {offsets = [24, 0], sizes = [8, 128], strides = [1, 1]} : vector<48x128xf32> to vector<8x128xf32>
    %cst_49 = arith.constant dense<0.000000e+00> : vector<128x128xf32>
    %76 = tpu.matmul %74, %75, %cst_49 {dimension_numbers = #tpu.dot_dimension_numbers<[0], [0], [1], [1], [0, 1, 1, 1], [], []>} : vector<8x128xf32>, vector<8x128xf32>, vector<128x128xf32> -> vector<128x128xf32>
    %77 = arith.mulf %76, %27 : vector<128x128xf32>
    %cst_50 = arith.constant dense<0.000000e+00> : vector<8x128xf32>
    %78 = tpu.matmul %26, %77, %cst_50 {dimension_numbers = #tpu.dot_dimension_numbers<[1], [0], [0], [1], [0, 0, 1, 1], [], []>} : vector<8x128xf32>, vector<128x128xf32>, vector<8x128xf32> -> vector<8x128xf32>
    %cst_51 = arith.constant dense<0.000000e+00> : vector<8x8xf32>
    %79 = tpu.matmul %78, %25, %cst_51 {dimension_numbers = #tpu.dot_dimension_numbers<[1], [0], [0], [1], [0, 0, 1, 1], [], []>} : vector<8x128xf32>, vector<128x8xf32>, vector<8x8xf32> -> vector<8x8xf32>
    %c1 = arith.constant 1 : index
    %c0_52 = arith.constant 0 : index
    %c0_53 = arith.constant 0 : index
    %80 = vector.load %arg5[%c1, %c0_52, %c0_53] : memref<3x8x8xf32, #tpu.memory_space<vmem>>, vector<1x8x8xf32>
    %81 = vector.shape_cast %80 : vector<1x8x8xf32> to vector<8x8xf32>
    %cst_54 = arith.constant dense<0xFF800000> : vector<8xf32>
    %82 = vector.multi_reduction <maximumf>, %73, %cst_54 [0] : vector<8x8xf32> to vector<8xf32>
    %83 = vector.shape_cast %82 : vector<8xf32> to vector<1x8xf32>
    %84 = vector.broadcast %83 : vector<1x8xf32> to vector<8x8xf32>
    %85 = arith.subf %73, %84 : vector<8x8xf32>
    %86 = math.exp %85 : vector<8x8xf32>
    %cst_55 = arith.constant dense<0.000000e+00> : vector<8xf32>
    %87 = vector.multi_reduction <add>, %86, %cst_55 [0] : vector<8x8xf32> to vector<8xf32>
    %88 = vector.shape_cast %87 : vector<8xf32> to vector<1x8xf32>
    %89 = tpu.reciprocal %88 {approx = true} : vector<1x8xf32> -> vector<1x8xf32>
    %90 = vector.broadcast %89 : vector<1x8xf32> to vector<8x8xf32>
    %91 = arith.mulf %86, %90 : vector<8x8xf32>
    %92 = arith.addf %81, %91 : vector<8x8xf32>
    %cst_56 = arith.constant dense<0xFF800000> : vector<8xf32>
    %93 = vector.multi_reduction <maximumf>, %79, %cst_56 [0] : vector<8x8xf32> to vector<8xf32>
    %94 = vector.shape_cast %93 : vector<8xf32> to vector<1x8xf32>
    %95 = vector.broadcast %94 : vector<1x8xf32> to vector<8x8xf32>
    %96 = arith.subf %79, %95 : vector<8x8xf32>
    %97 = math.exp %96 : vector<8x8xf32>
    %cst_57 = arith.constant dense<0.000000e+00> : vector<8xf32>
    %98 = vector.multi_reduction <add>, %97, %cst_57 [0] : vector<8x8xf32> to vector<8xf32>
    %99 = vector.shape_cast %98 : vector<8xf32> to vector<1x8xf32>
    %100 = tpu.reciprocal %99 {approx = true} : vector<1x8xf32> -> vector<1x8xf32>
    %101 = vector.broadcast %100 : vector<1x8xf32> to vector<8x8xf32>
    %102 = arith.mulf %97, %101 : vector<8x8xf32>
    %103 = arith.addf %92, %102 : vector<8x8xf32>
    %cst_58 = arith.constant dense<0.000000e+00> : vector<128x8xf32>
    %104 = tpu.matmul %25, %103, %cst_58 {dimension_numbers = #tpu.dot_dimension_numbers<[1], [0], [0], [1], [0, 0, 1, 1], [], []>} : vector<128x8xf32>, vector<8x8xf32>, vector<128x8xf32> -> vector<128x8xf32>
    %cst_59 = arith.constant dense<0.000000e+00> : vector<128x128xf32>
    %105 = tpu.matmul %104, %26, %cst_59 {dimension_numbers = #tpu.dot_dimension_numbers<[1], [0], [0], [1], [0, 0, 1, 1], [], []>} : vector<128x8xf32>, vector<8x128xf32>, vector<128x128xf32> -> vector<128x128xf32>
    %106 = arith.mulf %105, %27 : vector<128x128xf32>
    %c128 = arith.constant 128 : index
    %c0_60 = arith.constant 0 : index
    %107 = vector.load %arg11[%c128, %c0_60] : memref<384x128xf32, #tpu.memory_space<vmem>>, vector<128x128xf32>
    tpu.vector_store %arg11[%c128, %c0_60], %106 {strides = array<i32>} : memref<384x128xf32, #tpu.memory_space<vmem>>, vector<128x128xf32>,
    %108 = vector.extract_strided_slice %22 {offsets = [32, 0], sizes = [8, 128], strides = [1, 1]} : vector<48x128xf32> to vector<8x128xf32>
    %109 = vector.extract_strided_slice %22 {offsets = [40, 0], sizes = [8, 128], strides = [1, 1]} : vector<48x128xf32> to vector<8x128xf32>
    %cst_61 = arith.constant dense<0.000000e+00> : vector<128x128xf32>
    %110 = tpu.matmul %108, %109, %cst_61 {dimension_numbers = #tpu.dot_dimension_numbers<[0], [0], [1], [1], [0, 1, 1, 1], [], []>} : vector<8x128xf32>, vector<8x128xf32>, vector<128x128xf32> -> vector<128x128xf32>
    %111 = arith.mulf %110, %27 : vector<128x128xf32>
    %cst_62 = arith.constant dense<0.000000e+00> : vector<8x128xf32>
    %112 = tpu.matmul %26, %111, %cst_62 {dimension_numbers = #tpu.dot_dimension_numbers<[1], [0], [0], [1], [0, 0, 1, 1], [], []>} : vector<8x128xf32>, vector<128x128xf32>, vector<8x128xf32> -> vector<8x128xf32>
    %cst_63 = arith.constant dense<0.000000e+00> : vector<8x8xf32>
    %113 = tpu.matmul %112, %25, %cst_63 {dimension_numbers = #tpu.dot_dimension_numbers<[1], [0], [0], [1], [0, 0, 1, 1], [], []>} : vector<8x128xf32>, vector<128x8xf32>, vector<8x8xf32> -> vector<8x8xf32>
    %114 = vector.extract_strided_slice %23 {offsets = [32, 0], sizes = [8, 128], strides = [1, 1]} : vector<48x128xf32> to vector<8x128xf32>
    %115 = vector.extract_strided_slice %23 {offsets = [40, 0], sizes = [8, 128], strides = [1, 1]} : vector<48x128xf32> to vector<8x128xf32>
    %cst_64 = arith.constant dense<0.000000e+00> : vector<128x128xf32>
    %116 = tpu.matmul %114, %115, %cst_64 {dimension_numbers = #tpu.dot_dimension_numbers<[0], [0], [1], [1], [0, 1, 1, 1], [], []>} : vector<8x128xf32>, vector<8x128xf32>, vector<128x128xf32> -> vector<128x128xf32>
    %117 = arith.mulf %116, %27 : vector<128x128xf32>
    %cst_65 = arith.constant dense<0.000000e+00> : vector<8x128xf32>
    %118 = tpu.matmul %26, %117, %cst_65 {dimension_numbers = #tpu.dot_dimension_numbers<[1], [0], [0], [1], [0, 0, 1, 1], [], []>} : vector<8x128xf32>, vector<128x128xf32>, vector<8x128xf32> -> vector<8x128xf32>
    %cst_66 = arith.constant dense<0.000000e+00> : vector<8x8xf32>
    %119 = tpu.matmul %118, %25, %cst_66 {dimension_numbers = #tpu.dot_dimension_numbers<[1], [0], [0], [1], [0, 0, 1, 1], [], []>} : vector<8x128xf32>, vector<128x8xf32>, vector<8x8xf32> -> vector<8x8xf32>
    %c2 = arith.constant 2 : index
    %c0_67 = arith.constant 0 : index
    %c0_68 = arith.constant 0 : index
    %120 = vector.load %arg5[%c2, %c0_67, %c0_68] : memref<3x8x8xf32, #tpu.memory_space<vmem>>, vector<1x8x8xf32>
    %121 = vector.shape_cast %120 : vector<1x8x8xf32> to vector<8x8xf32>
    %cst_69 = arith.constant dense<0xFF800000> : vector<8xf32>
    %122 = vector.multi_reduction <maximumf>, %113, %cst_69 [0] : vector<8x8xf32> to vector<8xf32>
    %123 = vector.shape_cast %122 : vector<8xf32> to vector<1x8xf32>
    %124 = vector.broadcast %123 : vector<1x8xf32> to vector<8x8xf32>
    %125 = arith.subf %113, %124 : vector<8x8xf32>
    %126 = math.exp %125 : vector<8x8xf32>
    %cst_70 = arith.constant dense<0.000000e+00> : vector<8xf32>
    %127 = vector.multi_reduction <add>, %126, %cst_70 [0] : vector<8x8xf32> to vector<8xf32>
    %128 = vector.shape_cast %127 : vector<8xf32> to vector<1x8xf32>
    %129 = tpu.reciprocal %128 {approx = true} : vector<1x8xf32> -> vector<1x8xf32>
    %130 = vector.broadcast %129 : vector<1x8xf32> to vector<8x8xf32>
    %131 = arith.mulf %126, %130 : vector<8x8xf32>
    %132 = arith.addf %121, %131 : vector<8x8xf32>
    %cst_71 = arith.constant dense<0xFF800000> : vector<8xf32>
    %133 = vector.multi_reduction <maximumf>, %119, %cst_71 [0] : vector<8x8xf32> to vector<8xf32>
    %134 = vector.shape_cast %133 : vector<8xf32> to vector<1x8xf32>
    %135 = vector.broadcast %134 : vector<1x8xf32> to vector<8x8xf32>
    %136 = arith.subf %119, %135 : vector<8x8xf32>
    %137 = math.exp %136 : vector<8x8xf32>
    %cst_72 = arith.constant dense<0.000000e+00> : vector<8xf32>
    %138 = vector.multi_reduction <add>, %137, %cst_72 [0] : vector<8x8xf32> to vector<8xf32>
    %139 = vector.shape_cast %138 : vector<8xf32> to vector<1x8xf32>
    %140 = tpu.reciprocal %139 {approx = true} : vector<1x8xf32> -> vector<1x8xf32>
    %141 = vector.broadcast %140 : vector<1x8xf32> to vector<8x8xf32>
    %142 = arith.mulf %137, %141 : vector<8x8xf32>
    %143 = arith.addf %132, %142 : vector<8x8xf32>
    %cst_73 = arith.constant dense<0.000000e+00> : vector<128x8xf32>
    %144 = tpu.matmul %25, %143, %cst_73 {dimension_numbers = #tpu.dot_dimension_numbers<[1], [0], [0], [1], [0, 0, 1, 1], [], []>} : vector<128x8xf32>, vector<8x8xf32>, vector<128x8xf32> -> vector<128x8xf32>
    %cst_74 = arith.constant dense<0.000000e+00> : vector<128x128xf32>
    %145 = tpu.matmul %144, %26, %cst_74 {dimension_numbers = #tpu.dot_dimension_numbers<[1], [0], [0], [1], [0, 0, 1, 1], [], []>} : vector<128x8xf32>, vector<8x128xf32>, vector<128x128xf32> -> vector<128x128xf32>
    %146 = arith.mulf %145, %27 : vector<128x128xf32>
    %c256 = arith.constant 256 : index
    %c0_75 = arith.constant 0 : index
    %147 = vector.load %arg11[%c256, %c0_75] : memref<384x128xf32, #tpu.memory_space<vmem>>, vector<128x128xf32>
    tpu.vector_store %arg11[%c256, %c0_75], %146 {strides = array<i32>} : memref<384x128xf32, #tpu.memory_space<vmem>>, vector<128x128xf32>,
    %148 = vector.extract_strided_slice %24 {offsets = [0, 0], sizes = [32, 128], strides = [1, 1]} : vector<96x128xf32> to vector<32x128xf32>
    %149 = vector.extract_strided_slice %24 {offsets = [32, 0], sizes = [32, 128], strides = [1, 1]} : vector<96x128xf32> to vector<32x128xf32>
    %150 = vector.extract_strided_slice %24 {offsets = [64, 0], sizes = [32, 128], strides = [1, 1]} : vector<96x128xf32> to vector<32x128xf32>
    %151 = tpu.concatenate %148, %149, %150 in 1 : vector<32x128xf32>, vector<32x128xf32>, vector<32x128xf32> -> vector<32x384xf32>
    %c0_76 = arith.constant 0 : index
    %c0_77 = arith.constant 0 : index
    %152 = vector.load %arg11[%c0_76, %c0_77] : memref<384x128xf32, #tpu.memory_space<vmem>>, vector<384x128xf32>
    %cst_78 = arith.constant dense<0.000000e+00> : vector<32x128xf32>
    %153 = tpu.matmul %151, %152, %cst_78 {dimension_numbers = #tpu.dot_dimension_numbers<[1], [0], [0], [1], [0, 0, 1, 1], [], []>} : vector<32x384xf32>, vector<384x128xf32>, vector<32x128xf32> -> vector<32x128xf32>
    %c0_79 = arith.constant 0 : index
    %c0_80 = arith.constant 0 : index
    %154 = vector.load %arg8[%c0_79, %c0_80] : memref<32x1xf32, #tpu.memory_space<vmem>>, vector<32x1xf32>
    %155 = vector.broadcast %154 : vector<32x1xf32> to vector<32x128xf32>
    %156 = arith.addf %153, %155 : vector<32x128xf32>
    %c0_81 = arith.constant 0 : index
    %c0_82 = arith.constant 0 : index
    %c0_83 = arith.constant 0 : index
    %157 = vector.load %arg9[%c0_81, %c0_82, %c0_83] : memref<1x32x128xf32, #tpu.memory_space<vmem>>, vector<1x32x128xf32>
    %158 = vector.shape_cast %157 : vector<1x32x128xf32> to vector<32x128xf32>
    %159 = vector.shape_cast %156 : vector<32x128xf32> to vector<1x32x128xf32>
    tpu.vector_store %arg9[%c0_81, %c0_82, %c0_83], %159 {strides = array<i32>} : memref<1x32x128xf32, #tpu.memory_space<vmem>>, vector<1x32x128xf32>,
    return
  }
  func.func @transform_0(%arg0: i32) -> (i32, i32, i32) {
    %c0_i32 = arith.constant 0 : i32
    %c0_i32_0 = arith.constant 0 : i32
    %c0_i32_1 = arith.constant 0 : i32
    return %arg0, %c0_i32, %c0_i32_0 : i32, i32, i32
  }
  func.func @transform_1(%arg0: i32) -> (i32, i32) {
    %c0_i32 = arith.constant 0 : i32
    %c0_i32_0 = arith.constant 0 : i32
    %c0_i32_1 = arith.constant 0 : i32
    return %c0_i32, %c0_i32_0 : i32, i32
  }
  func.func @transform_2(%arg0: i32) -> (i32, i32) {
    %c0_i32 = arith.constant 0 : i32
    %c0_i32_0 = arith.constant 0 : i32
    %c0_i32_1 = arith.constant 0 : i32
    return %c0_i32, %c0_i32_0 : i32, i32
  }
  func.func @transform_3(%arg0: i32) -> (i32, i32) {
    %c0_i32 = arith.constant 0 : i32
    %c0_i32_0 = arith.constant 0 : i32
    %c0_i32_1 = arith.constant 0 : i32
    return %c0_i32, %c0_i32_0 : i32, i32
  }
  func.func @transform_4(%arg0: i32) -> (i32, i32, i32) {
    %c0_i32 = arith.constant 0 : i32
    %c0_i32_0 = arith.constant 0 : i32
    %c0_i32_1 = arith.constant 0 : i32
    %c0_i32_2 = arith.constant 0 : i32
    return %c0_i32, %c0_i32_0, %c0_i32_1 : i32, i32, i32
  }
  func.func @transform_5(%arg0: i32) -> (i32, i32) {
    %c0_i32 = arith.constant 0 : i32
    %c0_i32_0 = arith.constant 0 : i32
    %c0_i32_1 = arith.constant 0 : i32
    return %c0_i32, %c0_i32_0 : i32, i32
  }
  func.func @transform_6(%arg0: i32) -> (i32, i32) {
    %c0_i32 = arith.constant 0 : i32
    %c0_i32_0 = arith.constant 0 : i32
    %c0_i32_1 = arith.constant 0 : i32
    return %c0_i32, %c0_i32_0 : i32, i32
  }
  func.func @transform_7(%arg0: i32) -> (i32, i32) {
    %c0_i32 = arith.constant 0 : i32
    %c0_i32_0 = arith.constant 0 : i32
    %c0_i32_1 = arith.constant 0 : i32
    return %c0_i32, %c0_i32_0 : i32, i32
  }
  func.func @transform_8(%arg0: i32) -> (i32, i32, i32) {
    %c0_i32 = arith.constant 0 : i32
    %c0_i32_0 = arith.constant 0 : i32
    %c0_i32_1 = arith.constant 0 : i32
    return %arg0, %c0_i32, %c0_i32_0 : i32, i32, i32
  }
}

module attributes {stable_mosaic.version = 11 : i64} {
  func.func @tcn_kernel(%arg0: i32, %arg1: memref<1x32x128xf32, #tpu.memory_space<vmem>>, %arg2: memref<1x32x128xf32, #tpu.memory_space<vmem>>, %arg3: memref<32x1xf32, #tpu.memory_space<vmem>>, %arg4: memref<32x1xf32, #tpu.memory_space<vmem>>, %arg5: memref<32x288xf32, #tpu.memory_space<vmem>>, %arg6: memref<32x1xf32, #tpu.memory_space<vmem>>, %arg7: memref<1x32x128xf32, #tpu.memory_space<vmem>>, %arg8: memref<32x192xf32, #tpu.memory_space<vmem>>) attributes {dimension_semantics = [#tpu.dimension_semantics<parallel>], iteration_bounds = array<i64: 2>, scalar_prefetch = 0 : i64, scratch_operands = 1 : i64, tpu.core_type = #tpu.core_type<tc>, window_params = [{transform_indices = @transform_0, window_bounds = array<i64: 1, 32, 128>}, {transform_indices = @transform_1, window_bounds = array<i64: 1, 32, 128>}, {pipeline_mode = #tpu.pipeline_mode<synchronous>, transform_indices = @transform_2, window_bounds = array<i64: 32, 1>}, {pipeline_mode = #tpu.pipeline_mode<synchronous>, transform_indices = @transform_3, window_bounds = array<i64: 32, 1>}, {pipeline_mode = #tpu.pipeline_mode<synchronous>, transform_indices = @transform_4, window_bounds = array<i64: 32, 288>}, {pipeline_mode = #tpu.pipeline_mode<synchronous>, transform_indices = @transform_5, window_bounds = array<i64: 32, 1>}, {transform_indices = @transform_6, window_bounds = array<i64: 1, 32, 128>}]} {
    %c0 = arith.constant 0 : index
    %c0_0 = arith.constant 0 : index
    %c0_1 = arith.constant 0 : index
    %0 = vector.load %arg1[%c0, %c0_0, %c0_1] : memref<1x32x128xf32, #tpu.memory_space<vmem>>, vector<1x32x128xf32>
    %1 = vector.shape_cast %0 : vector<1x32x128xf32> to vector<32x128xf32>
    %c0_2 = arith.constant 0 : index
    %c0_3 = arith.constant 0 : index
    %2 = vector.load %arg3[%c0_2, %c0_3] : memref<32x1xf32, #tpu.memory_space<vmem>>, vector<32x1xf32>
    %3 = vector.broadcast %2 : vector<32x1xf32> to vector<32x128xf32>
    %4 = arith.mulf %1, %3 : vector<32x128xf32>
    %c0_4 = arith.constant 0 : index
    %c0_5 = arith.constant 0 : index
    %5 = vector.load %arg4[%c0_4, %c0_5] : memref<32x1xf32, #tpu.memory_space<vmem>>, vector<32x1xf32>
    %6 = vector.broadcast %5 : vector<32x1xf32> to vector<32x128xf32>
    %7 = arith.addf %4, %6 : vector<32x128xf32>
    %c0_6 = arith.constant 0 : index
    %c0_7 = arith.constant 0 : index
    %c0_8 = arith.constant 0 : index
    %8 = vector.load %arg2[%c0_6, %c0_7, %c0_8] : memref<1x32x128xf32, #tpu.memory_space<vmem>>, vector<1x32x128xf32>
    %9 = vector.shape_cast %8 : vector<1x32x128xf32> to vector<32x128xf32>
    %10 = arith.addf %7, %9 : vector<32x128xf32>
    %cst = arith.constant 0.000000e+00 : f32
    %11 = vector.broadcast %cst : f32 to vector<32x128xf32>
    %12 = arith.maximumf %10, %11 : vector<32x128xf32>
    %cst_9 = arith.constant 0.000000e+00 : f32
    %13 = vector.broadcast %cst_9 : f32 to vector<32x32xf32>
    %c0_10 = arith.constant 0 : index
    %c0_11 = arith.constant 0 : index
    %14 = vector.load %arg8[%c0_10, %c0_11] : memref<32x192xf32, #tpu.memory_space<vmem>>, vector<32x32xf32>
    tpu.vector_store %arg8[%c0_10, %c0_11], %13 {strides = array<i32>} : memref<32x192xf32, #tpu.memory_space<vmem>>, vector<32x32xf32>,
    %cst_12 = arith.constant 0.000000e+00 : f32
    %15 = vector.broadcast %cst_12 : f32 to vector<32x32xf32>
    %c0_13 = arith.constant 0 : index
    %c160 = arith.constant 160 : index
    %16 = vector.load %arg8[%c0_13, %c160] : memref<32x192xf32, #tpu.memory_space<vmem>>, vector<32x32xf32>
    tpu.vector_store %arg8[%c0_13, %c160], %15 {strides = array<i32>} : memref<32x192xf32, #tpu.memory_space<vmem>>, vector<32x32xf32>,
    %c0_14 = arith.constant 0 : index
    %c32 = arith.constant 32 : index
    %17 = vector.load %arg8[%c0_14, %c32] : memref<32x192xf32, #tpu.memory_space<vmem>>, vector<32x128xf32>
    tpu.vector_store %arg8[%c0_14, %c32], %12 {strides = array<i32>} : memref<32x192xf32, #tpu.memory_space<vmem>>, vector<32x128xf32>,
    %c0_15 = arith.constant 0 : index
    %c0_16 = arith.constant 0 : index
    %18 = vector.load %arg8[%c0_15, %c0_16] : memref<32x192xf32, #tpu.memory_space<vmem>>, vector<32x128xf32>
    %c0_17 = arith.constant 0 : index
    %c8 = arith.constant 8 : index
    %19 = vector.load %arg8[%c0_17, %c8] : memref<32x192xf32, #tpu.memory_space<vmem>>, vector<32x128xf32>
    %c0_18 = arith.constant 0 : index
    %c16 = arith.constant 16 : index
    %20 = vector.load %arg8[%c0_18, %c16] : memref<32x192xf32, #tpu.memory_space<vmem>>, vector<32x128xf32>
    %c0_19 = arith.constant 0 : index
    %c24 = arith.constant 24 : index
    %21 = vector.load %arg8[%c0_19, %c24] : memref<32x192xf32, #tpu.memory_space<vmem>>, vector<32x128xf32>
    %c0_20 = arith.constant 0 : index
    %c32_21 = arith.constant 32 : index
    %22 = vector.load %arg8[%c0_20, %c32_21] : memref<32x192xf32, #tpu.memory_space<vmem>>, vector<32x128xf32>
    %c0_22 = arith.constant 0 : index
    %c40 = arith.constant 40 : index
    %23 = vector.load %arg8[%c0_22, %c40] : memref<32x192xf32, #tpu.memory_space<vmem>>, vector<32x128xf32>
    %c0_23 = arith.constant 0 : index
    %c48 = arith.constant 48 : index
    %24 = vector.load %arg8[%c0_23, %c48] : memref<32x192xf32, #tpu.memory_space<vmem>>, vector<32x128xf32>
    %c0_24 = arith.constant 0 : index
    %c56 = arith.constant 56 : index
    %25 = vector.load %arg8[%c0_24, %c56] : memref<32x192xf32, #tpu.memory_space<vmem>>, vector<32x128xf32>
    %c0_25 = arith.constant 0 : index
    %c64 = arith.constant 64 : index
    %26 = vector.load %arg8[%c0_25, %c64] : memref<32x192xf32, #tpu.memory_space<vmem>>, vector<32x128xf32>
    %27 = tpu.concatenate %18, %19, %20, %21, %22, %23, %24, %25, %26 in 0 : vector<32x128xf32>, vector<32x128xf32>, vector<32x128xf32>, vector<32x128xf32>, vector<32x128xf32>, vector<32x128xf32>, vector<32x128xf32>, vector<32x128xf32>, vector<32x128xf32> -> vector<288x128xf32>
    %c0_26 = arith.constant 0 : index
    %c0_27 = arith.constant 0 : index
    %28 = vector.load %arg5[%c0_26, %c0_27] : memref<32x288xf32, #tpu.memory_space<vmem>>, vector<32x288xf32>
    %cst_28 = arith.constant dense<0.000000e+00> : vector<32x128xf32>
    %29 = tpu.matmul %28, %27, %cst_28 {dimension_numbers = #tpu.dot_dimension_numbers<[1], [0], [0], [1], [0, 0, 1, 1], [], []>} : vector<32x288xf32>, vector<288x128xf32>, vector<32x128xf32> -> vector<32x128xf32>
    %c0_29 = arith.constant 0 : index
    %c0_30 = arith.constant 0 : index
    %30 = vector.load %arg6[%c0_29, %c0_30] : memref<32x1xf32, #tpu.memory_space<vmem>>, vector<32x1xf32>
    %31 = vector.broadcast %30 : vector<32x1xf32> to vector<32x128xf32>
    %32 = arith.addf %29, %31 : vector<32x128xf32>
    %c0_31 = arith.constant 0 : index
    %c0_32 = arith.constant 0 : index
    %c0_33 = arith.constant 0 : index
    %33 = vector.load %arg7[%c0_31, %c0_32, %c0_33] : memref<1x32x128xf32, #tpu.memory_space<vmem>>, vector<1x32x128xf32>
    %34 = vector.shape_cast %33 : vector<1x32x128xf32> to vector<32x128xf32>
    %35 = vector.shape_cast %32 : vector<32x128xf32> to vector<1x32x128xf32>
    tpu.vector_store %arg7[%c0_31, %c0_32, %c0_33], %35 {strides = array<i32>} : memref<1x32x128xf32, #tpu.memory_space<vmem>>, vector<1x32x128xf32>,
    return
  }
  func.func @transform_0(%arg0: i32) -> (i32, i32, i32) {
    %c0_i32 = arith.constant 0 : i32
    %c0_i32_0 = arith.constant 0 : i32
    %c0_i32_1 = arith.constant 0 : i32
    return %arg0, %c0_i32, %c0_i32_0 : i32, i32, i32
  }
  func.func @transform_1(%arg0: i32) -> (i32, i32, i32) {
    %c0_i32 = arith.constant 0 : i32
    %c0_i32_0 = arith.constant 0 : i32
    %c0_i32_1 = arith.constant 0 : i32
    return %arg0, %c0_i32, %c0_i32_0 : i32, i32, i32
  }
  func.func @transform_2(%arg0: i32) -> (i32, i32) {
    %c0_i32 = arith.constant 0 : i32
    %c0_i32_0 = arith.constant 0 : i32
    %c0_i32_1 = arith.constant 0 : i32
    return %c0_i32, %c0_i32_0 : i32, i32
  }
  func.func @transform_3(%arg0: i32) -> (i32, i32) {
    %c0_i32 = arith.constant 0 : i32
    %c0_i32_0 = arith.constant 0 : i32
    %c0_i32_1 = arith.constant 0 : i32
    return %c0_i32, %c0_i32_0 : i32, i32
  }
  func.func @transform_4(%arg0: i32) -> (i32, i32) {
    %c0_i32 = arith.constant 0 : i32
    %c0_i32_0 = arith.constant 0 : i32
    %c0_i32_1 = arith.constant 0 : i32
    return %c0_i32, %c0_i32_0 : i32, i32
  }
  func.func @transform_5(%arg0: i32) -> (i32, i32) {
    %c0_i32 = arith.constant 0 : i32
    %c0_i32_0 = arith.constant 0 : i32
    %c0_i32_1 = arith.constant 0 : i32
    return %c0_i32, %c0_i32_0 : i32, i32
  }
  func.func @transform_6(%arg0: i32) -> (i32, i32, i32) {
    %c0_i32 = arith.constant 0 : i32
    %c0_i32_0 = arith.constant 0 : i32
    %c0_i32_1 = arith.constant 0 : i32
    return %arg0, %c0_i32, %c0_i32_0 : i32, i32, i32
  }
}

</mosaic_0001>

<bundles_post_ra>
// kernel: tcn_gcn_unit5_forward.3
= control target key start
LH: loop header
LB: loop body
LE: loop exit
PB: predicated region body
PF: predicated region fallthrough
CT: control target
= control target key end

     0   :  { %s1245_s21 = smov 0   ;;  %s1412_s0 = inlined_call_operand.vmem [shape: f32[2,32,128], index: 0, kind: input, shape index: {}]   ;;  %s1413_s1 = inlined_call_operand.vmem [shape: f32[2,32,128], index: 1, kind: input, shape index: {}]   ;;  %s1414_s2 = inlined_call_operand.vmem [shape: f32[32,1], index: 2, kind: input, shape index: {}]   ;;  %s1415_s3 = inlined_call_operand.vmem [shape: f32[32,1], index: 3, kind: input, shape index: {}]   ;;  %s1416_s4 = inlined_call_operand.vmem [shape: f32[32,288], index: 4, kind: input, shape index: {}]   ;;  %s1417_s5 = inlined_call_operand.vmem [shape: f32[32,1], index: 5, kind: input, shape index: {}]   ;;  %s1418_s6 = inlined_call_operand.vmem [shape: f32[2,32,128], index: 6, kind: output, shape index: {}]  }
   0x1 LB: > { %s884_s22 = sadd.s32 4294967295, %s1197_s21   ;;  %p888_p0 = scmp.ge.s32.totalorder %s1197_s21, 1  ;;  %s1197_s21 = sphi %s1245_s21, %s16_s21  }
   0x2   : > { %p222_p1 = scmp.lt.s32.totalorder %s1197_s21, 3 }
   0x4   : > { %p223_p2 = pnand %p888_p0, %p222_p1 }
   0x5   : > { %v304_v0 = vld [vmem:[%s1415_s3] sm:$0xff] (!%p223_p2)  ;;  %v1199_v2 = vmov (!%p223_p2), 0   ;;  %v305_v3 = vld [vmem:[%s1415_s3 + $0x8] sm:$0xff] (!%p223_p2)  ;;  %v279_v5 = vld [vmem:[%s1414_s2 + $0x18] sm:$0xff] (!%p223_p2)  ;;  %vm344_vm0 = vcmask (!%p223_p2), 261120   ;;  %vm349_vm1 = vcmask (!%p223_p2), 523520  }
   0x6   : > { %226 = sbr.rel (%p223_p2) target bundleno = 682 (0x2aa), region = 44  ;;  %v276_v1 = vld [vmem:[%s1414_s2] sm:$0xff] (!%p223_p2)  ;;  %1030 = vset.pattern.permute.xlu1 (!%p223_p2), %v1199_v2  ;;  %1029 = vset.pattern.permute.xlu0 (!%p223_p2), %v1199_v2  ;;  %v277_v4 = vld [vmem:[%s1414_s2 + $0x8] sm:$0xff] (!%p223_p2)  ;;  %v278_v6 = vld [vmem:[%s1414_s2 + $0x10] sm:$0xff] (!%p223_p2)  ;;  %v1200_v9 = vmov (!%p223_p2), 0.0   ;;  %p257_p3 = scmp.lt.s32.totalorder (!%p223_p2), %s884_s22, 1 }
   0x7   : > { %310 = vperm.xlu1 (!%p223_p2), %1030, %v304_v0   ;;  %282 = vperm.xlu0 (!%p223_p2), %1029, %v276_v1   ;;  %v307_v7 = vld [vmem:[%s1415_s3 + $0x18] sm:$0xff] (!%p223_p2)  ;;  %v306_v8 = vld [vmem:[%s1415_s3 + $0x10] sm:$0xff] (!%p223_p2)  ;;  %345 = vst.msk [vmem:[#allocation2] sm:$0xff] (!%p223_p2), %vm344_vm0, %v1200_v9  ;;  %346 = vst.msk [vmem:[#allocation2 + $0x10] sm:$0xff] (!%p223_p2), %vm344_vm0, %v1200_v9  ;;  %vm370_vm2 = vcmask (!%p223_p2), 1047808   ;;  %s1202_s24 = smov (!%p223_p2), 96  }
   0x8   : > { %350 = vst.msk [vmem:[#allocation2 + $0x8] sm:$0xff] (!%p223_p2), %vm349_vm1, %v1200_v9  ;;  %351 = vst.msk [vmem:[#allocation2 + $0x18] sm:$0xff] (!%p223_p2), %vm349_vm1, %v1200_v9  ;;  %s1203_s25 = smov (!%p223_p2), 88   ;;  %s1204_s26 = smov (!%p223_p2), 120   ;;  %v596_v60 = vld [vmem:[%s1416_s4 + $0x8] sm:$0xff] (!%p223_p2)  ;;  %v597_v61 = vld [vmem:[%s1416_s4 + $0x10] sm:$0xff] (!%p223_p2) }
   0x9   : > { %347 = vst.msk [vmem:[#allocation2 + $0x20] sm:$0xff] (!%p223_p2), %vm344_vm0, %v1200_v9  ;;  %348 = vst.msk [vmem:[#allocation2 + $0x30] sm:$0xff] (!%p223_p2), %vm344_vm0, %v1200_v9  ;;  %s1205_s27 = smov (!%p223_p2), 80   ;;  %s1206_s28 = smov (!%p223_p2), 112   ;;  %707 = vmatprep.mubr.f32.mxu0 (!%p223_p2), %v596_v60  ;;  %964 = vmatprep.mubr.msk.f32.mxu1 (!%p223_p2), %vm344_vm0, %v597_v61  ;;  %v608_v62 = vld [vmem:[%s1417_s5 + $0x8] sm:$0xff] (!%p223_p2)  ;;  %v607_v63 = vld [vmem:[%s1417_s5] sm:$0xff] (!%p223_p2) }
   0xa   : > { %352 = vst.msk [vmem:[#allocation2 + $0x28] sm:$0xff] (!%p223_p2), %vm349_vm1, %v1200_v9  ;;  %353 = vst.msk [vmem:[#allocation2 + $0x38] sm:$0xff] (!%p223_p2), %vm349_vm1, %v1200_v9  ;;  %s1207_s29 = smov (!%p223_p2), 72   ;;  %s1208_s30 = smov (!%p223_p2), 104   ;;  %v610_v0 = vld [vmem:[%s1417_s5 + $0x18] sm:$0xff] (!%p223_p2)  ;;  %v609_v1 = vld [vmem:[%s1417_s5 + $0x10] sm:$0xff] (!%p223_p2) }
   0xb   : > { %315 = vperm.xlu1 (!%p223_p2), %1030, %v305_v3   ;;  %287 = vperm.xlu0 (!%p223_p2), %1029, %v277_v4   ;;  %s1209_s9 = smov (!%p223_p2), 64   ;;  %vm486_vm3 = vcmask (!%p223_p2), 785408   ;;  %vm511_vm4 = vcmask (!%p223_p2), 719872   ;;  %vm411_vm5 = vcmask (!%p223_p2), 982016   ;;  %vm536_vm6 = vcmask (!%p223_p2), 654336  }
   0xc   : > { %vm436_vm7 = vcmask (!%p223_p2), 916480   ;;  %vm561_vm8 = vcmask (!%p223_p2), 588800   ;;  %vm461_vm9 = vcmask (!%p223_p2), 850944   ;;  %vm586_vm10 = vcmask (!%p223_p2), 523264  }
   0xd   : > { %s1420_s22 = smov (!%p257_p3, %s884_s22), 1 }
   0xe   : > { %s1285_s15 = sshll.u32 %s1420_s22, 5  ;;  %s1201_s22 = smov 32  }
   0xf   : > { %297 = vperm.xlu1 %1030, %v279_v5   ;;  %292 = vperm.xlu0 %1029, %v278_v6   ;;  %s261_s18 = scalar_lea.vmem %s1412_s0, %s1285_s15  ;;  %s266_s23 = scalar_lea.vmem %s1413_s1, %s1285_s15 }
  0x10   : > { %v272_v10 = vld [vmem:[%s261_s18] sm:$0xff]  ;;  %v273_v14 = vld [vmem:[%s261_s18 + $0x8] sm:$0xff]  ;;  %v275_v25 = vld [vmem:[%s261_s18 + $0x18] sm:$0xff] }
  0x11   : > { %v332_v15 = vld [vmem:[%s266_s23] sm:$0xff]  ;;  %v333_v21 = vld [vmem:[%s266_s23 + $0x8] sm:$0xff]  ;;  %v274_v27 = vld [vmem:[%s261_s18 + $0x10] sm:$0xff] }
  0x12   : > { %v335_v33 = vld [vmem:[%s266_s23 + $0x18] sm:$0xff]  ;;  %v334_v35 = vld [vmem:[%s266_s23 + $0x10] sm:$0xff]  ;;  %s271_s23 = scalar_lea.vmem %s1418_s6, %s1285_s15 }
  0x13   : > { %325 = vperm.xlu1 %1030, %v307_v7   ;;  %320 = vperm.xlu0 %1029, %v306_v8  }
  0x86   : > { %v311_v11 = vpop.permute.xlu1 %310  ;;  %v283_v12 = vpop.permute.xlu0 %282 }
  0x87   : > { %v300_v13 = vmul.f32 %v283_v12, %v272_v10 }
  0x89   : > { %v328_v16 = vadd.f32 %v311_v11, %v300_v13 }
  0x8a   : > { %v316_v17 = vpop.permute.xlu1 %315  ;;  %v288_v18 = vpop.permute.xlu0 %287 }
  0x8b   : > { %v301_v19 = vmul.f32 %v288_v18, %v273_v14  ;;  %v336_v20 = vadd.f32 %v332_v15, %v328_v16 }
  0x8d   : > { %v329_v22 = vadd.f32 %v316_v17, %v301_v19  ;;  %v340_v23 = vmax.f32 %v336_v20, 0.0 }
  0x8e   : > { %v298_v24 = vpop.permute.xlu1 %297  ;;  %v293_v26 = vpop.permute.xlu0 %292 }
  0x8f   : > { %358 = vrot.lane.b32.xlu0 %v340_v23, %s1201_s22  ;;  %v337_v28 = vadd.f32 %v333_v21, %v329_v22  ;;  %v303_v29 = vmul.f32 %v298_v24, %v275_v25  ;;  %v302_v30 = vmul.f32 %v293_v26, %v274_v27 }
  0x91   : > { %v341_v31 = vmax.f32 %v337_v28, 0.0 }
  0x92   : > { %v326_v32 = vpop.permute.xlu1 %325  ;;  %v321_v34 = vpop.permute.xlu0 %320 }
  0x93   : > { %v331_v36 = vadd.f32 %v326_v32, %v303_v29  ;;  %v330_v37 = vadd.f32 %v321_v34, %v302_v30  ;;  %360 = vrot.lane.b32.xlu1 %v341_v31, %s1201_s22 }
  0x95   : > { %v339_v38 = vadd.f32 %v335_v33, %v331_v36  ;;  %v338_v39 = vadd.f32 %v334_v35, %v330_v37 }
  0x97   : > { %v343_v40 = vmax.f32 %v339_v38, 0.0  ;;  %v342_v41 = vmax.f32 %v338_v39, 0.0 }
  0x99   : > { %364 = vrot.lane.b32.xlu1 %v343_v40, %s1201_s22  ;;  %362 = vrot.lane.b32.xlu0 %v342_v41, %s1201_s22 }
 0x101   : > { %v359_v42 = vpop.permute.xlu0 %358 }
 0x102   : > { %371 = vst.msk [vmem:[#allocation2] sm:$0xff] %vm370_vm2, %v359_v42 }
 0x103   : > { %372 = vst.msk [vmem:[#allocation2 + $0x8] sm:$0xff] %vm344_vm0, %v359_v42 }
 0x105   : > { %v361_v43 = vpop.permute.xlu1 %360 }
 0x106   : > { %373 = vst.msk [vmem:[#allocation2 + $0x10] sm:$0xff] %vm370_vm2, %v361_v43 }
 0x107   : > { %374 = vst.msk [vmem:[#allocation2 + $0x18] sm:$0xff] %vm344_vm0, %v361_v43 }
 0x109   : > { %v1297_v44 = vld [vmem:[#allocation2] sm:$0xff] }
 0x10a   : > { %v383_v45 = vld [vmem:[#allocation2 + $0x8] sm:$0xff] }
 0x10b   : > { %v1031_v46 = vpack.i.bf16 %v383_v45, %v1297_v44  ;;  %v365_v47 = vpop.permute.xlu1 %364  ;;  %v363_v48 = vpop.permute.xlu0 %362 }
 0x10c   : > { %377 = vst.msk [vmem:[#allocation2 + $0x30] sm:$0xff] %vm370_vm2, %v365_v47  ;;  %375 = vst.msk [vmem:[#allocation2 + $0x20] sm:$0xff] %vm370_vm2, %v363_v48 }
 0x10d   : > { %378 = vst.msk [vmem:[#allocation2 + $0x38] sm:$0xff] %vm344_vm0, %v365_v47  ;;  %376 = vst.msk [vmem:[#allocation2 + $0x28] sm:$0xff] %vm344_vm0, %v363_v48  ;;  %1032 = vrot.lane.b32.xlu0 %v1031_v46, %s1202_s24  ;;  %v1302_v49 = vld [vmem:[#allocation2 + $0x10] sm:$0xff] }
 0x10e   : > { %v384_v50 = vld [vmem:[#allocation2 + $0x18] sm:$0xff]  ;;  %v972_v52 = vpack.c.bf16 %v1302_v49, %v1297_v44 }
 0x10f   : > { %v1036_v51 = vpack.i.bf16 %v384_v50, %v1302_v49 }
 0x111   : > { %1037 = vrot.lane.b32.xlu1 %v1036_v51, %s1202_s24 }
 0x113   : > { %v1307_v53 = vld [vmem:[#allocation2 + $0x30] sm:$0xff]  ;;  %v1309_v55 = vld [vmem:[#allocation2 + $0x20] sm:$0xff] }
 0x114   : > { %v386_v54 = vld [vmem:[#allocation2 + $0x38] sm:$0xff]  ;;  %v385_v57 = vld [vmem:[#allocation2 + $0x28] sm:$0xff]  ;;  %v976_v59 = vpack.c.bf16 %v1307_v53, %v1309_v55 }
 0x115   : > { %v1046_v56 = vpack.i.bf16 %v386_v54, %v1307_v53  ;;  %v1041_v58 = vpack.i.bf16 %v385_v57, %v1309_v55 }
 0x117   : > { %1047 = vrot.lane.b32.xlu1 %v1046_v56, %s1202_s24  ;;  %1042 = vrot.lane.b32.xlu0 %v1041_v58, %s1202_s24 }
 0x11b   : > { %1057 = vrot.lane.b32.xlu1 %v1036_v51, %s1203_s25  ;;  %1052 = vrot.lane.b32.xlu0 %v1031_v46, %s1203_s25 }
 0x11f   : > { %1067 = vrot.lane.b32.xlu1 %v1036_v51, %s1204_s26  ;;  %1062 = vrot.lane.b32.xlu0 %v1031_v46, %s1204_s26 }
 0x123   : > { %1077 = vrot.lane.b32.xlu1 %v1046_v56, %s1203_s25  ;;  %1072 = vrot.lane.b32.xlu0 %v1041_v58, %s1203_s25 }
 0x127   : > { %1087 = vrot.lane.b32.xlu1 %v1046_v56, %s1204_s26  ;;  %1082 = vrot.lane.b32.xlu0 %v1041_v58, %s1204_s26 }
 0x12b   : > { %1097 = vrot.lane.b32.xlu1 %v1036_v51, %s1205_s27  ;;  %1092 = vrot.lane.b32.xlu0 %v1031_v46, %s1205_s27 }
 0x12f   : > { %1107 = vrot.lane.b32.xlu1 %v1036_v51, %s1206_s28  ;;  %1102 = vrot.lane.b32.xlu0 %v1031_v46, %s1206_s28 }
 0x133   : > { %1117 = vrot.lane.b32.xlu1 %v1046_v56, %s1205_s27  ;;  %1112 = vrot.lane.b32.xlu0 %v1041_v58, %s1205_s27 }
 0x137   : > { %1127 = vrot.lane.b32.xlu1 %v1046_v56, %s1206_s28  ;;  %1122 = vrot.lane.b32.xlu0 %v1041_v58, %s1206_s28 }
 0x13b   : > { %1137 = vrot.lane.b32.xlu1 %v1036_v51, %s1207_s29  ;;  %1132 = vrot.lane.b32.xlu0 %v1031_v46, %s1207_s29 }
 0x13f   : > { %1147 = vrot.lane.b32.xlu1 %v1036_v51, %s1208_s30  ;;  %1142 = vrot.lane.b32.xlu0 %v1031_v46, %s1208_s30 }
 0x143   : > { %1157 = vrot.lane.b32.xlu1 %v1046_v56, %s1207_s29  ;;  %1152 = vrot.lane.b32.xlu0 %v1041_v58, %s1207_s29 }
 0x147   : > { %1167 = vrot.lane.b32.xlu1 %v1046_v56, %s1208_s30  ;;  %1162 = vrot.lane.b32.xlu0 %v1041_v58, %s1208_s30 }
 0x14b   : > { %1177 = vrot.lane.b32.xlu1 %v1036_v51, %s1209_s9  ;;  %1172 = vrot.lane.b32.xlu0 %v1031_v46, %s1209_s9 }
 0x14f   : > { %1187 = vrot.lane.b32.xlu1 %v1046_v56, %s1209_s9  ;;  %1182 = vrot.lane.b32.xlu0 %v1041_v58, %s1209_s9 }
 0x153   : > { %618 = vperm.xlu1 %1030, %v608_v62   ;;  %613 = vperm.xlu0 %1029, %v607_v63  }
 0x157   : > { %628 = vperm.xlu1 %1030, %v610_v0   ;;  %623 = vperm.xlu0 %1029, %v609_v1  }
 0x17f   : > { %v1033_v2 = vpop.permute.xlu0 %1032 }
 0x180   : > { %v1035_v3 = vunpack.i.h.bf16 %v1033_v2  ;;  %v1034_v4 = vunpack.i.l.bf16 %v1033_v2 }
 0x182   : > { %v487_v8 = vsel %vm486_vm3, %v1034_v4, %v1035_v3 }
 0x183   : > { %v1038_v5 = vpop.permute.xlu1 %1037 }
 0x184   : > { %v1040_v6 = vunpack.i.h.bf16 %v1038_v5  ;;  %v1039_v7 = vunpack.i.l.bf16 %v1038_v5 }
 0x186   : > { %v488_v9 = vsel %vm486_vm3, %v1039_v7, %v1040_v6 }
 0x187   : > { %v970_v10 = vpack.c.bf16 %v488_v9, %v487_v8 }
 0x189   : > { %v1048_v11 = vpop.permute.xlu1 %1047  ;;  %971 = vmatprep.subr.bf16.mxu0 %v970_v10  ;;  %v1043_v14 = vpop.permute.xlu0 %1042 }
 0x18a   : > { %v1050_v12 = vunpack.i.h.bf16 %v1048_v11  ;;  %v1049_v13 = vunpack.i.l.bf16 %v1048_v11  ;;  %973 = vmatpush3.bf16.msra.mxu0 %v972_v52  ;;  %v1045_v15 = vunpack.i.h.bf16 %v1043_v14  ;;  %v1044_v16 = vunpack.i.l.bf16 %v1043_v14 }
 0x18c   : > { %v490_v17 = vsel %vm486_vm3, %v1049_v13, %v1050_v12  ;;  %v489_v19 = vsel %vm486_vm3, %v1044_v16, %v1045_v15 }
 0x18d   : > { %v1058_v18 = vpop.permute.xlu1 %1057  ;;  %v1053_v22 = vpop.permute.xlu0 %1052  ;;  %v974_v23 = vpack.c.bf16 %v490_v17, %v489_v19 }
 0x18e   : > { %v1060_v20 = vunpack.i.h.bf16 %v1058_v18  ;;  %v1059_v21 = vunpack.i.l.bf16 %v1058_v18  ;;  %v1055_v24 = vunpack.i.h.bf16 %v1053_v22  ;;  %v1054_v25 = vunpack.i.l.bf16 %v1053_v22 }
 0x18f   : > { %975 = vmatprep.subr.bf16.mxu0 %v974_v23 }
 0x190   : > { %v513_v26 = vsel %vm511_vm4, %v1059_v21, %v1060_v20  ;;  %977 = vmatpush3.bf16.msra.mxu0 %v976_v59  ;;  %v512_v28 = vsel %vm511_vm4, %v1054_v25, %v1055_v24 }
 0x191   : > { %v1068_v27 = vpop.permute.xlu1 %1067  ;;  %v1063_v31 = vpop.permute.xlu0 %1062  ;;  %v978_v32 = vpack.c.bf16 %v513_v26, %v512_v28 }
 0x192   : > { %v1070_v29 = vunpack.i.h.bf16 %v1068_v27  ;;  %v1069_v30 = vunpack.i.l.bf16 %v1068_v27  ;;  %v1065_v33 = vunpack.i.h.bf16 %v1063_v31  ;;  %v1064_v34 = vunpack.i.l.bf16 %v1063_v31 }
 0x193   : > { %979 = vmatprep.subr.bf16.mxu0 %v978_v32 }
 0x194   : > { %v413_v35 = vsel %vm411_vm5, %v1069_v30, %v1070_v29  ;;  %v412_v37 = vsel %vm411_vm5, %v1064_v34, %v1065_v33 }
 0x195   : > { %v1078_v36 = vpop.permute.xlu1 %1077  ;;  %v1073_v40 = vpop.permute.xlu0 %1072  ;;  %v980_v41 = vpack.c.bf16 %v413_v35, %v412_v37 }
 0x196   : > { %v1080_v38 = vunpack.i.h.bf16 %v1078_v36  ;;  %v1079_v39 = vunpack.i.l.bf16 %v1078_v36  ;;  %v1075_v42 = vunpack.i.h.bf16 %v1073_v40  ;;  %v1074_v43 = vunpack.i.l.bf16 %v1073_v40 }
 0x197   : > { %981 = vmatpush3.bf16.msra.mxu0 %v980_v41 }
 0x198   : > { %v515_v44 = vsel %vm511_vm4, %v1079_v39, %v1080_v38  ;;  %v514_v46 = vsel %vm511_vm4, %v1074_v43, %v1075_v42 }
 0x199   : > { %v1088_v45 = vpop.permute.xlu1 %1087  ;;  %v1083_v49 = vpop.permute.xlu0 %1082  ;;  %v982_v50 = vpack.c.bf16 %v515_v44, %v514_v46 }
 0x19a   : > { %v1090_v47 = vunpack.i.h.bf16 %v1088_v45  ;;  %v1089_v48 = vunpack.i.l.bf16 %v1088_v45  ;;  %v1085_v51 = vunpack.i.h.bf16 %v1083_v49  ;;  %v1084_v52 = vunpack.i.l.bf16 %v1083_v49 }
 0x19b   : > { %983 = vmatprep.subr.bf16.mxu0 %v982_v50 }
 0x19c   : > { %v415_v53 = vsel %vm411_vm5, %v1089_v48, %v1090_v47  ;;  %v414_v55 = vsel %vm411_vm5, %v1084_v52, %v1085_v51 }
 0x19d   : > { %v1098_v54 = vpop.permute.xlu1 %1097  ;;  %v1093_v58 = vpop.permute.xlu0 %1092  ;;  %v984_v59 = vpack.c.bf16 %v415_v53, %v414_v55 }
 0x19e   : > { %v1100_v56 = vunpack.i.h.bf16 %v1098_v54  ;;  %v1099_v57 = vunpack.i.l.bf16 %v1098_v54  ;;  %v1095_v60 = vunpack.i.h.bf16 %v1093_v58  ;;  %v1094_v61 = vunpack.i.l.bf16 %v1093_v58 }
 0x19f   : > { %985 = vmatpush3.bf16.msra.mxu0 %v984_v59 }
 0x1a0   : > { %v538_v62 = vsel %vm536_vm6, %v1099_v57, %v1100_v56  ;;  %v537_v0 = vsel %vm536_vm6, %v1094_v61, %v1095_v60 }
 0x1a1   : > { %v1108_v63 = vpop.permute.xlu1 %1107  ;;  %v1103_v3 = vpop.permute.xlu0 %1102  ;;  %v986_v4 = vpack.c.bf16 %v538_v62, %v537_v0 }
 0x1a2   : > { %v1110_v1 = vunpack.i.h.bf16 %v1108_v63  ;;  %v1109_v2 = vunpack.i.l.bf16 %v1108_v63  ;;  %v1105_v5 = vunpack.i.h.bf16 %v1103_v3  ;;  %v1104_v6 = vunpack.i.l.bf16 %v1103_v3 }
 0x1a3   : > { %987 = vmatprep.subr.bf16.mxu0 %v986_v4 }
 0x1a4   : > { %v438_v7 = vsel %vm436_vm7, %v1109_v2, %v1110_v1  ;;  %v437_v9 = vsel %vm436_vm7, %v1104_v6, %v1105_v5  ;;  %v595_v6 = vld [vmem:[%s1416_s4] sm:$0xff] }
 0x1a5   : > { %v1118_v8 = vpop.permute.xlu1 %1117  ;;  %v1113_v12 = vpop.permute.xlu0 %1112  ;;  %v988_v13 = vpack.c.bf16 %v438_v7, %v437_v9 }
 0x1a6   : > { %v1120_v10 = vunpack.i.h.bf16 %v1118_v8  ;;  %v1119_v11 = vunpack.i.l.bf16 %v1118_v8  ;;  %v1115_v14 = vunpack.i.h.bf16 %v1113_v12  ;;  %v1114_v15 = vunpack.i.l.bf16 %v1113_v12 }
 0x1a7   : > { %989 = vmatpush3.bf16.msra.mxu0 %v988_v13 }
 0x1a8   : > { %v540_v16 = vsel %vm536_vm6, %v1119_v11, %v1120_v10  ;;  %v539_v18 = vsel %vm536_vm6, %v1114_v15, %v1115_v14  ;;  %v599_v10 = vld [vmem:[%s1416_s4 + $0x20] sm:$0xff] }
 0x1a9   : > { %v1128_v17 = vpop.permute.xlu1 %1127  ;;  %v1123_v21 = vpop.permute.xlu0 %1122  ;;  %v990_v22 = vpack.c.bf16 %v540_v16, %v539_v18 }
 0x1aa   : > { %v1130_v19 = vunpack.i.h.bf16 %v1128_v17  ;;  %v1129_v20 = vunpack.i.l.bf16 %v1128_v17  ;;  %v1125_v23 = vunpack.i.h.bf16 %v1123_v21  ;;  %v1124_v24 = vunpack.i.l.bf16 %v1123_v21  ;;  %v598_v17 = vld [vmem:[%s1416_s4 + $0x18] sm:$0xff] }
 0x1ab   : > { %991 = vmatprep.subr.bf16.mxu0 %v990_v22  ;;  %v601_v22 = vld [vmem:[%s1416_s4 + $0x30] sm:$0xff] }
 0x1ac   : > { %v440_v25 = vsel %vm436_vm7, %v1129_v20, %v1130_v19  ;;  %v439_v27 = vsel %vm436_vm7, %v1124_v24, %v1125_v23  ;;  %v602_v20 = vld [vmem:[%s1416_s4 + $0x38] sm:$0xff]  ;;  %v600_v23 = vld [vmem:[%s1416_s4 + $0x28] sm:$0xff]  ;;  %v605_v24 = vld [vmem:[%s1416_s4 + $0x50] sm:$0xff] }
 0x1ad   : > { %v1138_v26 = vpop.permute.xlu1 %1137  ;;  %v1133_v30 = vpop.permute.xlu0 %1132  ;;  %v992_v31 = vpack.c.bf16 %v440_v25, %v439_v27  ;;  %v603_v25 = vld [vmem:[%s1416_s4 + $0x40] sm:$0xff]  ;;  %v606_v27 = vld [vmem:[%s1416_s4 + $0x58] sm:$0xff] }
 0x1ae   : > { %v1140_v28 = vunpack.i.h.bf16 %v1138_v26  ;;  %v1139_v29 = vunpack.i.l.bf16 %v1138_v26  ;;  %v1135_v32 = vunpack.i.h.bf16 %v1133_v30  ;;  %v1134_v33 = vunpack.i.l.bf16 %v1133_v30  ;;  %v604_v26 = vld [vmem:[%s1416_s4 + $0x48] sm:$0xff] }
 0x1af   : > { %993 = vmatpush3.bf16.msra.mxu0 %v992_v31 }
 0x1b0   : > { %v563_v34 = vsel %vm561_vm8, %v1139_v29, %v1140_v28  ;;  %v562_v36 = vsel %vm561_vm8, %v1134_v33, %v1135_v32 }
 0x1b1   : > { %v1148_v35 = vpop.permute.xlu1 %1147  ;;  %v1143_v39 = vpop.permute.xlu0 %1142  ;;  %v994_v40 = vpack.c.bf16 %v563_v34, %v562_v36 }
 0x1b2   : > { %v1150_v37 = vunpack.i.h.bf16 %v1148_v35  ;;  %v1149_v38 = vunpack.i.l.bf16 %v1148_v35  ;;  %v1145_v41 = vunpack.i.h.bf16 %v1143_v39  ;;  %v1144_v42 = vunpack.i.l.bf16 %v1143_v39 }
 0x1b3   : > { %995 = vmatprep.subr.bf16.mxu0 %v994_v40 }
 0x1b4   : > { %v463_v43 = vsel %vm461_vm9, %v1149_v38, %v1150_v37  ;;  %v462_v45 = vsel %vm461_vm9, %v1144_v42, %v1145_v41 }
 0x1b5   : > { %v1158_v44 = vpop.permute.xlu1 %1157  ;;  %v1153_v48 = vpop.permute.xlu0 %1152  ;;  %v996_v49 = vpack.c.bf16 %v463_v43, %v462_v45 }
 0x1b6   : > { %v1160_v46 = vunpack.i.h.bf16 %v1158_v44  ;;  %v1159_v47 = vunpack.i.l.bf16 %v1158_v44  ;;  %v1155_v50 = vunpack.i.h.bf16 %v1153_v48  ;;  %v1154_v51 = vunpack.i.l.bf16 %v1153_v48 }
 0x1b7   : > { %997 = vmatpush3.bf16.msra.mxu0 %v996_v49 }
 0x1b8   : > { %v565_v52 = vsel %vm561_vm8, %v1159_v47, %v1160_v46  ;;  %v564_v54 = vsel %vm561_vm8, %v1154_v51, %v1155_v50 }
 0x1b9   : > { %v1168_v53 = vpop.permute.xlu1 %1167  ;;  %v1163_v57 = vpop.permute.xlu0 %1162  ;;  %v998_v58 = vpack.c.bf16 %v565_v52, %v564_v54 }
 0x1ba   : > { %v1170_v55 = vunpack.i.h.bf16 %v1168_v53  ;;  %v1169_v56 = vunpack.i.l.bf16 %v1168_v53  ;;  %v1165_v59 = vunpack.i.h.bf16 %v1163_v57  ;;  %v1164_v60 = vunpack.i.l.bf16 %v1163_v57 }
 0x1bb   : > { %999 = vmatprep.subr.bf16.mxu0 %v998_v58 }
 0x1bc   : > { %v465_v61 = vsel %vm461_vm9, %v1169_v56, %v1170_v55  ;;  %v464_v63 = vsel %vm461_vm9, %v1164_v60, %v1165_v59 }
 0x1bd   : > { %v1178_v62 = vpop.permute.xlu1 %1177  ;;  %v1173_v2 = vpop.permute.xlu0 %1172  ;;  %v1000_v3 = vpack.c.bf16 %v465_v61, %v464_v63 }
 0x1be   : > { %v1180_v0 = vunpack.i.h.bf16 %v1178_v62  ;;  %v1179_v1 = vunpack.i.l.bf16 %v1178_v62  ;;  %v1175_v4 = vunpack.i.h.bf16 %v1173_v2  ;;  %v1174_v5 = vunpack.i.l.bf16 %v1173_v2 }
 0x1bf   : > { %1001 = vmatpush3.bf16.msra.mxu0 %v1000_v3 }
 0x1c0   : > { %v588_v7 = vsel %vm586_vm10, %v1179_v1, %v1180_v0  ;;  %v587_v9 = vsel %vm586_vm10, %v1174_v5, %v1175_v4 }
 0x1c1   : > { %v1188_v8 = vpop.permute.xlu1 %1187  ;;  %v1183_v13 = vpop.permute.xlu0 %1182  ;;  %v1002_v14 = vpack.c.bf16 %v588_v7, %v587_v9 }
 0x1c2   : > { %v1190_v11 = vunpack.i.h.bf16 %v1188_v8  ;;  %v1189_v12 = vunpack.i.l.bf16 %v1188_v8  ;;  %v1185_v15 = vunpack.i.h.bf16 %v1183_v13  ;;  %v1184_v16 = vunpack.i.l.bf16 %v1183_v13  ;;  %708 = vmatmul.mubr.f32.vlgmr.msra.gmra.mrb[0].mxu0 %v595_v6 }
 0x1c3   : > { %1003 = vmatprep.subr.bf16.mxu1 %v1002_v14  ;;  %712 = vmatprep.mubr.f32.mxu0 %v599_v10 }
 0x1c4   : > { %v590_v18 = vsel %vm586_vm10, %v1189_v12, %v1190_v11  ;;  %1005 = vmatpush3.bf16.msra.mxu1 %v1002_v14  ;;  %v589_v19 = vsel %vm586_vm10, %v1184_v16, %v1185_v15 }
 0x1c5   : > { %v1006_v21 = vpack.c.bf16 %v590_v18, %v589_v19 }
 0x1c6   : > { %713 = vmatmul.mubr.f32.gmra.mrb[2].mxu0 %v598_v17 }
 0x1c7   : > { %1007 = vmatprep.subr.bf16.mxu1 %v1006_v21  ;;  %717 = vmatprep.mubr.f32.mxu0 %v602_v20 }
 0x1c8   : > { %1009 = vmatpush3.bf16.msra.mxu1 %v1006_v21 }
 0x1ca   : > { %718 = vmatmul.mubr.f32.gmra.mrb[4].mxu0 %v601_v22 }
 0x1cb   : > { %965 = vmatmul.mubr.msk.f32.vlgmr.msra.gmra.mrb[0].mxu1 %vm344_vm0, %v600_v23  ;;  %722 = vmatprep.mubr.f32.mxu0 %v605_v24 }
 0x1cc   : > { %967 = vmatprep.mubr.msk.f32.mxu1 %vm344_vm0, %v603_v25 }
 0x1ce   : > { %723 = vmatmul.mubr.f32.gmra.mrb[6].mxu0 %v604_v26 }
 0x1cf   : > { %968 = vmatmul.mubr.msk.f32.gmra.mrb[2].mxu1 %vm344_vm0, %v606_v27 }
 0x1d2   : > { %v614_v32 = vpop.permute.xlu0 %613  ;;  %v619_v35 = vpop.permute.xlu1 %618 }
 0x1d6   : > { %v624_v44 = vpop.permute.xlu0 %623  ;;  %v629_v52 = vpop.permute.xlu1 %628 }
 0x295   : > { %v936_v28 = vpop.f32.mrb[0].mxu0 }
 0x296   : > { %v937_v29 = vpop.f32.mrb[1].mxu0 }
 0x297   : > { %v938_v30 = vadd.f32 %v937_v29, %v936_v28 }
 0x299   : > { %v939_v31 = vpop.f32.mrb[2].mxu0  ;;  %v710_v40 = vadd.f32 %v938_v30, %v614_v32 }
 0x29a   : > { %v940_v33 = vpop.f32.mrb[3].mxu0 }
 0x29b   : > { %v941_v34 = vadd.f32 %v940_v33, %v939_v31 }
 0x29d   : > { %v942_v36 = vpop.f32.mrb[4].mxu0  ;;  %v715_v37 = vadd.f32 %v941_v34, %v619_v35 }
 0x29e   : > { %v943_v38 = vpop.f32.mrb[5].mxu0  ;;  %v966_v39 = vpop.f32.mrb[0].mxu1 }
 0x29f   : > { %v944_v41 = vadd.f32 %v943_v38, %v942_v36  ;;  %v800_v42 = vadd.f32 %v966_v39, %v715_v37  ;;  %v794_v43 = vpop.f32.mrb[1].mxu1 }
 0x2a0   : > { %v795_v45 = vadd.f32 %v794_v43, %v710_v40 }
 0x2a1   : > { %814 = vst [vmem:[%s271_s23 + $0x8] sm:$0xff] %v800_v42  ;;  %v945_v46 = vpop.f32.mrb[6].mxu0  ;;  %v720_v47 = vadd.f32 %v944_v41, %v624_v44 }
 0x2a2   : > { %813 = vst [vmem:[%s271_s23] sm:$0xff] %v795_v45  ;;  %v946_v48 = vpop.f32.mrb[7].mxu0  ;;  %v969_v49 = vpop.f32.mrb[2].mxu1 }
 0x2a3   : > { %v947_v50 = vadd.f32 %v946_v48, %v945_v46  ;;  %v804_v51 = vpop.f32.mrb[3].mxu1 }
 0x2a4   : > { %v805_v53 = vadd.f32 %v804_v51, %v720_v47 }
 0x2a5   : > { %v725_v54 = vadd.f32 %v947_v50, %v629_v52 }
 0x2a6   : > { %815 = vst [vmem:[%s271_s23 + $0x10] sm:$0xff] %v805_v53 }
 0x2a7   : > { %v810_v55 = vadd.f32 %v969_v49, %v725_v54 }
 0x2a9   : > { %816 = vst [vmem:[%s271_s23 + $0x18] sm:$0xff] %v810_v55 }
 0x2aa PF: > { %s16_s21 = sadd.s32 1, %s1197_s21  }
 0x2ab   : > { %p13_p4 = scmp.ge.s32.totalorder %s16_s21, 4  }
 0x2ad   :  { %15 = sbr.rel (!%p13_p4) target bundleno = 1 (0x1), region = 77 }

// kernel: tcn_gcn_unit5_forward.2
= control target key start
LH: loop header
LB: loop body
LE: loop exit
PB: predicated region body
PF: predicated region fallthrough
CT: control target
= control target key end

     0   :  { %s7398_s27 = smov 0   ;;  %s9365_s0 = inlined_call_operand.vmem [shape: f32[2,32,128], index: 0, kind: input, shape index: {}]   ;;  %s9366_s1 = inlined_call_operand.vmem [shape: f32[128,8], index: 1, kind: input, shape index: {}]   ;;  %s9367_s2 = inlined_call_operand.vmem [shape: f32[8,128], index: 2, kind: input, shape index: {}]   ;;  %s9368_s3 = inlined_call_operand.vmem [shape: f32[128,128], index: 3, kind: input, shape index: {}]   ;;  %s9369_s4 = inlined_call_operand.vmem [shape: f32[3,8,8], index: 4, kind: input, shape index: {}]   ;;  %s9370_s5 = inlined_call_operand.vmem [shape: f32[192,288], index: 5, kind: input, shape index: {}]   ;;  %s9371_s6 = inlined_call_operand.vmem [shape: f32[192,1], index: 6, kind: input, shape index: {}]   ;;  %s9372_s7 = inlined_call_operand.vmem [shape: f32[32,1], index: 7, kind: input, shape index: {}]   ;;  %s9373_s8 = inlined_call_operand.vmem [shape: f32[2,32,128], index: 8, kind: output, shape index: {}]  }
   0x1 LB: > { %s5123_s28 = sadd.s32 4294967295, %s7338_s27   ;;  %p5127_p0 = scmp.ge.s32.totalorder %s7338_s27, 1  ;;  %s7338_s27 = sphi %s7398_s27, %s18_s27  }
   0x2   : > { %p262_p1 = scmp.lt.s32.totalorder %s7338_s27, 3 }
   0x4   : > { %p263_p2 = pnand %p5127_p0, %p262_p1 }
   0x6   : > { %266 = sbr.rel (%p263_p2) target bundleno = 4614 (0x1206), region = 52 }
   0xd   : > { %p296_p3 = scmp.lt.s32.totalorder %s5123_s28, 1  ;;  %vm306_vm0 = vcmask 261120   ;;  %vm311_vm1 = vcmask 523520   ;;  %v9374_v0 = vmov 0.0   ;;  %v9377_v1 = vmov 0.0|0.0   ;;  %s7342_s11 = smov 32  }
   0xe   : > { %309 = vst.msk [vmem:[#allocation2 + $0x20] sm:$0xff] %vm306_vm0, %v9374_v0  ;;  %307 = vst.msk [vmem:[#allocation2] sm:$0xff] %vm306_vm0, %v9374_v0  ;;  %6668 = vmatprep.subr.bf16.mxu0 %v9377_v1  ;;  %vm336_vm2 = vcmask 1047808   ;;  %s7343_s12 = smov 120   ;;  %s7344_s13 = smov 112   ;;  %v562_v24 = vld [vmem:[%s9370_s5 + $0x8] sm:$0xff] }
   0xf   : > { %314 = vst.msk [vmem:[#allocation2 + $0x28] sm:$0xff] %vm311_vm1, %v9374_v0  ;;  %312 = vst.msk [vmem:[#allocation2 + $0x8] sm:$0xff] %vm311_vm1, %v9374_v0  ;;  %s9688_s28 = smov (!%p296_p3, %s5123_s28), 1  ;;  %s7345_s14 = smov 104   ;;  %913 = vmatprep.mubr.f32.mxu0 %v562_v24  ;;  %v563_v25 = vld [vmem:[%s9370_s5 + $0x10] sm:$0xff]  ;;  %v633_v26 = vld [vmem:[%s9371_s6] sm:$0xff] }
  0x10   : > { %308 = vst.msk [vmem:[#allocation2 + $0x10] sm:$0xff] %vm306_vm0, %v9374_v0  ;;  %310 = vst.msk [vmem:[#allocation2 + $0x30] sm:$0xff] %vm306_vm0, %v9374_v0  ;;  %s5352_s29 = sshll.u32 %s9688_s28, 5  ;;  %s7346_s15 = smov 96   ;;  %5862 = vmatprep.mubr.msk.f32.mxu1 %vm306_vm0, %v563_v25  ;;  %v7351_v27 = vmov 0   ;;  %v634_v28 = vld [vmem:[%s9371_s6 + $0x8] sm:$0xff] }
  0x11   : > { %313 = vst.msk [vmem:[#allocation2 + $0x18] sm:$0xff] %vm311_vm1, %v9374_v0  ;;  %315 = vst.msk [vmem:[#allocation2 + $0x38] sm:$0xff] %vm311_vm1, %v9374_v0  ;;  %s300_s10 = scalar_lea.vmem %s9365_s0, %s5352_s29  ;;  %s7347_s16 = smov 88   ;;  %7257 = vset.pattern.permute.xlu0 %v7351_v27  ;;  %7258 = vset.pattern.permute.xlu1 %v7351_v27  ;;  %v639_v29 = vld [vmem:[%s9371_s6 + $0x30] sm:$0xff]  ;;  %v640_v30 = vld [vmem:[%s9371_s6 + $0x38] sm:$0xff]  ;;  %vm377_vm3 = vcmask 982016  }
  0x12   : > { %v318_v2 = vld [vmem:[%s300_s10 + $0x10] sm:$0xff]  ;;  %v316_v3 = vld [vmem:[%s300_s10] sm:$0xff]  ;;  %v319_v4 = vld [vmem:[%s300_s10 + $0x18] sm:$0xff]  ;;  %s7348_s17 = smov 80   ;;  %s7349_s18 = smov 72   ;;  %vm402_vm4 = vcmask 916480  }
  0x13   : > { %328 = vrot.lane.b32.xlu1 %v318_v2, %s7342_s11  ;;  %324 = vrot.lane.b32.xlu0 %v316_v3, %s7342_s11  ;;  %v317_v5 = vld [vmem:[%s300_s10 + $0x8] sm:$0xff]  ;;  %s7350_s19 = smov 64   ;;  %vm427_vm5 = vcmask 850944   ;;  %vm452_vm6 = vcmask 785408   ;;  %vm477_vm7 = vcmask 719872   ;;  %vm502_vm8 = vcmask 654336  }
  0x14   : > { %vm527_vm9 = vcmask 588800   ;;  %vm552_vm10 = vcmask 523264   ;;  %vm1284_vm11 = vcmask 64512   ;;  %vm7352_vm12 = vmmov 0  }
  0x17   : > { %330 = vrot.lane.b32.xlu1 %v319_v4, %s7342_s11  ;;  %326 = vrot.lane.b32.xlu0 %v317_v5, %s7342_s11 }
  0x85   : > { %v329_v6 = vpop.permute.xlu1 %328  ;;  %v325_v7 = vpop.permute.xlu0 %324 }
  0x86   : > { %341 = vst.msk [vmem:[#allocation2 + $0x20] sm:$0xff] %vm336_vm2, %v329_v6  ;;  %337 = vst.msk [vmem:[#allocation2] sm:$0xff] %vm336_vm2, %v325_v7 }
  0x87   : > { %342 = vst.msk [vmem:[#allocation2 + $0x28] sm:$0xff] %vm306_vm0, %v329_v6  ;;  %338 = vst.msk [vmem:[#allocation2 + $0x8] sm:$0xff] %vm306_vm0, %v325_v7 }
  0x89   : > { %v331_v8 = vpop.permute.xlu1 %330  ;;  %v327_v9 = vpop.permute.xlu0 %326 }
  0x8a   : > { %343 = vst.msk [vmem:[#allocation2 + $0x30] sm:$0xff] %vm336_vm2, %v331_v8  ;;  %339 = vst.msk [vmem:[#allocation2 + $0x10] sm:$0xff] %vm336_vm2, %v327_v9 }
  0x8b   : > { %344 = vst.msk [vmem:[#allocation2 + $0x38] sm:$0xff] %vm306_vm0, %v331_v8  ;;  %340 = vst.msk [vmem:[#allocation2 + $0x18] sm:$0xff] %vm306_vm0, %v327_v9 }
  0x8d   : > { %v345_v10 = vld [vmem:[#allocation2] sm:$0xff] }
  0x8e   : > { %v349_v11 = vld [vmem:[#allocation2 + $0x8] sm:$0xff]  ;;  %v347_v12 = vld [vmem:[#allocation2 + $0x20] sm:$0xff] }
  0x8f   : > { %v7097_v13 = vpack.i.bf16 %v349_v11, %v345_v10  ;;  %v351_v14 = vld [vmem:[#allocation2 + $0x28] sm:$0xff] }
  0x90   : > { %v7107_v15 = vpack.i.bf16 %v351_v14, %v347_v12 }
  0x91   : > { %7098 = vrot.lane.b32.xlu0 %v7097_v13, %s7343_s12  ;;  %v346_v16 = vld [vmem:[#allocation2 + $0x10] sm:$0xff] }
  0x92   : > { %v350_v17 = vld [vmem:[#allocation2 + $0x18] sm:$0xff]  ;;  %v6669_v19 = vpack.c.bf16 %v346_v16, %v345_v10  ;;  %v348_v21 = vld [vmem:[#allocation2 + $0x30] sm:$0xff] }
  0x93   : > { %v7102_v18 = vpack.i.bf16 %v350_v17, %v346_v16  ;;  %v352_v20 = vld [vmem:[#allocation2 + $0x38] sm:$0xff]  ;;  %v6672_v23 = vpack.c.bf16 %v348_v21, %v347_v12 }
  0x94   : > { %v7112_v22 = vpack.i.bf16 %v352_v20, %v348_v21  ;;  %6670 = vmatpush1.bf16.msra.mxu0 %v6669_v19 }
  0x95   : > { %7108 = vrot.lane.b32.xlu0 %v7107_v15, %s7343_s12  ;;  %7103 = vrot.lane.b32.xlu1 %v7102_v18, %s7343_s12 }
  0x96   : > { %6671 = vmatprep.subr.bf16.mxu0 %v9377_v1 }
  0x98   : > { %6673 = vmatpush1.bf16.msra.mxu0 %v6672_v23 }
  0x99   : > { %7118 = vrot.lane.b32.xlu0 %v7097_v13, %s7344_s13  ;;  %7113 = vrot.lane.b32.xlu1 %v7112_v22, %s7343_s12  ;;  %s305_s12 = scalar_lea.vmem %s9373_s8, %s5352_s29 }
  0x9a   : > { %6674 = vmatprep.subr.bf16.mxu0 %v9377_v1 }
  0x9d   : > { %7128 = vrot.lane.b32.xlu0 %v7107_v15, %s7344_s13  ;;  %7123 = vrot.lane.b32.xlu1 %v7102_v18, %s7344_s13 }
  0xa1   : > { %7138 = vrot.lane.b32.xlu0 %v7097_v13, %s7345_s14  ;;  %7133 = vrot.lane.b32.xlu1 %v7112_v22, %s7344_s13 }
  0xa5   : > { %7148 = vrot.lane.b32.xlu0 %v7107_v15, %s7345_s14  ;;  %7143 = vrot.lane.b32.xlu1 %v7102_v18, %s7345_s14 }
  0xa9   : > { %7158 = vrot.lane.b32.xlu0 %v7097_v13, %s7346_s15  ;;  %7153 = vrot.lane.b32.xlu1 %v7112_v22, %s7345_s14 }
  0xad   : > { %7168 = vrot.lane.b32.xlu0 %v7107_v15, %s7346_s15  ;;  %7163 = vrot.lane.b32.xlu1 %v7102_v18, %s7346_s15 }
  0xb1   : > { %7178 = vrot.lane.b32.xlu0 %v7097_v13, %s7347_s16  ;;  %7173 = vrot.lane.b32.xlu1 %v7112_v22, %s7346_s15 }
  0xb5   : > { %7188 = vrot.lane.b32.xlu0 %v7107_v15, %s7347_s16  ;;  %7183 = vrot.lane.b32.xlu1 %v7102_v18, %s7347_s16 }
  0xb9   : > { %7198 = vrot.lane.b32.xlu0 %v7097_v13, %s7348_s17  ;;  %7193 = vrot.lane.b32.xlu1 %v7112_v22, %s7347_s16 }
  0xbd   : > { %7208 = vrot.lane.b32.xlu0 %v7107_v15, %s7348_s17  ;;  %7203 = vrot.lane.b32.xlu1 %v7102_v18, %s7348_s17 }
  0xc1   : > { %7218 = vrot.lane.b32.xlu0 %v7097_v13, %s7349_s18  ;;  %7213 = vrot.lane.b32.xlu1 %v7112_v22, %s7348_s17 }
  0xc5   : > { %7228 = vrot.lane.b32.xlu0 %v7097_v13, %s7350_s19  ;;  %7223 = vrot.lane.b32.xlu1 %v7102_v18, %s7349_s18 }
  0xc9   : > { %7238 = vrot.lane.b32.xlu0 %v7107_v15, %s7349_s18  ;;  %7233 = vrot.lane.b32.xlu1 %v7102_v18, %s7350_s19 }
  0xcd   : > { %7248 = vrot.lane.b32.xlu0 %v7107_v15, %s7350_s19  ;;  %7243 = vrot.lane.b32.xlu1 %v7112_v22, %s7349_s18 }
  0xd1   : > { %7253 = vrot.lane.b32.xlu1 %v7112_v22, %s7350_s19  ;;  %659 = vperm.xlu0 %7257, %v633_v26  }
  0xd5   : > { %664 = vperm.xlu1 %7258, %v634_v28   ;;  %689 = vperm.xlu0 %7257, %v639_v29  }
  0xd9   : > { %694 = vperm.xlu0 %7257, %v640_v30  }
 0x103   : > { %v7099_v31 = vpop.permute.xlu0 %7098 }
 0x104   : > { %v7101_v32 = vunpack.i.h.bf16 %v7099_v31  ;;  %v7100_v33 = vunpack.i.l.bf16 %v7099_v31 }
 0x106   : > { %v378_v40 = vsel %vm377_vm3, %v7100_v33, %v7101_v32 }
 0x107   : > { %v7104_v34 = vpop.permute.xlu1 %7103  ;;  %v7109_v35 = vpop.permute.xlu0 %7108 }
 0x108   : > { %v7106_v36 = vunpack.i.h.bf16 %v7104_v34  ;;  %v7105_v37 = vunpack.i.l.bf16 %v7104_v34  ;;  %v7111_v38 = vunpack.i.h.bf16 %v7109_v35  ;;  %v7110_v39 = vunpack.i.l.bf16 %v7109_v35 }
 0x10a   : > { %v379_v41 = vsel %vm377_vm3, %v7105_v37, %v7106_v36  ;;  %v380_v49 = vsel %vm377_vm3, %v7110_v39, %v7111_v38 }
 0x10b   : > { %v7114_v42 = vpop.permute.xlu1 %7113  ;;  %v7119_v43 = vpop.permute.xlu0 %7118  ;;  %v6675_v44 = vpack.c.bf16 %v379_v41, %v378_v40 }
 0x10c   : > { %v7116_v45 = vunpack.i.h.bf16 %v7114_v42  ;;  %v7115_v46 = vunpack.i.l.bf16 %v7114_v42  ;;  %v7121_v47 = vunpack.i.h.bf16 %v7119_v43  ;;  %v7120_v48 = vunpack.i.l.bf16 %v7119_v43 }
 0x10d   : > { %6676 = vmatpush1.bf16.msra.mxu0 %v6675_v44 }
 0x10e   : > { %6677 = vmatprep.subr.bf16.mxu0 %v9377_v1  ;;  %v381_v50 = vsel %vm377_vm3, %v7115_v46, %v7116_v45  ;;  %v403_v58 = vsel %vm402_vm4, %v7120_v48, %v7121_v47 }
 0x10f   : > { %v7124_v51 = vpop.permute.xlu1 %7123  ;;  %v7129_v52 = vpop.permute.xlu0 %7128  ;;  %v6678_v53 = vpack.c.bf16 %v381_v50, %v380_v49 }
 0x110   : > { %v7126_v54 = vunpack.i.h.bf16 %v7124_v51  ;;  %v7125_v55 = vunpack.i.l.bf16 %v7124_v51  ;;  %v7131_v56 = vunpack.i.h.bf16 %v7129_v52  ;;  %v7130_v57 = vunpack.i.l.bf16 %v7129_v52 }
 0x111   : > { %6679 = vmatpush1.bf16.msra.mxu0 %v6678_v53 }
 0x112   : > { %6680 = vmatprep.subr.bf16.mxu0 %v9377_v1  ;;  %v404_v59 = vsel %vm402_vm4, %v7125_v55, %v7126_v54  ;;  %v405_v5 = vsel %vm402_vm4, %v7130_v57, %v7131_v56 }
 0x113   : > { %v7134_v60 = vpop.permute.xlu1 %7133  ;;  %v7139_v61 = vpop.permute.xlu0 %7138  ;;  %v6681_v62 = vpack.c.bf16 %v404_v59, %v403_v58 }
 0x114   : > { %v7136_v63 = vunpack.i.h.bf16 %v7134_v60  ;;  %v7135_v2 = vunpack.i.l.bf16 %v7134_v60  ;;  %v7141_v3 = vunpack.i.h.bf16 %v7139_v61  ;;  %v7140_v4 = vunpack.i.l.bf16 %v7139_v61 }
 0x115   : > { %6682 = vmatpush1.bf16.msra.mxu0 %v6681_v62 }
 0x116   : > { %6683 = vmatprep.subr.bf16.mxu0 %v9377_v1  ;;  %v406_v6 = vsel %vm402_vm4, %v7135_v2, %v7136_v63  ;;  %v428_v14 = vsel %vm427_vm5, %v7140_v4, %v7141_v3 }
 0x117   : > { %v7144_v7 = vpop.permute.xlu1 %7143  ;;  %v7149_v8 = vpop.permute.xlu0 %7148  ;;  %v6684_v9 = vpack.c.bf16 %v406_v6, %v405_v5 }
 0x118   : > { %v7146_v10 = vunpack.i.h.bf16 %v7144_v7  ;;  %v7145_v11 = vunpack.i.l.bf16 %v7144_v7  ;;  %v7151_v12 = vunpack.i.h.bf16 %v7149_v8  ;;  %v7150_v13 = vunpack.i.l.bf16 %v7149_v8 }
 0x119   : > { %6685 = vmatpush1.bf16.msra.mxu0 %v6684_v9 }
 0x11a   : > { %6686 = vmatprep.subr.bf16.mxu0 %v9377_v1  ;;  %v429_v15 = vsel %vm427_vm5, %v7145_v11, %v7146_v10  ;;  %v430_v23 = vsel %vm427_vm5, %v7150_v13, %v7151_v12 }
 0x11b   : > { %v7154_v16 = vpop.permute.xlu1 %7153  ;;  %v7159_v17 = vpop.permute.xlu0 %7158  ;;  %v6687_v18 = vpack.c.bf16 %v429_v15, %v428_v14 }
 0x11c   : > { %v7156_v19 = vunpack.i.h.bf16 %v7154_v16  ;;  %v7155_v20 = vunpack.i.l.bf16 %v7154_v16  ;;  %v7161_v21 = vunpack.i.h.bf16 %v7159_v17  ;;  %v7160_v22 = vunpack.i.l.bf16 %v7159_v17 }
 0x11d   : > { %6688 = vmatpush1.bf16.msra.mxu0 %v6687_v18 }
 0x11e   : > { %6689 = vmatprep.subr.bf16.mxu0 %v9377_v1  ;;  %v431_v24 = vsel %vm427_vm5, %v7155_v20, %v7156_v19  ;;  %v453_v32 = vsel %vm452_vm6, %v7160_v22, %v7161_v21 }
 0x11f   : > { %v7164_v25 = vpop.permute.xlu1 %7163  ;;  %v7169_v26 = vpop.permute.xlu0 %7168  ;;  %v6690_v27 = vpack.c.bf16 %v431_v24, %v430_v23 }
 0x120   : > { %v7166_v28 = vunpack.i.h.bf16 %v7164_v25  ;;  %v7165_v29 = vunpack.i.l.bf16 %v7164_v25  ;;  %v7171_v30 = vunpack.i.h.bf16 %v7169_v26  ;;  %v7170_v31 = vunpack.i.l.bf16 %v7169_v26 }
 0x121   : > { %6691 = vmatpush1.bf16.msra.mxu0 %v6690_v27 }
 0x122   : > { %6692 = vmatprep.subr.bf16.mxu0 %v9377_v1  ;;  %v454_v33 = vsel %vm452_vm6, %v7165_v29, %v7166_v28  ;;  %v455_v41 = vsel %vm452_vm6, %v7170_v31, %v7171_v30 }
 0x123   : > { %v7174_v34 = vpop.permute.xlu1 %7173  ;;  %v7179_v35 = vpop.permute.xlu0 %7178  ;;  %v6693_v36 = vpack.c.bf16 %v454_v33, %v453_v32 }
 0x124   : > { %v7176_v37 = vunpack.i.h.bf16 %v7174_v34  ;;  %v7175_v38 = vunpack.i.l.bf16 %v7174_v34  ;;  %v7181_v39 = vunpack.i.h.bf16 %v7179_v35  ;;  %v7180_v40 = vunpack.i.l.bf16 %v7179_v35 }
 0x125   : > { %6694 = vmatpush1.bf16.msra.mxu0 %v6693_v36 }
 0x126   : > { %6695 = vmatprep.subr.bf16.mxu0 %v9377_v1  ;;  %v456_v42 = vsel %vm452_vm6, %v7175_v38, %v7176_v37  ;;  %v478_v50 = vsel %vm477_vm7, %v7180_v40, %v7181_v39 }
 0x127   : > { %v7184_v43 = vpop.permute.xlu1 %7183  ;;  %v7189_v44 = vpop.permute.xlu0 %7188  ;;  %v6696_v45 = vpack.c.bf16 %v456_v42, %v455_v41 }
 0x128   : > { %v7186_v46 = vunpack.i.h.bf16 %v7184_v43  ;;  %v7185_v47 = vunpack.i.l.bf16 %v7184_v43  ;;  %v7191_v48 = vunpack.i.h.bf16 %v7189_v44  ;;  %v7190_v49 = vunpack.i.l.bf16 %v7189_v44 }
 0x129   : > { %6697 = vmatpush1.bf16.msra.mxu0 %v6696_v45 }
 0x12a   : > { %6698 = vmatprep.subr.bf16.mxu0 %v9377_v1  ;;  %v479_v51 = vsel %vm477_vm7, %v7185_v47, %v7186_v46  ;;  %v480_v59 = vsel %vm477_vm7, %v7190_v49, %v7191_v48  ;;  %v561_v48 = vld [vmem:[%s9370_s5] sm:$0xff] }
 0x12b   : > { %v7194_v52 = vpop.permute.xlu1 %7193  ;;  %v7199_v53 = vpop.permute.xlu0 %7198  ;;  %v6699_v54 = vpack.c.bf16 %v479_v51, %v478_v50  ;;  %v565_v51 = vld [vmem:[%s9370_s5 + $0x20] sm:$0xff] }
 0x12c   : > { %v7196_v55 = vunpack.i.h.bf16 %v7194_v52  ;;  %v7195_v56 = vunpack.i.l.bf16 %v7194_v52  ;;  %v7201_v57 = vunpack.i.h.bf16 %v7199_v53  ;;  %v7200_v58 = vunpack.i.l.bf16 %v7199_v53  ;;  %v564_v53 = vld [vmem:[%s9370_s5 + $0x18] sm:$0xff] }
 0x12d   : > { %6700 = vmatpush1.bf16.msra.mxu0 %v6699_v54  ;;  %v566_v54 = vld [vmem:[%s9370_s5 + $0x28] sm:$0xff] }
 0x12e   : > { %6701 = vmatprep.subr.bf16.mxu0 %v9377_v1  ;;  %v481_v60 = vsel %vm477_vm7, %v7195_v56, %v7196_v55  ;;  %v503_v6 = vsel %vm502_vm8, %v7200_v58, %v7201_v57  ;;  %v568_v55 = vld [vmem:[%s9370_s5 + $0x38] sm:$0xff]  ;;  %v569_v56 = vld [vmem:[%s9370_s5 + $0x40] sm:$0xff]  ;;  %v567_v57 = vld [vmem:[%s9370_s5 + $0x30] sm:$0xff] }
 0x12f   : > { %v7204_v61 = vpop.permute.xlu1 %7203  ;;  %v7209_v62 = vpop.permute.xlu0 %7208  ;;  %v6702_v63 = vpack.c.bf16 %v481_v60, %v480_v59  ;;  %v571_v58 = vld [vmem:[%s9370_s5 + $0x50] sm:$0xff]  ;;  %v572_v59 = vld [vmem:[%s9370_s5 + $0x58] sm:$0xff] }
 0x130   : > { %v7206_v2 = vunpack.i.h.bf16 %v7204_v61  ;;  %v7205_v3 = vunpack.i.l.bf16 %v7204_v61  ;;  %v7211_v4 = vunpack.i.h.bf16 %v7209_v62  ;;  %v7210_v5 = vunpack.i.l.bf16 %v7209_v62  ;;  %v575_v60 = vld [vmem:[%s9370_s5 + $0x70] sm:$0xff]  ;;  %v570_v61 = vld [vmem:[%s9370_s5 + $0x48] sm:$0xff] }
 0x131   : > { %6703 = vmatpush1.bf16.msra.mxu0 %v6702_v63  ;;  %v574_v62 = vld [vmem:[%s9370_s5 + $0x68] sm:$0xff] }
 0x132   : > { %6704 = vmatprep.subr.bf16.mxu0 %v9377_v1  ;;  %v504_v7 = vsel %vm502_vm8, %v7205_v3, %v7206_v2  ;;  %v505_v15 = vsel %vm502_vm8, %v7210_v5, %v7211_v4  ;;  %v578_v63 = vld [vmem:[%s9370_s5 + $0x88] sm:$0xff]  ;;  %v581_v2 = vld [vmem:[%s9370_s5 + $0xa0] sm:$0xff]  ;;  %v584_v5 = vld [vmem:[%s9370_s5 + $0xb8] sm:$0xff] }
 0x133   : > { %v7214_v8 = vpop.permute.xlu1 %7213  ;;  %v7219_v9 = vpop.permute.xlu0 %7218  ;;  %v6705_v10 = vpack.c.bf16 %v504_v7, %v503_v6  ;;  %v573_v3 = vld [vmem:[%s9370_s5 + $0x60] sm:$0xff]  ;;  %v576_v6 = vld [vmem:[%s9370_s5 + $0x78] sm:$0xff] }
 0x134   : > { %v7216_v11 = vunpack.i.h.bf16 %v7214_v8  ;;  %v7215_v12 = vunpack.i.l.bf16 %v7214_v8  ;;  %v7221_v13 = vunpack.i.h.bf16 %v7219_v9  ;;  %v7220_v14 = vunpack.i.l.bf16 %v7219_v9  ;;  %v577_v4 = vld [vmem:[%s9370_s5 + $0x80] sm:$0xff]  ;;  %v580_v7 = vld [vmem:[%s9370_s5 + $0x98] sm:$0xff]  ;;  %v579_v8 = vld [vmem:[%s9370_s5 + $0x90] sm:$0xff] }
 0x135   : > { %6706 = vmatpush1.bf16.msra.mxu0 %v6705_v10  ;;  %v583_v9 = vld [vmem:[%s9370_s5 + $0xb0] sm:$0xff]  ;;  %v582_v10 = vld [vmem:[%s9370_s5 + $0xa8] sm:$0xff] }
 0x136   : > { %6707 = vmatprep.subr.bf16.mxu0 %v9377_v1  ;;  %v506_v16 = vsel %vm502_vm8, %v7215_v12, %v7216_v11  ;;  %v528_v24 = vsel %vm527_vm9, %v7220_v14, %v7221_v13  ;;  %v586_v11 = vld [vmem:[%s9370_s5 + $0xc8] sm:$0xff]  ;;  %v585_v12 = vld [vmem:[%s9370_s5 + $0xc0] sm:$0xff]  ;;  %v587_v13 = vld [vmem:[%s9370_s5 + $0xd0] sm:$0xff] }
 0x137   : > { %v7224_v17 = vpop.permute.xlu1 %7223  ;;  %v7229_v18 = vpop.permute.xlu0 %7228  ;;  %v6708_v19 = vpack.c.bf16 %v506_v16, %v505_v15  ;;  %v590_v14 = vld [vmem:[%s9370_s5 + $0xe8] sm:$0xff]  ;;  %v589_v15 = vld [vmem:[%s9370_s5 + $0xe0] sm:$0xff]  ;;  %v588_v16 = vld [vmem:[%s9370_s5 + $0xd8] sm:$0xff] }
 0x138   : > { %v7226_v20 = vunpack.i.h.bf16 %v7224_v17  ;;  %v7225_v21 = vunpack.i.l.bf16 %v7224_v17  ;;  %v7231_v22 = vunpack.i.h.bf16 %v7229_v18  ;;  %v7230_v23 = vunpack.i.l.bf16 %v7229_v18  ;;  %v593_v17 = vld [vmem:[%s9370_s5 + $0x100] sm:$0xff]  ;;  %v596_v18 = vld [vmem:[%s9370_s5 + $0x118] sm:$0xff] }
 0x139   : > { %6709 = vmatpush1.bf16.msra.mxu0 %v6708_v19  ;;  %v599_v19 = vld [vmem:[%s9370_s5 + $0x130] sm:$0xff] }
 0x13a   : > { %6710 = vmatprep.subr.bf16.mxu0 %v9377_v1  ;;  %v529_v25 = vsel %vm527_vm9, %v7225_v21, %v7226_v20  ;;  %v553_v33 = vsel %vm552_vm10, %v7230_v23, %v7231_v22  ;;  %v602_v20 = vld [vmem:[%s9370_s5 + $0x148] sm:$0xff]  ;;  %v605_v21 = vld [vmem:[%s9370_s5 + $0x160] sm:$0xff]  ;;  %v608_v22 = vld [vmem:[%s9370_s5 + $0x178] sm:$0xff] }
 0x13b   : > { %v7234_v26 = vpop.permute.xlu1 %7233  ;;  %v7239_v27 = vpop.permute.xlu0 %7238  ;;  %v6711_v28 = vpack.c.bf16 %v529_v25, %v528_v24  ;;  %v611_v23 = vld [vmem:[%s9370_s5 + $0x190] sm:$0xff]  ;;  %v614_v24 = vld [vmem:[%s9370_s5 + $0x1a8] sm:$0xff]  ;;  %v617_v25 = vld [vmem:[%s9370_s5 + $0x1c0] sm:$0xff] }
 0x13c   : > { %v7236_v29 = vunpack.i.h.bf16 %v7234_v26  ;;  %v7235_v30 = vunpack.i.l.bf16 %v7234_v26  ;;  %v7241_v31 = vunpack.i.h.bf16 %v7239_v27  ;;  %v7240_v32 = vunpack.i.l.bf16 %v7239_v27  ;;  %v620_v26 = vld [vmem:[%s9370_s5 + $0x1d8] sm:$0xff] }
 0x13d   : > { %6712 = vmatpush1.bf16.msra.mxu0 %v6711_v28 }
 0x13e   : > { %v554_v34 = vsel %vm552_vm10, %v7235_v30, %v7236_v29  ;;  %6713 = vmatprep.subr.bf16.mxu0 %v9377_v1  ;;  %v530_v42 = vsel %vm527_vm9, %v7240_v32, %v7241_v31  ;;  %v623_v31 = vld [vmem:[%s9370_s5 + $0x1f0] sm:$0xff]  ;;  %v626_v32 = vld [vmem:[%s9370_s5 + $0x208] sm:$0xff] }
 0x13f   : > { %v7244_v35 = vpop.permute.xlu1 %7243  ;;  %v7249_v36 = vpop.permute.xlu0 %7248  ;;  %v6716_v37 = vpack.c.bf16 %v554_v34, %v553_v33 }
 0x140   : > { %v7246_v38 = vunpack.i.h.bf16 %v7244_v35  ;;  %v7245_v39 = vunpack.i.l.bf16 %v7244_v35  ;;  %v7251_v40 = vunpack.i.h.bf16 %v7249_v36  ;;  %v7250_v41 = vunpack.i.l.bf16 %v7249_v36 }
 0x141   : > { %6717 = vmatprep.subr.bf16.mxu1 %v6716_v37 }
 0x142   : > { %6719 = vmatpush3.bf16.msra.mxu1 %v6716_v37  ;;  %v531_v43 = vsel %vm527_vm9, %v7245_v39, %v7246_v38  ;;  %v555_v49 = vsel %vm552_vm10, %v7250_v41, %v7251_v40  ;;  %v629_v39 = vld [vmem:[%s9370_s5 + $0x220] sm:$0xff]  ;;  %v632_v40 = vld [vmem:[%s9370_s5 + $0x238] sm:$0xff] }
 0x143   : > { %v7254_v44 = vpop.permute.xlu1 %7253  ;;  %v6714_v45 = vpack.c.bf16 %v531_v43, %v530_v42 }
 0x144   : > { %v7256_v46 = vunpack.i.h.bf16 %v7254_v44  ;;  %v7255_v47 = vunpack.i.l.bf16 %v7254_v44 }
 0x145   : > { %6715 = vmatpush1.bf16.msra.mxu0 %v6714_v45 }
 0x146   : > { %v556_v50 = vsel %vm552_vm10, %v7255_v47, %v7256_v46  ;;  %6796 = vmatprep.subr.bf16.mxu0 %v9377_v1 }
 0x147   : > { %v6720_v52 = vpack.c.bf16 %v556_v50, %v555_v49 }
 0x148   : > { %914 = vmatmul.mubr.f32.vlgmr.msra.gmra.mrb[0].mxu0 %v561_v48 }
 0x149   : > { %6721 = vmatprep.subr.bf16.mxu1 %v6720_v52  ;;  %918 = vmatprep.mubr.f32.mxu0 %v565_v51 }
 0x14a   : > { %6723 = vmatpush3.bf16.msra.mxu1 %v6720_v52 }
 0x14c   : > { %919 = vmatmul.mubr.f32.gmra.mrb[2].mxu0 %v564_v53 }
 0x14d   : > { %5863 = vmatmul.mubr.msk.f32.vlgmr.msra.gmra.mrb[0].mxu1 %vm306_vm0, %v566_v54  ;;  %923 = vmatprep.mubr.f32.mxu0 %v568_v55 }
 0x14e   : > { %5865 = vmatprep.mubr.msk.f32.mxu1 %vm306_vm0, %v569_v56 }
 0x150   : > { %924 = vmatmul.mubr.f32.gmra.mrb[4].mxu0 %v567_v57  ;;  %v660_v29 = vpop.permute.xlu0 %659 }
 0x151   : > { %928 = vmatprep.mubr.f32.mxu0 %v571_v58  ;;  %5866 = vmatmul.mubr.msk.f32.gmra.mrb[2].mxu1 %vm306_vm0, %v572_v59 }
 0x152   : > { %5868 = vmatprep.mubr.msk.f32.mxu1 %vm306_vm0, %v575_v60 }
 0x154   : > { %929 = vmatmul.mubr.f32.gmra.mrb[6].mxu0 %v570_v61  ;;  %v665_v30 = vpop.permute.xlu1 %664  ;;  %v690_v57 = vpop.permute.xlu0 %689 }
 0x155   : > { %933 = vmatprep.mubr.f32.mxu0 %v574_v62  ;;  %5869 = vmatmul.mubr.msk.f32.gmra.mrb[4].mxu1 %vm306_vm0, %v578_v63 }
 0x156   : > { %5871 = vmatprep.mubr.msk.f32.mxu1 %vm306_vm0, %v581_v2 }
 0x158   : > { %934 = vmatmul.mubr.f32.gmra.mrb[8].mxu0 %v573_v3  ;;  %v695_v62 = vpop.permute.xlu0 %694 }
 0x159   : > { %938 = vmatprep.mubr.f32.mxu0 %v577_v4  ;;  %5872 = vmatmul.mubr.msk.f32.gmra.mrb[6].mxu1 %vm306_vm0, %v584_v5  ;;  %v635_v5 = vld [vmem:[%s9371_s6 + $0x10] sm:$0xff] }
 0x15a   : > { %5874 = vmatprep.mubr.msk.f32.mxu1 %vm306_vm0, %v587_v13 }
 0x15c   : > { %939 = vmatmul.mubr.f32.gmra.mrb[10].mxu0 %v576_v6  ;;  %v636_v6 = vld [vmem:[%s9371_s6 + $0x18] sm:$0xff] }
 0x15d   : > { %943 = vmatprep.mubr.f32.mxu0 %v580_v7  ;;  %5875 = vmatmul.mubr.msk.f32.gmra.mrb[8].mxu1 %vm306_vm0, %v590_v14  ;;  %v641_v7 = vld [vmem:[%s9371_s6 + $0x40] sm:$0xff] }
 0x15e   : > { %5877 = vmatprep.mubr.msk.f32.mxu1 %vm306_vm0, %v593_v17  ;;  %v591_v17 = vld [vmem:[%s9370_s5 + $0xf0] sm:$0xff] }
 0x160   : > { %944 = vmatmul.mubr.f32.gmra.mrb[12].mxu0 %v579_v8 }
 0x161   : > { %948 = vmatprep.mubr.f32.mxu0 %v583_v9  ;;  %5878 = vmatmul.mubr.msk.f32.gmra.mrb[10].mxu1 %vm306_vm0, %v596_v18  ;;  %v595_v18 = vld [vmem:[%s9370_s5 + $0x110] sm:$0xff] }
 0x162   : > { %5880 = vmatprep.mubr.msk.f32.mxu1 %vm306_vm0, %v599_v19 }
 0x164   : > { %949 = vmatmul.mubr.f32.gmra.mrb[14].mxu0 %v582_v10 }
 0x165   : > { %953 = vmatprep.mubr.f32.mxu0 %v586_v11  ;;  %5881 = vmatmul.mubr.msk.f32.gmra.mrb[12].mxu1 %vm306_vm0, %v602_v20  ;;  %v642_v11 = vld [vmem:[%s9371_s6 + $0x48] sm:$0xff] }
 0x166   : > { %5883 = vmatprep.mubr.msk.f32.mxu1 %vm306_vm0, %v605_v21  ;;  %v594_v20 = vld [vmem:[%s9370_s5 + $0x108] sm:$0xff] }
 0x168   : > { %954 = vmatmul.mubr.f32.gmra.mrb[16].mxu0 %v585_v12 }
 0x169   : > { %958 = vmatprep.mubr.f32.mxu0 %v589_v15  ;;  %5884 = vmatmul.mubr.msk.f32.gmra.mrb[14].mxu1 %vm306_vm0, %v608_v22 }
 0x16a   : > { %5886 = vmatprep.mubr.msk.f32.mxu1 %vm306_vm0, %v611_v23 }
 0x16c   : > { %959 = vmatmul.mubr.f32.gmra.mrb[18].mxu0 %v588_v16  ;;  %v592_v16 = vld [vmem:[%s9370_s5 + $0xf8] sm:$0xff] }
 0x16d   : > { %5887 = vmatmul.mubr.msk.f32.gmra.mrb[16].mxu1 %vm306_vm0, %v614_v24  ;;  %963 = vmatprep.mubr.f32.mxu0 %v592_v16 }
 0x16e   : > { %5889 = vmatprep.mubr.msk.f32.mxu1 %vm306_vm0, %v617_v25 }
 0x170   : > { %964 = vmatmul.mubr.f32.gmra.mrb[20].mxu0 %v591_v17 }
 0x171   : > { %5890 = vmatmul.mubr.msk.f32.gmra.mrb[18].mxu1 %vm306_vm0, %v620_v26  ;;  %968 = vmatprep.mubr.f32.mxu0 %v595_v18 }
 0x172   : > { %5892 = vmatprep.mubr.msk.f32.mxu1 %vm306_vm0, %v623_v31 }
 0x174   : > { %969 = vmatmul.mubr.f32.gmra.mrb[22].mxu0 %v594_v20 }
 0x175   : > { %5893 = vmatmul.mubr.msk.f32.gmra.mrb[20].mxu1 %vm306_vm0, %v626_v32 }
 0x176   : > { %5895 = vmatprep.mubr.msk.f32.mxu1 %vm306_vm0, %v629_v39 }
 0x179   : > { %5896 = vmatmul.mubr.msk.f32.gmra.mrb[22].mxu1 %vm306_vm0, %v632_v40 }
 0x21b   : > { %v915_v27 = vpop.f32.mrb[0].mxu0 }
 0x21c   : > { %v917_v28 = vpop.f32.mrb[1].mxu0  ;;  %v916_v33 = vadd.f32 %v915_v27, %v660_v29 }
 0x21f   : > { %v920_v34 = vpop.f32.mrb[2].mxu0 }
 0x220   : > { %v921_v35 = vadd.f32 %v920_v34, %v665_v30  ;;  %v5864_v36 = vpop.f32.mrb[0].mxu1  ;;  %v922_v37 = vpop.f32.mrb[3].mxu0 }
 0x221   : > { %v1100_v38 = vpop.f32.mrb[1].mxu1 }
 0x222   : > { %v1106_v41 = vadd.f32 %v5864_v36, %v921_v35  ;;  %v1101_v42 = vadd.f32 %v1100_v38, %v916_v33 }
 0x223   : > { %v7646_v43 = vpop.f32.mrb[4].mxu0 }
 0x224   : > { %5898 = vmatprep.subr.mxu1 %v1106_v41  ;;  %1252 = vxpose.xlu1.b32.start.end [1/1] (short) %v1101_v42, 128  ;;  %v927_v44 = vpop.f32.mrb[5].mxu0  ;;  %v7649_v45 = vpop.f32.mrb[2].mxu1 }
 0x225   : > { %5899 = vmatpush3.msra.mxu1 %v1106_v41  ;;  %v7651_v46 = vpop.f32.mrb[3].mxu1 }
 0x226   : > { %6724 = vmatprep.subr.bf16.mxu1 %v9377_v1 }
 0x227   : > { %v7654_v47 = vpop.f32.mrb[6].mxu0 }
 0x228   : > { %v932_v48 = vpop.f32.mrb[7].mxu0  ;;  %v7656_v49 = vpop.f32.mrb[4].mxu1 }
 0x229   : > { %v7658_v50 = vpop.f32.mrb[5].mxu1 }
 0x22b   : > { %v7660_v51 = vpop.f32.mrb[8].mxu0 }
 0x22c   : > { %v937_v52 = vpop.f32.mrb[9].mxu0  ;;  %v5873_v53 = vpop.f32.mrb[6].mxu1 }
 0x22d   : > { %v1130_v54 = vpop.f32.mrb[7].mxu1 }
 0x22f   : > { %v7662_v55 = vpop.f32.mrb[10].mxu0 }
 0x230   : > { %v942_v56 = vpop.f32.mrb[11].mxu0  ;;  %v7677_v10 = vpop.f32.mrb[8].mxu1 }
 0x231   : > { %v7682_v12 = vpop.f32.mrb[9].mxu1 }
 0x233   : > { %v945_v58 = vpop.f32.mrb[12].mxu0 }
 0x234   : > { %v946_v59 = vadd.f32 %v945_v58, %v690_v57  ;;  %v947_v60 = vpop.f32.mrb[13].mxu0  ;;  %v7725_v40 = vpop.f32.mrb[10].mxu1 }
 0x235   : > { %v7727_v41 = vpop.f32.mrb[11].mxu1 }
 0x236   : > { %v1131_v61 = vadd.f32 %v1130_v54, %v946_v59 }
 0x237   : > { %v950_v63 = vpop.f32.mrb[14].mxu0 }
 0x238   : > { %v951_v2 = vadd.f32 %v950_v63, %v695_v62  ;;  %1634 = vxpose.xlu0.b32.start.end [1/1] (short) %v1131_v61, 128  ;;  %v952_v3 = vpop.f32.mrb[15].mxu0  ;;  %v7729_v42 = vpop.f32.mrb[12].mxu1 }
 0x239   : > { %v7734_v52 = vpop.f32.mrb[13].mxu1 }
 0x23a   : > { %v7664_v4 = vadd.f32 %v5873_v53, %v951_v2 }
 0x23b   : > { %v7675_v8 = vpop.f32.mrb[16].mxu0 }
 0x23c   : > { %v957_v9 = vpop.f32.mrb[17].mxu0  ;;  %v7736_v53 = vpop.f32.mrb[14].mxu1 }
 0x23d   : > { %v7738_v54 = vpop.f32.mrb[15].mxu1 }
 0x23f   : > { %v7684_v13 = vpop.f32.mrb[18].mxu0 }
 0x240   : > { %v962_v15 = vpop.f32.mrb[19].mxu0  ;;  %v7740_v56 = vpop.f32.mrb[16].mxu1 }
 0x241   : > { %v7742_v57 = vpop.f32.mrb[17].mxu1 }
 0x244   : > { %v7746_v59 = vpop.f32.mrb[18].mxu1 }
 0x245   : > { %v7748_v60 = vpop.f32.mrb[19].mxu1 }
 0x248   : > { %v7754_v63 = vpop.f32.mrb[20].mxu1 }
 0x249   : > { %v7756_v2 = vpop.f32.mrb[21].mxu1 }
 0x24c   : > { %v7758_v3 = vpop.f32.mrb[22].mxu1 }
 0x27e   : > { %669 = vperm.xlu1 %7258, %v635_v5   ;;  %v7760_v5 = vpop.f32.mrb[23].mxu1 }
 0x29d   : > { %674 = vperm.xlu0 %7257, %v636_v6  }
 0x2a1   : > { %699 = vperm.xlu0 %7257, %v641_v7  }
 0x2a4   : > { %v1268_v14 = vpop.trf.xlu1 }
 0x2a5   : > { %704 = vperm.xlu0 %7257, %v642_v11   ;;  %5900 = vmatprep.mubr.msk.f32.mxu1 %vm1284_vm11, %v1268_v14 }
 0x2a8   : > { %v1269_v19 = vpop.trf.xlu1 }
 0x2a9   : > { %5901 = vmatmul.mubr.msk.f32.vlgmr.msra.gmra.mrb[24].mxu1 %vm1284_vm11, %v1269_v19 }
 0x2ac   : > { %v1270_v21 = vpop.trf.xlu1 }
 0x2ad   : > { %5903 = vmatprep.mubr.msk.f32.mxu1 %vm1284_vm11, %v1270_v21 }
 0x2b0   : > { %v1271_v22 = vpop.trf.xlu1 }
 0x2b1   : > { %5904 = vmatmul.mubr.msk.f32.gmra.mrb[26].mxu1 %vm1284_vm11, %v1271_v22 }
 0x2b4   : > { %v1272_v23 = vpop.trf.xlu1 }
 0x2b5   : > { %5906 = vmatprep.mubr.msk.f32.mxu1 %vm1284_vm11, %v1272_v23 }
 0x2b8   : > { %v1273_v24 = vpop.trf.xlu1  ;;  %v7704_v26 = vpop.trf.xlu0 }
 0x2b9   : > { %5907 = vmatmul.mubr.msk.f32.gmra.mrb[28].mxu1 %vm1284_vm11, %v1273_v24 }
 0x2bc   : > { %v1274_v25 = vpop.trf.xlu1  ;;  %v7708_v28 = vpop.trf.xlu0 }
 0x2bd   : > { %5909 = vmatprep.mubr.msk.f32.mxu1 %vm1284_vm11, %v1274_v25 }
 0x2c0   : > { %v1275_v27 = vpop.trf.xlu1  ;;  %v7711_v31 = vpop.trf.xlu0 }
 0x2c1   : > { %5910 = vmatmul.mubr.msk.f32.gmra.mrb[30].mxu1 %vm1284_vm11, %v1275_v27  ;;  %v7821_v27 = vld [vmem:[%s9366_s1 + $0x20] sm:$0xff] }
 0x2c2   : > { %9449 = vst [vmem:[#allocation10_spill] sm:$0xff] %v7821_v27 }
 0x2c4   : > { %v1276_v29 = vpop.trf.xlu1  ;;  %v7715_v33 = vpop.trf.xlu0 }
 0x2c5   : > { %5912 = vmatprep.mubr.msk.f32.mxu1 %vm1284_vm11, %v1276_v29  ;;  %v7826_v29 = vld [vmem:[%s9366_s1 + $0x28] sm:$0xff] }
 0x2c6   : > { %9450 = vst [vmem:[#allocation11_spill] sm:$0xff] %v7826_v29 }
 0x2c8   : > { %v1277_v30 = vpop.trf.xlu1  ;;  %v7718_v36 = vpop.trf.xlu0 }
 0x2c9   : > { %5913 = vmatmul.mubr.msk.f32.gmra.mrb[32].mxu1 %vm1284_vm11, %v1277_v30  ;;  %v7832_v30 = vpack.c.bf16 %v7826_v29, %v7821_v27 }
 0x2cc   : > { %v1278_v32 = vpop.trf.xlu1  ;;  %v7722_v38 = vpop.trf.xlu0 }
 0x2cd   : > { %5915 = vmatprep.mubr.msk.f32.mxu1 %vm1284_vm11, %v1278_v32  ;;  %v7837_v32 = vld [vmem:[%s9366_s1 + $0x30] sm:$0xff] }
 0x2ce   : > { %9451 = vst [vmem:[#allocation12_spill] sm:$0xff] %v7837_v32 }
 0x2d0   : > { %v1279_v34 = vpop.trf.xlu1  ;;  %v7731_v48 = vpop.trf.xlu0 }
 0x2d1   : > { %5916 = vmatmul.mubr.msk.f32.gmra.mrb[34].mxu1 %vm1284_vm11, %v1279_v34  ;;  %v7842_v34 = vld [vmem:[%s9366_s1 + $0x38] sm:$0xff] }
 0x2d2   : > { %9452 = vst [vmem:[#allocation13_spill] sm:$0xff] %v7842_v34 }
 0x2d4   : > { %v1280_v35 = vpop.trf.xlu1  ;;  %v7744_v58 = vpop.trf.xlu0 }
 0x2d5   : > { %5918 = vmatprep.mubr.msk.f32.mxu1 %vm1284_vm11, %v1280_v35  ;;  %v7848_v35 = vpack.c.bf16 %v7842_v34, %v7837_v32  ;;  %v8025_v32 = vld [vmem:[%s9368_s3 + $0x28] sm:$0xff] }
 0x2d8   : > { %v1281_v37 = vpop.trf.xlu1  ;;  %v7750_v61 = vpop.trf.xlu0 }
 0x2d9   : > { %5919 = vmatmul.mubr.msk.f32.gmra.mrb[36].mxu1 %vm1284_vm11, %v1281_v37  ;;  %v7853_v37 = vld [vmem:[%s9366_s1 + $0x40] sm:$0xff] }
 0x2da   : > { %9453 = vst [vmem:[#allocation14_spill] sm:$0xff] %v7853_v37 }
 0x2dc   : > { %v1282_v39 = vpop.trf.xlu1  ;;  %v7752_v62 = vpop.trf.xlu0 }
 0x2dd   : > { %5921 = vmatprep.mubr.msk.f32.mxu1 %vm1284_vm11, %v1282_v39  ;;  %v7858_v39 = vld [vmem:[%s9366_s1 + $0x48] sm:$0xff] }
 0x2de   : > { %9454 = vst [vmem:[#allocation15_spill] sm:$0xff] %v7858_v39 }
 0x2e0   : > { %v1283_v44 = vpop.trf.xlu1  ;;  %v7762_v6 = vpop.trf.xlu0 }
 0x2e1   : > { %5922 = vmatmul.mubr.msk.f32.gmra.mrb[38].mxu1 %vm1284_vm11, %v1283_v44  ;;  %v7864_v44 = vpack.c.bf16 %v7858_v39, %v7853_v37  ;;  %v8005_v37 = vld [vmem:[%s9368_s3 + $0x18] sm:$0xff] }
 0x2e2   : > { %5956 = vmatprep.mubr.msk.f32.mxu1 %vm7352_vm12, %v9374_v0  ;;  %v637_v0 = vld [vmem:[%s9371_s6 + $0x20] sm:$0xff] }
 0x2e3   : > { %9455 = vst [vmem:[#allocation16_spill] sm:$0xff] %v7864_v44 }
 0x2e4   : > { %v7765_v11 = vpop.trf.xlu0 }
 0x2e8   : > { %v7768_v15 = vpop.trf.xlu0 }
 0x2ec   : > { %v7770_v16 = vpop.trf.xlu0 }
 0x2f0   : > { %v7772_v17 = vpop.trf.xlu0 }
 0x2f4   : > { %v7774_v18 = vpop.trf.xlu0 }
 0x2fd   : > { %v670_v7 = vpop.permute.xlu1 %669 }
 0x2fe   : > { %v926_v9 = vadd.f32 %v7646_v43, %v670_v7  ;;  %v7869_v7 = vld [vmem:[%s9366_s1 + $0x50] sm:$0xff] }
 0x2ff   : > { %9456 = vst [vmem:[#allocation17_spill] sm:$0xff] %v7869_v7 }
 0x300   : > { %v1111_v14 = vadd.f32 %v7651_v46, %v926_v9  ;;  %v7874_v9 = vld [vmem:[%s9366_s1 + $0x58] sm:$0xff] }
 0x301   : > { %9457 = vst [vmem:[#allocation18_spill] sm:$0xff] %v7874_v9 }
 0x302   : > { %2474 = vxpose.xlu1.b32.start.end [1/1] (short) %v1111_v14, 128  ;;  %v598_v14 = vld [vmem:[%s9370_s5 + $0x128] sm:$0xff] }
 0x303   : > { %973 = vmatprep.mubr.f32.mxu0 %v598_v14  ;;  %v7913_v14 = vld [vmem:[%s9366_s1 + $0x70] sm:$0xff] }
 0x304   : > { %9462 = vst [vmem:[#allocation23_spill] sm:$0xff] %v7913_v14 }
 0x31c   : > { %v675_v19 = vpop.permute.xlu0 %674 }
 0x31d   : > { %v931_v20 = vadd.f32 %v7654_v47, %v675_v19  ;;  %v7796_v47 = vld [vmem:[%s9366_s1 + $0x8] sm:$0xff]  ;;  %v7883_v19 = vpack.c.bf16 %v7874_v9, %v7869_v7  ;;  %v627_v9 = vld [vmem:[%s9370_s5 + $0x210] sm:$0xff] }
 0x31e   : > { %9446 = vst [vmem:[#allocation7_spill] sm:$0xff] %v7796_v47 }
 0x31f   : > { %v7778_v21 = vadd.f32 %v7649_v45, %v931_v20  ;;  %v7791_v45 = vld [vmem:[%s9366_s1] sm:$0xff]  ;;  %9458 = vst [vmem:[#allocation19_spill] sm:$0xff] %v7883_v19 }
 0x320   : > { %v700_v43 = vpop.permute.xlu0 %699  ;;  %9445 = vst [vmem:[#allocation6_spill] sm:$0xff] %v7791_v45  ;;  %v597_v20 = vld [vmem:[%s9370_s5 + $0x120] sm:$0xff] }
 0x321   : > { %9443 = vst [vmem:[#allocation4_spill] sm:$0xff] %v7778_v21  ;;  %v956_v22 = vadd.f32 %v7675_v8, %v700_v43  ;;  %v7800_v8 = vpack.c.bf16 %v7796_v47, %v7791_v45  ;;  %974 = vmatmul.mubr.f32.gmra.mrb[24].mxu0 %v597_v20  ;;  %v7891_v43 = vld [vmem:[%s9366_s1 + $0x60] sm:$0xff]  ;;  %v7918_v20 = vld [vmem:[%s9366_s1 + $0x78] sm:$0xff] }
 0x322   : > { %9459 = vst [vmem:[#allocation20_spill] sm:$0xff] %v7891_v43  ;;  %9463 = vst [vmem:[#allocation24_spill] sm:$0xff] %v7918_v20 }
 0x323   : > { %v1141_v46 = vadd.f32 %v7682_v12, %v956_v22  ;;  %v7810_v12 = vld [vmem:[%s9366_s1 + $0x18] sm:$0xff]  ;;  %6798 = vmatpush3.bf16.msra.mxu0 %v7800_v8  ;;  %v7896_v22 = vld [vmem:[%s9366_s1 + $0x68] sm:$0xff] }
 0x324   : > { %v705_v23 = vpop.permute.xlu0 %704  ;;  %9448 = vst [vmem:[#allocation9_spill] sm:$0xff] %v7810_v12  ;;  %6799 = vmatprep.subr.bf16.mxu0 %v9377_v1  ;;  %9460 = vst [vmem:[#allocation21_spill] sm:$0xff] %v7896_v22 }
 0x325   : > { %v961_v24 = vadd.f32 %v7684_v13, %v705_v23  ;;  %2855 = vxpose.xlu0.b32.start.end [1/1] (short) %v1141_v46, 128  ;;  %v601_v46 = vld [vmem:[%s9370_s5 + $0x140] sm:$0xff]  ;;  %v7905_v23 = vpack.c.bf16 %v7896_v22, %v7891_v43  ;;  %v616_v22 = vld [vmem:[%s9370_s5 + $0x1b8] sm:$0xff] }
 0x326   : > { %978 = vmatprep.mubr.f32.mxu0 %v601_v46  ;;  %v7927_v46 = vpack.c.bf16 %v7918_v20, %v7913_v14  ;;  %v606_v20 = vld [vmem:[%s9370_s5 + $0x168] sm:$0xff] }
 0x327   : > { %v7784_v25 = vadd.f32 %v7677_v10, %v961_v24  ;;  %v7805_v10 = vld [vmem:[%s9366_s1 + $0x10] sm:$0xff]  ;;  %9461 = vst [vmem:[#allocation22_spill] sm:$0xff] %v7905_v23  ;;  %v600_v24 = vld [vmem:[%s9370_s5 + $0x138] sm:$0xff]  ;;  %v610_v14 = vld [vmem:[%s9370_s5 + $0x188] sm:$0xff] }
 0x328   : > { %9447 = vst [vmem:[#allocation8_spill] sm:$0xff] %v7805_v10  ;;  %v7816_v13 = vpack.c.bf16 %v7810_v12, %v7805_v10  ;;  %979 = vmatmul.mubr.f32.gmra.mrb[26].mxu0 %v600_v24  ;;  %9464 = vst [vmem:[#allocation25_spill] sm:$0xff] %v7927_v46  ;;  %v7932_v24 = vld [vmem:[%s9367_s2] sm:$0xff]  ;;  %v644_v12 = vld [vmem:[%s9371_s6 + $0x58] sm:$0xff] }
 0x329   : > { %9444 = vst [vmem:[#allocation5_spill] sm:$0xff] %v7784_v25  ;;  %v604_v25 = vld [vmem:[%s9370_s5 + $0x158] sm:$0xff] }
 0x32a   : > { %6801 = vmatpush3.bf16.msra.mxu0 %v7816_v13  ;;  %983 = vmatprep.mubr.f32.mxu0 %v604_v25  ;;  %v609_v25 = vld [vmem:[%s9370_s5 + $0x180] sm:$0xff] }
 0x32b   : > { %6802 = vmatprep.subr.bf16.mxu0 %v9377_v1 }
 0x32e   : > { %6804 = vmatpush3.bf16.msra.mxu0 %v7832_v30 }
 0x32f   : > { %6805 = vmatprep.subr.bf16.mxu0 %v9377_v1 }
 0x332   : > { %6807 = vmatpush3.bf16.msra.mxu0 %v7848_v35 }
 0x333   : > { %6808 = vmatprep.subr.bf16.mxu0 %v9377_v1 }
 0x336   : > { %6810 = vmatpush3.bf16.msra.mxu0 %v7864_v44 }
 0x337   : > { %6811 = vmatprep.subr.bf16.mxu0 %v9377_v1 }
 0x33a   : > { %6813 = vmatpush3.bf16.msra.mxu0 %v7883_v19 }
 0x33b   : > { %6814 = vmatprep.subr.bf16.mxu0 %v9377_v1 }
 0x33e   : > { %6816 = vmatpush3.bf16.msra.mxu0 %v7905_v23 }
 0x33f   : > { %6817 = vmatprep.subr.bf16.mxu0 %v9377_v1  ;;  %v603_v1 = vld [vmem:[%s9370_s5 + $0x150] sm:$0xff] }
 0x340   : > { %984 = vmatmul.mubr.f32.gmra.mrb[28].mxu0 %v603_v1  ;;  %v613_v1 = vld [vmem:[%s9370_s5 + $0x1a0] sm:$0xff] }
 0x342   : > { %6819 = vmatpush3.bf16.msra.mxu0 %v7927_v46 }
 0x343   : > { %6116 = vmatprep.subr.mxu0 %v7932_v24 }
 0x35c   : > { %679 = vperm.xlu1 %7258, %v637_v0   ;;  %v607_v0 = vld [vmem:[%s9370_s5 + $0x170] sm:$0xff] }
 0x35d   : > { %988 = vmatprep.mubr.f32.mxu0 %v607_v0  ;;  %v612_v0 = vld [vmem:[%s9370_s5 + $0x198] sm:$0xff] }
 0x35e   : > { %989 = vmatmul.mubr.f32.gmra.mrb[30].mxu0 %v606_v20  ;;  %v619_v20 = vld [vmem:[%s9370_s5 + $0x1d0] sm:$0xff] }
 0x35f   : > { %993 = vmatprep.mubr.f32.mxu0 %v610_v14  ;;  %v615_v14 = vld [vmem:[%s9370_s5 + $0x1b0] sm:$0xff] }
 0x362   : > { %994 = vmatmul.mubr.f32.gmra.mrb[32].mxu0 %v609_v25  ;;  %v618_v25 = vld [vmem:[%s9370_s5 + $0x1c8] sm:$0xff] }
 0x363   : > { %998 = vmatprep.mubr.f32.mxu0 %v613_v1  ;;  %v622_v1 = vld [vmem:[%s9370_s5 + $0x1e8] sm:$0xff] }
 0x366   : > { %999 = vmatmul.mubr.f32.gmra.mrb[34].mxu0 %v612_v0  ;;  %v625_v0 = vld [vmem:[%s9370_s5 + $0x200] sm:$0xff] }
 0x367   : > { %1003 = vmatprep.mubr.f32.mxu0 %v616_v22  ;;  %v621_v22 = vld [vmem:[%s9370_s5 + $0x1e0] sm:$0xff] }
 0x36a   : > { %1004 = vmatmul.mubr.f32.gmra.mrb[36].mxu0 %v615_v14  ;;  %v624_v14 = vld [vmem:[%s9370_s5 + $0x1f8] sm:$0xff] }
 0x36b   : > { %1008 = vmatprep.mubr.f32.mxu0 %v619_v20  ;;  %v7987_v20 = vld [vmem:[%s9368_s3 + $0x8] sm:$0xff] }
 0x36e   : > { %1009 = vmatmul.mubr.f32.gmra.mrb[38].mxu0 %v618_v25  ;;  %v628_v25 = vld [vmem:[%s9370_s5 + $0x218] sm:$0xff] }
 0x36f   : > { %1013 = vmatprep.mubr.f32.mxu0 %v622_v1  ;;  %v7995_v1 = vld [vmem:[%s9368_s3] sm:$0xff] }
 0x372   : > { %1014 = vmatmul.mubr.f32.gmra.mrb[40].mxu0 %v621_v22 }
 0x373   : > { %1018 = vmatprep.mubr.f32.mxu0 %v625_v0 }
 0x376   : > { %1019 = vmatmul.mubr.f32.gmra.mrb[42].mxu0 %v624_v14  ;;  %v8012_v14 = vld [vmem:[%s9368_s3 + $0x10] sm:$0xff] }
 0x377   : > { %1023 = vmatprep.mubr.f32.mxu0 %v628_v25  ;;  %v9466_v25 = vmov 0.0|0.0  }
 0x37a   : > { %1024 = vmatmul.mubr.f32.gmra.mrb[44].mxu0 %v627_v9 }
 0x37c   : > { %v5902_v22 = vpop.f32.mrb[24].mxu1 }
 0x37d   : > { %v1479_v0 = vmul.f32 %v5902_v22, %v7987_v20  ;;  %v1399_v43 = vpop.f32.mrb[25].mxu1 }
 0x37e   : > { %v1478_v7 = vmul.f32 %v1399_v43, %v7995_v1 }
 0x380   : > { %v6725_v39 = vpack.c.bf16 %v1479_v0, %v1478_v7  ;;  %v638_v0 = vld [vmem:[%s9371_s6 + $0x28] sm:$0xff] }
 0x382   : > { %6726 = vmatpush3.bf16.msra.mxu1 %v6725_v39  ;;  %v8007_v34 = vpop.trf.xlu1 }
 0x383   : > { %9465 = vst [vmem:[#allocation26_spill] sm:$0xff] %v8007_v34  ;;  %6727 = vmatprep.subr.bf16.mxu1 %v9466_v25 }
 0x384   : > { %v5905_v22 = vpop.f32.mrb[26].mxu1 }
 0x385   : > { %v1481_v43 = vmul.f32 %v5905_v22, %v8005_v37  ;;  %v1409_v7 = vpop.f32.mrb[27].mxu1  ;;  %v8032_v22 = vld [vmem:[%s9368_s3 + $0x20] sm:$0xff] }
 0x386   : > { %v1480_v39 = vmul.f32 %v1409_v7, %v8012_v14  ;;  %v8017_v9 = vpop.trf.xlu1  ;;  %9469 = vst [vmem:[#allocation29_spill] sm:$0xff] %v8032_v22  ;;  %v643_v7 = vld [vmem:[%s9371_s6 + $0x50] sm:$0xff] }
 0x387   : > { %9467 = vst [vmem:[#allocation27_spill] sm:$0xff] %v8017_v9 }
 0x388   : > { %v6728_v34 = vpack.c.bf16 %v1481_v43, %v1480_v39 }
 0x38a   : > { %684 = vperm.xlu0 %7257, %v638_v0   ;;  %6729 = vmatpush3.bf16.msra.mxu1 %v6728_v34  ;;  %v8027_v29 = vpop.trf.xlu1  ;;  %v8038_v34 = vpop.f32.mrb[20].mxu0 }
 0x38b   : > { %9468 = vst [vmem:[#allocation28_spill] sm:$0xff] %v8027_v29  ;;  %6730 = vmatprep.subr.bf16.mxu1 %v9466_v25  ;;  %v967_v9 = vpop.f32.mrb[21].mxu0 }
 0x38c   : > { %v5908_v43 = vpop.f32.mrb[28].mxu1  ;;  %v8047_v21 = vpop.f32.mrb[22].mxu0  ;;  %v8057_v9 = vld [vmem:[%s9368_s3 + $0x30] sm:$0xff] }
 0x38d   : > { %v1483_v39 = vmul.f32 %v5908_v43, %v8025_v32  ;;  %v1419_v0 = vpop.f32.mrb[29].mxu1  ;;  %v972_v47 = vpop.f32.mrb[23].mxu0  ;;  %v8052_v43 = vld [vmem:[%s9368_s3 + $0x38] sm:$0xff]  ;;  %9472 = vst [vmem:[#allocation32_spill] sm:$0xff] %v8057_v9 }
 0x38e   : > { %v1482_v29 = vmul.f32 %v1419_v0, %v8032_v22  ;;  %709 = vperm.xlu0 %7257, %v643_v7   ;;  %v8042_v27 = vpop.trf.xlu1  ;;  %9471 = vst [vmem:[#allocation31_spill] sm:$0xff] %v8052_v43  ;;  %v631_v47 = vld [vmem:[%s9370_s5 + $0x230] sm:$0xff]  ;;  %v8077_v22 = vld [vmem:[%s9368_s3 + $0x48] sm:$0xff] }
 0x38f   : > { %9470 = vst [vmem:[#allocation30_spill] sm:$0xff] %v8042_v27  ;;  %1028 = vmatprep.mubr.f32.mxu0 %v631_v47  ;;  %v9474_v27 = vmov 0.0   ;;  %9476 = vst [vmem:[#allocation35_spill] sm:$0xff] %v8077_v22 }
 0x390   : > { %v6731_v10 = vpack.c.bf16 %v1483_v39, %v1482_v29 }
 0x392   : > { %714 = vperm.xlu0 %7257, %v644_v12   ;;  %6732 = vmatpush3.bf16.msra.mxu1 %v6731_v10  ;;  %v8060_v7 = vpop.trf.xlu1  ;;  %v630_v10 = vld [vmem:[%s9370_s5 + $0x228] sm:$0xff] }
 0x393   : > { %6733 = vmatprep.subr.bf16.mxu1 %v9466_v25  ;;  %9473 = vst [vmem:[#allocation33_spill] sm:$0xff] %v8060_v7  ;;  %1029 = vmatmul.mubr.f32.gmra.mrb[46].mxu0 %v630_v10 }
 0x394   : > { %v5911_v29 = vpop.f32.mrb[30].mxu1  ;;  %6087 = vmatprep.mubr.msk.f32.mxu0 %vm7352_vm12, %v9474_v27 }
 0x395   : > { %v1485_v12 = vmul.f32 %v5911_v29, %v8052_v43  ;;  %v1429_v39 = vpop.f32.mrb[31].mxu1  ;;  %v8082_v29 = vld [vmem:[%s9368_s3 + $0x40] sm:$0xff] }
 0x396   : > { %v1484_v0 = vmul.f32 %v1429_v39, %v8057_v9  ;;  %v8072_v45 = vpop.trf.xlu1  ;;  %9477 = vst [vmem:[#allocation36_spill] sm:$0xff] %v8082_v29  ;;  %v8097_v9 = vld [vmem:[%s9368_s3 + $0x50] sm:$0xff]  ;;  %v8114_v43 = vld [vmem:[%s9368_s3 + $0x60] sm:$0xff] }
 0x397   : > { %9475 = vst [vmem:[#allocation34_spill] sm:$0xff] %v8072_v45  ;;  %v8092_v45 = vld [vmem:[%s9368_s3 + $0x58] sm:$0xff]  ;;  %9480 = vst [vmem:[#allocation39_spill] sm:$0xff] %v8097_v9 }
 0x398   : > { %v6734_v7 = vpack.c.bf16 %v1485_v12, %v1484_v0  ;;  %9479 = vst [vmem:[#allocation38_spill] sm:$0xff] %v8092_v45  ;;  %9484 = vst [vmem:[#allocation43_spill] sm:$0xff] %v8114_v43 }
 0x39a   : > { %6735 = vmatpush3.bf16.msra.mxu1 %v6734_v7  ;;  %v8087_v0 = vpop.trf.xlu1 }
 0x39b   : > { %6736 = vmatprep.subr.bf16.mxu1 %v9466_v25  ;;  %9478 = vst [vmem:[#allocation37_spill] sm:$0xff] %v8087_v0  ;;  %v8109_v0 = vld [vmem:[%s9368_s3 + $0x68] sm:$0xff] }
 0x39c   : > { %v5914_v47 = vpop.f32.mrb[32].mxu1  ;;  %9483 = vst [vmem:[#allocation42_spill] sm:$0xff] %v8109_v0 }
 0x39d   : > { %v1487_v10 = vmul.f32 %v5914_v47, %v8077_v22  ;;  %v1439_v39 = vpop.f32.mrb[33].mxu1 }
 0x39e   : > { %v1486_v12 = vmul.f32 %v1439_v39, %v8082_v29  ;;  %v8101_v29 = vpop.trf.xlu1 }
 0x39f   : > { %9481 = vst [vmem:[#allocation40_spill] sm:$0xff] %v8101_v29 }
 0x3a0   : > { %v6737_v7 = vpack.c.bf16 %v1487_v10, %v1486_v12 }
 0x3a2   : > { %6738 = vmatpush3.bf16.msra.mxu1 %v6737_v7 }
 0x3a3   : > { %6739 = vmatprep.subr.bf16.mxu1 %v9466_v25 }
 0x3a4   : > { %v5917_v47 = vpop.f32.mrb[34].mxu1 }
 0x3a5   : > { %v1489_v22 = vmul.f32 %v5917_v47, %v8092_v45  ;;  %v1449_v39 = vpop.f32.mrb[35].mxu1  ;;  %v8104_v7 = vpop.trf.xlu0  ;;  %v8128_v45 = vld [vmem:[%s9368_s3 + $0x78] sm:$0xff] }
 0x3a6   : > { %v1488_v10 = vmul.f32 %v1449_v39, %v8097_v9  ;;  %9482 = vst [vmem:[#allocation41_spill] sm:$0xff] %v8104_v7  ;;  %v8117_v47 = vpop.trf.xlu1 }
 0x3a7   : > { %9485 = vst [vmem:[#allocation44_spill] sm:$0xff] %v8117_v47  ;;  %v8133_v47 = vld [vmem:[%s9368_s3 + $0x70] sm:$0xff] }
 0x3a8   : > { %v6740_v12 = vpack.c.bf16 %v1489_v22, %v1488_v10 }
 0x3aa   : > { %6741 = vmatpush3.bf16.msra.mxu1 %v6740_v12  ;;  %v8121_v12 = vpop.trf.xlu0  ;;  %v8123_v9 = vpop.trf.xlu1 }
 0x3ab   : > { %6742 = vmatprep.subr.bf16.mxu1 %v9466_v25  ;;  %9486 = vst [vmem:[#allocation45_spill] sm:$0xff] %v8121_v12  ;;  %9487 = vst [vmem:[#allocation46_spill] sm:$0xff] %v8123_v9 }
 0x3ac   : > { %v5920_v29 = vpop.f32.mrb[36].mxu1 }
 0x3ad   : > { %v1491_v22 = vmul.f32 %v5920_v29, %v8109_v0  ;;  %v1459_v39 = vpop.f32.mrb[37].mxu1 }
 0x3ae   : > { %v1490_v10 = vmul.f32 %v1459_v39, %v8114_v43 }
 0x3b0   : > { %v6743_v7 = vpack.c.bf16 %v1491_v22, %v1490_v10  ;;  %v8137_v22 = vpop.trf.xlu0  ;;  %v8140_v10 = vpop.trf.xlu1 }
 0x3b1   : > { %9488 = vst [vmem:[#allocation47_spill] sm:$0xff] %v8137_v22  ;;  %9489 = vst [vmem:[#allocation48_spill] sm:$0xff] %v8140_v10 }
 0x3b2   : > { %6744 = vmatpush3.bf16.msra.mxu1 %v6743_v7 }
 0x3b3   : > { %6745 = vmatprep.subr.bf16.mxu1 %v9466_v25 }
 0x3b4   : > { %v5923_v29 = vpop.f32.mrb[38].mxu1  ;;  %v8143_v43 = vpop.trf.xlu0 }
 0x3b5   : > { %v1493_v39 = vmul.f32 %v5923_v29, %v8128_v45  ;;  %v1469_v12 = vpop.f32.mrb[39].mxu1  ;;  %9490 = vst [vmem:[#allocation49_spill] sm:$0xff] %v8143_v43  ;;  %v8146_v0 = vpop.trf.xlu1 }
 0x3b6   : > { %v1492_v7 = vmul.f32 %v1469_v12, %v8133_v47  ;;  %9491 = vst [vmem:[#allocation50_spill] sm:$0xff] %v8146_v0 }
 0x3b8   : > { %v6746_v9 = vpack.c.bf16 %v1493_v39, %v1492_v7  ;;  %v8152_v12 = vpop.trf.xlu0 }
 0x3b9   : > { %9492 = vst [vmem:[#allocation51_spill] sm:$0xff] %v8152_v12 }
 0x3ba   : > { %6747 = vmatpush3.bf16.msra.mxu1 %v6746_v9  ;;  %v8156_v9 = vpop.trf.xlu1 }
 0x3bb   : > { %6748 = vmatprep.subr.bf16.mxu1 %v9466_v25  ;;  %9493 = vst [vmem:[#allocation52_spill] sm:$0xff] %v8156_v9 }
 0x3bc   : > { %v8160_v29 = vpop.trf.xlu0 }
 0x3bd   : > { %5957 = vmatmul.mubr.f32.vlgmr.msra.gmra.mrb[40].mxu1 %v7932_v24  ;;  %9494 = vst [vmem:[#allocation53_spill] sm:$0xff] %v8160_v29 }
 0x3be   : > { %6750 = vmatpush3.bf16.msra.mxu1 %v7800_v8  ;;  %5991 = vmatprep.mubr.msk.f32.mxu1 %vm7352_vm12, %v9474_v27  ;;  %v8162_v39 = vpop.trf.xlu1 }
 0x3bf   : > { %6751 = vmatprep.subr.bf16.mxu1 %v9466_v25  ;;  %9495 = vst [vmem:[#allocation54_spill] sm:$0xff] %v8162_v39 }
 0x3c0   : > { %v8166_v7 = vpop.trf.xlu0 }
 0x3c1   : > { %9496 = vst [vmem:[#allocation55_spill] sm:$0xff] %v8166_v7 }
 0x3c2   : > { %6753 = vmatpush3.bf16.msra.mxu1 %v7816_v13  ;;  %v8170_v12 = vpop.trf.xlu1 }
 0x3c3   : > { %6754 = vmatprep.subr.bf16.mxu1 %v9466_v25  ;;  %9497 = vst [vmem:[#allocation56_spill] sm:$0xff] %v8170_v12 }
 0x3c4   : > { %v8174_v43 = vpop.trf.xlu0 }
 0x3c5   : > { %9498 = vst [vmem:[#allocation57_spill] sm:$0xff] %v8174_v43 }
 0x3c6   : > { %6756 = vmatpush3.bf16.msra.mxu1 %v7832_v30  ;;  %v8176_v29 = vpop.trf.xlu1 }
 0x3c7   : > { %6757 = vmatprep.subr.bf16.mxu1 %v9466_v25  ;;  %9499 = vst [vmem:[#allocation58_spill] sm:$0xff] %v8176_v29 }
 0x3c8   : > { %v8180_v22 = vpop.trf.xlu0 }
 0x3c9   : > { %9500 = vst [vmem:[#allocation59_spill] sm:$0xff] %v8180_v22 }
 0x3ca   : > { %6759 = vmatpush3.bf16.msra.mxu1 %v7848_v35 }
 0x3cb   : > { %6760 = vmatprep.subr.bf16.mxu1 %v9466_v25 }
 0x3ce   : > { %6762 = vmatpush3.bf16.msra.mxu1 %v7864_v44 }
 0x3cf   : > { %6763 = vmatprep.subr.bf16.mxu1 %v9466_v25 }
 0x3d2   : > { %6765 = vmatpush3.bf16.msra.mxu1 %v7883_v19  ;;  %v8186_v19 = vpop.trf.xlu0 }
 0x3d3   : > { %6766 = vmatprep.subr.bf16.mxu1 %v9466_v25  ;;  %9501 = vst [vmem:[#allocation60_spill] sm:$0xff] %v8186_v19 }
 0x3d6   : > { %6768 = vmatpush3.bf16.msra.mxu1 %v7905_v23  ;;  %v8188_v43 = vpop.trf.xlu0 }
 0x3d7   : > { %6769 = vmatprep.subr.bf16.mxu1 %v9466_v25  ;;  %9502 = vst [vmem:[#allocation61_spill] sm:$0xff] %v8188_v43 }
 0x3da   : > { %6771 = vmatpush3.bf16.msra.mxu1 %v7927_v46  ;;  %v8190_v29 = vpop.trf.xlu0 }
 0x3db   : > { %5994 = vmatprep.subr.mxu1 %v7664_v4  ;;  %v680_v7 = vpop.permute.xlu1 %679  ;;  %9503 = vst [vmem:[#allocation62_spill] sm:$0xff] %v8190_v29 }
 0x3dc   : > { %v936_v12 = vadd.f32 %v7660_v51, %v680_v7 }
 0x3de   : > { %v1121_v39 = vadd.f32 %v7658_v50, %v936_v12  ;;  %v8192_v23 = vpop.trf.xlu0 }
 0x3df   : > { %9504 = vst [vmem:[#allocation63_spill] sm:$0xff] %v8192_v23 }
 0x3e0   : > { %3648 = vxpose.xlu1.b32.start.end [1/1] (short) %v1121_v39, 128 }
 0x3e2   : > { %v8194_v9 = vpop.trf.xlu0 }
 0x3e3   : > { %9505 = vst [vmem:[#allocation64_spill] sm:$0xff] %v8194_v9 }
 0x3e6   : > { %v8196_v22 = vpop.trf.xlu0 }
 0x3e7   : > { %9506 = vst [vmem:[#allocation65_spill] sm:$0xff] %v8196_v22 }
 0x3ea   : > { %v8198_v46 = vpop.trf.xlu0 }
 0x3eb   : > { %9507 = vst [vmem:[#allocation66_spill] sm:$0xff] %v8198_v46 }
 0x3f4   : > { %v8210_v22 = vpop.f32.mrb[24].mxu0 }
 0x3f5   : > { %v977_v46 = vpop.f32.mrb[25].mxu0 }
 0x3fb   : > { %v8212_v43 = vpop.f32.mrb[26].mxu0 }
 0x409   : > { %v685_v0 = vpop.permute.xlu0 %684 }
 0x40a   : > { %v941_v51 = vadd.f32 %v7662_v55, %v685_v0  ;;  %v982_v55 = vpop.f32.mrb[27].mxu0 }
 0x40c   : > { %v8202_v50 = vadd.f32 %v7656_v49, %v941_v51 }
 0x40d   : > { %v710_v12 = vpop.permute.xlu0 %709 }
 0x40e   : > { %9508 = vst [vmem:[#allocation67_spill] sm:$0xff] %v8202_v50  ;;  %v966_v39 = vadd.f32 %v8038_v34, %v710_v12 }
 0x410   : > { %v1151_v7 = vadd.f32 %v7727_v41, %v966_v39  ;;  %v649_v41 = vld [vmem:[%s9371_s6 + $0x80] sm:$0xff]  ;;  %v651_v39 = vld [vmem:[%s9371_s6 + $0x90] sm:$0xff] }
 0x411   : > { %v715_v29 = vpop.permute.xlu0 %714 }
 0x412   : > { %v971_v23 = vadd.f32 %v8047_v21, %v715_v29  ;;  %4029 = vxpose.xlu0.b32.start.end [1/1] (short) %v1151_v7, 128  ;;  %v646_v29 = vld [vmem:[%s9371_s6 + $0x68] sm:$0xff] }
 0x413   : > { %v8214_v49 = vpop.f32.mrb[28].mxu0 }
 0x414   : > { %v8208_v9 = vadd.f32 %v7725_v40, %v971_v23  ;;  %v987_v0 = vpop.f32.mrb[29].mxu0  ;;  %v650_v40 = vld [vmem:[%s9371_s6 + $0x88] sm:$0xff] }
 0x415   : > { %v647_v0 = vld [vmem:[%s9371_s6 + $0x70] sm:$0xff] }
 0x416   : > { %9509 = vst [vmem:[#allocation68_spill] sm:$0xff] %v8208_v9 }
 0x431   : > { %v8219_v34 = vpop.f32.mrb[30].mxu0 }
 0x432   : > { %v992_v21 = vpop.f32.mrb[31].mxu0 }
 0x435   : > { %v8224_v23 = vpop.f32.mrb[32].mxu0 }
 0x436   : > { %v997_v46 = vpop.f32.mrb[33].mxu0 }
 0x437   : > { %v653_v46 = vld [vmem:[%s9371_s6 + $0xa0] sm:$0xff] }
 0x439   : > { %v8229_v51 = vpop.f32.mrb[34].mxu0 }
 0x43a   : > { %739 = vperm.xlu1 %7258, %v649_v41   ;;  %v1002_v12 = vpop.f32.mrb[35].mxu0  ;;  %v652_v41 = vld [vmem:[%s9371_s6 + $0x98] sm:$0xff] }
 0x43d   : > { %v8234_v7 = vpop.f32.mrb[36].mxu0 }
 0x43e   : > { %744 = vperm.xlu1 %7258, %v650_v40   ;;  %v1007_v55 = vpop.f32.mrb[37].mxu0 }
 0x43f   : > { %v655_v55 = vld [vmem:[%s9371_s6 + $0xb0] sm:$0xff] }
 0x441   : > { %v8242_v21 = vpop.f32.mrb[38].mxu0 }
 0x442   : > { %724 = vperm.xlu1 %7258, %v646_v29   ;;  %v1012_v40 = vpop.f32.mrb[39].mxu0 }
 0x445   : > { %v8247_v29 = vpop.f32.mrb[40].mxu0 }
 0x446   : > { %749 = vperm.xlu1 %7258, %v651_v39   ;;  %v1017_v12 = vpop.f32.mrb[41].mxu0  ;;  %v648_v39 = vld [vmem:[%s9371_s6 + $0x78] sm:$0xff] }
 0x447   : > { %v4870_v12 = vld [vmem:[%s9372_s7] sm:$0xff] }
 0x44a   : > { %729 = vperm.xlu1 %7258, %v647_v0   ;;  %v8255_v0 = vpop.f32.mrb[42].mxu0 }
 0x44e   : > { %754 = vperm.xlu1 %7258, %v652_v41   ;;  %v1022_v41 = vpop.f32.mrb[43].mxu0 }
 0x44f   : > { %v8257_v40 = vpop.f32.mrb[44].mxu0 }
 0x452   : > { %759 = vperm.xlu1 %7258, %v653_v46   ;;  %v1027_v46 = vpop.f32.mrb[45].mxu0 }
 0x453   : > { %v645_v46 = vld [vmem:[%s9371_s6 + $0x60] sm:$0xff] }
 0x456   : > { %734 = vperm.xlu1 %7258, %v648_v39   ;;  %v4872_v39 = vld [vmem:[%s9372_s7 + $0x10] sm:$0xff] }
 0x45a   : > { %769 = vperm.xlu1 %7258, %v655_v55  }
 0x45e   : > { %4876 = vperm.xlu1 %7258, %v4870_v12  }
 0x460   : > { %v8265_v9 = vpop.trf.xlu1 }
 0x461   : > { %9510 = vst [vmem:[#allocation69_spill] sm:$0xff] %v8265_v9  ;;  %v654_v9 = vld [vmem:[%s9371_s6 + $0xa8] sm:$0xff] }
 0x462   : > { %4886 = vperm.xlu1 %7258, %v4872_v39   ;;  %v656_v39 = vld [vmem:[%s9371_s6 + $0xb8] sm:$0xff] }
 0x464   : > { %v8267_v50 = vpop.trf.xlu1 }
 0x465   : > { %9511 = vst [vmem:[#allocation70_spill] sm:$0xff] %v8267_v50 }
 0x468   : > { %v8269_v19 = vpop.trf.xlu1 }
 0x469   : > { %9512 = vst [vmem:[#allocation71_spill] sm:$0xff] %v8269_v19 }
 0x46c   : > { %v8271_v55 = vpop.trf.xlu1 }
 0x46d   : > { %9513 = vst [vmem:[#allocation72_spill] sm:$0xff] %v8271_v55  ;;  %v8288_v55 = vpop.f32.mrb[46].mxu0 }
 0x470   : > { %v8273_v41 = vpop.trf.xlu1 }
 0x471   : > { %9514 = vst [vmem:[#allocation73_spill] sm:$0xff] %v8273_v41  ;;  %v1032_v41 = vpop.f32.mrb[47].mxu0 }
 0x474   : > { %v8278_v12 = vpop.trf.xlu1 }
 0x475   : > { %9515 = vst [vmem:[#allocation74_spill] sm:$0xff] %v8278_v12 }
 0x477   : > { %719 = vperm.xlu0 %7257, %v645_v46   ;;  %v4871_v46 = vld [vmem:[%s9372_s7 + $0x8] sm:$0xff] }
 0x478   : > { %v8286_v19 = vpop.trf.xlu1 }
 0x479   : > { %9516 = vst [vmem:[#allocation75_spill] sm:$0xff] %v8286_v19 }
 0x47b   : > { %764 = vperm.xlu0 %7257, %v654_v9   ;;  %v4873_v9 = vld [vmem:[%s9372_s7 + $0x18] sm:$0xff] }
 0x47c   : > { %v8293_v12 = vpop.trf.xlu1 }
 0x47f   : > { %774 = vperm.xlu0 %7257, %v656_v39  }
 0x480   : > { %v8298_v50 = vpop.trf.xlu1 }
 0x483   : > { %4881 = vperm.xlu0 %7257, %v4871_v46  }
 0x484   : > { %v8300_v44 = vpop.trf.xlu1 }
 0x487   : > { %4891 = vperm.xlu0 %7257, %v4873_v9  }
 0x488   : > { %v8308_v41 = vpop.trf.xlu1 }
 0x490   : > { %v1560_v19 = vpop.f32.mrb[40].mxu1 }
 0x491   : > { %v5958_v10 = vpop.f32.mrb[41].mxu1  ;;  %5992 = vmatmul.mubr.f32.vlgmr.msra.gmra.mrb[42].mxu1 %v1560_v19 }
 0x492   : > { %5995 = vmatpush3.msra.mxu1 %v7664_v4  ;;  %5996 = vmatprep.mubr.msk.f32.mxu1 %vm1284_vm11, %v7704_v26  ;;  %v8312_v39 = vpop.trf.xlu0  ;;  %v8318_v4 = vpop.trf.xlu1 }
 0x493   : > { %6772 = vmatprep.subr.bf16.mxu1 %v9466_v25 }
 0x495   : > { %5997 = vmatmul.mubr.msk.f32.vlgmr.msra.gmra.mrb[44].mxu1 %vm1284_vm11, %v7708_v28 }
 0x496   : > { %5999 = vmatprep.mubr.msk.f32.mxu1 %vm1284_vm11, %v7711_v31  ;;  %v8320_v26 = vpop.trf.xlu0  ;;  %v8328_v28 = vpop.trf.xlu1 }
 0x499   : > { %6000 = vmatmul.mubr.msk.f32.gmra.mrb[46].mxu1 %vm1284_vm11, %v7715_v33 }
 0x49a   : > { %6002 = vmatprep.mubr.msk.f32.mxu1 %vm1284_vm11, %v7718_v36  ;;  %v8332_v31 = vpop.trf.xlu0  ;;  %v8338_v33 = vpop.trf.xlu1 }
 0x49d   : > { %6003 = vmatmul.mubr.msk.f32.gmra.mrb[48].mxu1 %vm1284_vm11, %v7722_v38 }
 0x49e   : > { %6005 = vmatprep.mubr.msk.f32.mxu1 %vm1284_vm11, %v7731_v48  ;;  %v8340_v36 = vpop.trf.xlu0  ;;  %v8348_v38 = vpop.trf.xlu1 }
 0x4a1   : > { %6006 = vmatmul.mubr.msk.f32.gmra.mrb[50].mxu1 %vm1284_vm11, %v7744_v58 }
 0x4a2   : > { %6008 = vmatprep.mubr.msk.f32.mxu1 %vm1284_vm11, %v7750_v61  ;;  %v8352_v48 = vpop.trf.xlu0  ;;  %v8358_v58 = vpop.trf.xlu1 }
 0x4a5   : > { %6009 = vmatmul.mubr.msk.f32.gmra.mrb[52].mxu1 %vm1284_vm11, %v7752_v62 }
 0x4a6   : > { %6011 = vmatprep.mubr.msk.f32.mxu1 %vm1284_vm11, %v7762_v6  ;;  %v8360_v61 = vpop.trf.xlu0 }
 0x4a9   : > { %6012 = vmatmul.mubr.msk.f32.gmra.mrb[54].mxu1 %vm1284_vm11, %v7765_v11 }
 0x4aa   : > { %6014 = vmatprep.mubr.msk.f32.mxu1 %vm1284_vm11, %v7768_v15  ;;  %v8363_v11 = vpop.trf.xlu0 }
 0x4ab   : > { %9517 = vst [vmem:[#allocation76_spill] sm:$0xff] %v8363_v11 }
 0x4ad   : > { %6015 = vmatmul.mubr.msk.f32.gmra.mrb[56].mxu1 %vm1284_vm11, %v7770_v16 }
 0x4ae   : > { %6017 = vmatprep.mubr.msk.f32.mxu1 %vm1284_vm11, %v7772_v17  ;;  %v8372_v19 = vpop.trf.xlu0 }
 0x4af   : > { %9520 = vst [vmem:[#allocation79_spill] sm:$0xff] %v8372_v19 }
 0x4b1   : > { %6018 = vmatmul.mubr.msk.f32.gmra.mrb[58].mxu1 %vm1284_vm11, %v7774_v18 }
 0x4b2   : > { %6052 = vmatprep.mubr.msk.f32.mxu1 %vm7352_vm12, %v9474_v27  ;;  %v8379_v11 = vpop.trf.xlu0 }
 0x4b3   : > { %9522 = vst [vmem:[#allocation81_spill] sm:$0xff] %v8379_v11 }
 0x4b9   : > { %v740_v62 = vpop.permute.xlu1 %739 }
 0x4ba   : > { %v996_v6 = vadd.f32 %v8224_v23, %v740_v62 }
 0x4bc   : > { %v8366_v15 = vadd.f32 %v7742_v57, %v996_v6 }
 0x4bd   : > { %v745_v16 = vpop.permute.xlu1 %744 }
 0x4be   : > { %9518 = vst [vmem:[#allocation77_spill] sm:$0xff] %v8366_v15  ;;  %v1001_v17 = vadd.f32 %v8229_v51, %v745_v16  ;;  %v8388_v16 = vpop.trf.xlu0 }
 0x4bf   : > { %9525 = vst [vmem:[#allocation84_spill] sm:$0xff] %v8388_v16 }
 0x4c0   : > { %v8370_v18 = vadd.f32 %v7740_v56, %v1001_v17 }
 0x4c1   : > { %v725_v10 = vpop.permute.xlu1 %724 }
 0x4c2   : > { %9519 = vst [vmem:[#allocation78_spill] sm:$0xff] %v8370_v18  ;;  %v981_v46 = vadd.f32 %v8212_v43, %v725_v10 }
 0x4c4   : > { %v8376_v9 = vadd.f32 %v7729_v42, %v981_v46  ;;  %v8395_v46 = vpop.trf.xlu0 }
 0x4c5   : > { %v750_v23 = vpop.permute.xlu1 %749  ;;  %9527 = vst [vmem:[#allocation86_spill] sm:$0xff] %v8395_v46 }
 0x4c6   : > { %9521 = vst [vmem:[#allocation80_spill] sm:$0xff] %v8376_v9  ;;  %v1006_v62 = vadd.f32 %v8234_v7, %v750_v23  ;;  %v9547_v9 = vld [vmem:[#allocation43_spill] sm:$0xff] }
 0x4c8   : > { %v8382_v57 = vadd.f32 %v7748_v60, %v1006_v62  ;;  %v8404_v62 = vpop.trf.xlu0 }
 0x4c9   : > { %v730_v51 = vpop.permute.xlu1 %729  ;;  %9530 = vst [vmem:[#allocation89_spill] sm:$0xff] %v8404_v62 }
 0x4ca   : > { %9523 = vst [vmem:[#allocation82_spill] sm:$0xff] %v8382_v57  ;;  %v986_v56 = vadd.f32 %v8214_v49, %v730_v51 }
 0x4cc   : > { %v8386_v6 = vadd.f32 %v7738_v54, %v986_v56 }
 0x4cd   : > { %v755_v43 = vpop.permute.xlu1 %754 }
 0x4ce   : > { %9524 = vst [vmem:[#allocation83_spill] sm:$0xff] %v8386_v6  ;;  %v1011_v42 = vadd.f32 %v8242_v21, %v755_v43  ;;  %v9545_v6 = vld [vmem:[#allocation39_spill] sm:$0xff] }
 0x4d0   : > { %v8392_v17 = vadd.f32 %v7746_v59, %v1011_v42 }
 0x4d1   : > { %v760_v7 = vpop.permute.xlu1 %759 }
 0x4d2   : > { %9526 = vst [vmem:[#allocation85_spill] sm:$0xff] %v8392_v17  ;;  %v1016_v10 = vadd.f32 %v8247_v29, %v760_v7  ;;  %v8410_v29 = vpop.trf.xlu0 }
 0x4d3   : > { %9532 = vst [vmem:[#allocation91_spill] sm:$0xff] %v8410_v29 }
 0x4d4   : > { %v8398_v60 = vadd.f32 %v7756_v2, %v1016_v10 }
 0x4d5   : > { %v735_v49 = vpop.permute.xlu1 %734 }
 0x4d6   : > { %9528 = vst [vmem:[#allocation87_spill] sm:$0xff] %v8398_v60  ;;  %v991_v54 = vadd.f32 %v8219_v34, %v735_v49  ;;  %v8412_v56 = vpop.trf.xlu0 }
 0x4d7   : > { %9533 = vst [vmem:[#allocation92_spill] sm:$0xff] %v8412_v56 }
 0x4d8   : > { %v8402_v23 = vadd.f32 %v7736_v53, %v991_v54 }
 0x4d9   : > { %v770_v21 = vpop.permute.xlu1 %769 }
 0x4da   : > { %9529 = vst [vmem:[#allocation88_spill] sm:$0xff] %v8402_v23  ;;  %v1026_v59 = vadd.f32 %v8257_v40, %v770_v21  ;;  %v8414_v2 = vpop.trf.xlu0  ;;  %v9543_v23 = vld [vmem:[#allocation36_spill] sm:$0xff] }
 0x4db   : > { %9534 = vst [vmem:[#allocation93_spill] sm:$0xff] %v8414_v2 }
 0x4dc   : > { %v8408_v51 = vadd.f32 %v7760_v5, %v1026_v59 }
 0x4de   : > { %9531 = vst [vmem:[#allocation90_spill] sm:$0xff] %v8408_v51  ;;  %v8416_v43 = vpop.trf.xlu0 }
 0x4df   : > { %9535 = vst [vmem:[#allocation94_spill] sm:$0xff] %v8416_v43 }
 0x4f6   : > { %v720_v34 = vpop.permute.xlu0 %719 }
 0x4f7   : > { %v976_v53 = vadd.f32 %v8210_v22, %v720_v34 }
 0x4f9   : > { %v8420_v42 = vadd.f32 %v7734_v52, %v976_v53 }
 0x4fa   : > { %v765_v7 = vpop.permute.xlu0 %764 }
 0x4fb   : > { %9536 = vst [vmem:[#allocation95_spill] sm:$0xff] %v8420_v42  ;;  %v1021_v40 = vadd.f32 %v8255_v0, %v765_v7 }
 0x4fd   : > { %v8424_v5 = vadd.f32 %v7754_v63, %v1021_v40 }
 0x4fe   : > { %v775_v10 = vpop.permute.xlu0 %774 }
 0x4ff   : > { %9537 = vst [vmem:[#allocation96_spill] sm:$0xff] %v8424_v5  ;;  %v1031_v49 = vadd.f32 %v8288_v55, %v775_v10  ;;  %v9541_v5 = vld [vmem:[#allocation32_spill] sm:$0xff] }
 0x501   : > { %v8428_v54 = vadd.f32 %v7758_v3, %v1031_v49 }
 0x503   : > { %9538 = vst [vmem:[#allocation97_spill] sm:$0xff] %v8428_v54 }
 0x564   : > { %v8430_v21 = vpop.f32.mrb[42].mxu1 }
 0x565   : > { %v5993_v59 = vpop.f32.mrb[43].mxu1 }
 0x566   : > { %v9539_v59 = vld [vmem:[#allocation29_spill] sm:$0xff] }
 0x568   : > { %v5998_v51 = vpop.f32.mrb[44].mxu1 }
 0x569   : > { %v1860_v22 = vmul.f32 %v5998_v51, %v7987_v20  ;;  %v1780_v52 = vpop.f32.mrb[45].mxu1 }
 0x56a   : > { %v1859_v34 = vmul.f32 %v1780_v52, %v7995_v1 }
 0x56c   : > { %v6773_v53 = vpack.c.bf16 %v1860_v22, %v1859_v34  ;;  %v6001_v0 = vpop.f32.mrb[46].mxu1  ;;  %v9540_v34 = vld [vmem:[#allocation31_spill] sm:$0xff] }
 0x56d   : > { %v1862_v63 = vmul.f32 %v6001_v0, %v8005_v37  ;;  %v1790_v7 = vpop.f32.mrb[47].mxu1 }
 0x56e   : > { %v1861_v40 = vmul.f32 %v1790_v7, %v8012_v14  ;;  %6774 = vmatpush3.bf16.msra.mxu1 %v6773_v53 }
 0x56f   : > { %6775 = vmatprep.subr.bf16.mxu1 %v9466_v25 }
 0x570   : > { %v6776_v3 = vpack.c.bf16 %v1862_v63, %v1861_v40  ;;  %v6004_v55 = vpop.f32.mrb[48].mxu1  ;;  %v9542_v40 = vld [vmem:[#allocation35_spill] sm:$0xff] }
 0x571   : > { %v1864_v10 = vmul.f32 %v6004_v55, %v8025_v32  ;;  %v1800_v49 = vpop.f32.mrb[49].mxu1 }
 0x572   : > { %v1863_v51 = vmul.f32 %v1800_v49, %v9539_v59  ;;  %6777 = vmatpush3.bf16.msra.mxu1 %v6776_v3 }
 0x573   : > { %6778 = vmatprep.subr.bf16.mxu1 %v9466_v25 }
 0x574   : > { %v6779_v22 = vpack.c.bf16 %v1864_v10, %v1863_v51  ;;  %v6007_v52 = vpop.f32.mrb[50].mxu1  ;;  %v9544_v51 = vld [vmem:[#allocation38_spill] sm:$0xff] }
 0x575   : > { %v1866_v0 = vmul.f32 %v6007_v52, %v9540_v34  ;;  %v1810_v54 = vpop.f32.mrb[51].mxu1 }
 0x576   : > { %v1865_v7 = vmul.f32 %v1810_v54, %v9541_v5  ;;  %6780 = vmatpush3.bf16.msra.mxu1 %v6779_v22 }
 0x577   : > { %6781 = vmatprep.subr.bf16.mxu1 %v9466_v25 }
 0x578   : > { %v6782_v53 = vpack.c.bf16 %v1866_v0, %v1865_v7  ;;  %v6010_v63 = vpop.f32.mrb[52].mxu1  ;;  %v9546_v7 = vld [vmem:[#allocation42_spill] sm:$0xff] }
 0x579   : > { %v1868_v55 = vmul.f32 %v6010_v63, %v9542_v40  ;;  %v1820_v60 = vpop.f32.mrb[53].mxu1 }
 0x57a   : > { %v1867_v49 = vmul.f32 %v1820_v60, %v9543_v23  ;;  %6783 = vmatpush3.bf16.msra.mxu1 %v6782_v53 }
 0x57b   : > { %6784 = vmatprep.subr.bf16.mxu1 %v9466_v25 }
 0x57c   : > { %v6785_v3 = vpack.c.bf16 %v1868_v55, %v1867_v49  ;;  %v6013_v10 = vpop.f32.mrb[54].mxu1 }
 0x57d   : > { %v1870_v52 = vmul.f32 %v6013_v10, %v9544_v51  ;;  %v1830_v17 = vpop.f32.mrb[55].mxu1 }
 0x57e   : > { %v1869_v54 = vmul.f32 %v1830_v17, %v9545_v6  ;;  %6786 = vmatpush3.bf16.msra.mxu1 %v6785_v3 }
 0x57f   : > { %6787 = vmatprep.subr.bf16.mxu1 %v9466_v25 }
 0x580   : > { %v6788_v22 = vpack.c.bf16 %v1870_v52, %v1869_v54  ;;  %v6016_v0 = vpop.f32.mrb[56].mxu1  ;;  %v9548_v52 = vld [vmem:[#allocation6_spill] sm:$0xff] }
 0x581   : > { %v1872_v63 = vmul.f32 %v6016_v0, %v9546_v7  ;;  %v1840_v57 = vpop.f32.mrb[57].mxu1 }
 0x582   : > { %v1871_v60 = vmul.f32 %v1840_v57, %v9547_v9  ;;  %6789 = vmatpush3.bf16.msra.mxu1 %v6788_v22  ;;  %v2016_v22 = vsel %vm1284_vm11, %v8430_v21, -inf }
 0x583   : > { %6790 = vmatprep.subr.bf16.mxu1 %v9466_v25  ;;  %v2017_v0 = vrot.slane %v2016_v22, 4 }
 0x584   : > { %v6791_v53 = vpack.c.bf16 %v1872_v63, %v1871_v60  ;;  %v6019_v55 = vpop.f32.mrb[58].mxu1 }
 0x585   : > { %v1874_v49 = vmul.f32 %v6019_v55, %v8128_v45  ;;  %v1850_v10 = vpop.f32.mrb[59].mxu1  ;;  %v2018_v63 = vmax.f32 %v2016_v22, %v2017_v0 }
 0x586   : > { %v1873_v17 = vmul.f32 %v1850_v10, %v8133_v47  ;;  %6792 = vmatpush3.bf16.msra.mxu1 %v6791_v53 }
 0x587   : > { %6793 = vmatprep.subr.bf16.mxu1 %v9466_v25  ;;  %v2019_v60 = vrot.slane %v2018_v63, 2 }
 0x588   : > { %v6794_v3 = vpack.c.bf16 %v1874_v49, %v1873_v17 }
 0x589   : > { %v2020_v53 = vmax.f32 %v2018_v63, %v2019_v60 }
 0x58a   : > { %6795 = vmatpush3.bf16.msra.mxu1 %v6794_v3 }
 0x58b   : > { %v2021_v55 = vrot.slane %v2020_v53, 1 }
 0x58d   : > { %6053 = vmatmul.mubr.f32.vlgmr.msra.gmra.mrb[60].mxu1 %v7932_v24  ;;  %v2022_v49 = vmax.f32 %v2020_v53, %v2021_v55 }
 0x58e   : > { %6092 = vmatprep.mubr.msk.f32.mxu1 %vm1284_vm11, %v9548_v52 }
 0x58f   : > { %v2023_v10 = vsub.f32 %v8430_v21, %v2022_v49 }
 0x591   : > { %v2024_v17 = vmul.f32 1.442695, %v2023_v10 }
 0x593   : > { %7259 = vpow2.f32 %v2024_v17 }
 0x59d   : > { %v7260_v18 = vpop.eup %7259 }
 0x59e   : > { %v2026_v43 = vsel %vm1284_vm11, %v7260_v18, 0.0 }
 0x59f   : > { %v2027_v0 = vrot.slane %v2026_v43, 4 }
 0x5a1   : > { %v2028_v53 = vadd.f32 %v2027_v0, %v2026_v43  ;;  %v2015_v43 = vld [vmem:[%s9369_s4] sm:$0xff] }
 0x5a3   : > { %v2029_v21 = vrot.slane %v2028_v53, 2 }
 0x5a5   : > { %v2030_v49 = vadd.f32 %v2029_v21, %v2028_v53  ;;  %v9549_v53 = vld [vmem:[#allocation7_spill] sm:$0xff]  ;;  %v9555_v21 = vld [vmem:[#allocation12_spill] sm:$0xff] }
 0x5a7   : > { %v2031_v17 = vrot.slane %v2030_v49, 1 }
 0x660   : > { %v1941_v57 = vpop.f32.mrb[60].mxu1 }
 0x661   : > { %v6054_v54 = vpop.f32.mrb[61].mxu1  ;;  %6088 = vmatmul.mubr.f32.vlgmr.msra.gmra.mrb[48].mxu0 %v1941_v57 }
 0x662   : > { %6117 = vmatpush3.msra.mxu0 %v7932_v24 }
 0x663   : > { %6820 = vmatprep.subr.bf16.mxu0 %v9466_v25 }
 0x734   : > { %v2011_v3 = vpop.f32.mrb[48].mxu0 }
 0x735   : > { %v2036_v52 = vsel %vm1284_vm11, %v2011_v3, -inf  ;;  %v6089_v57 = vpop.f32.mrb[49].mxu0 }
 0x736   : > { %v2037_v24 = vrot.slane %v2036_v52, 4 }
 0x738   : > { %v2038_v54 = vmax.f32 %v2036_v52, %v2037_v24  ;;  %v2032_v52 = vadd.f32 %v2031_v17, %v2030_v49  ;;  %v9556_v49 = vld [vmem:[#allocation13_spill] sm:$0xff]  ;;  %v9558_v17 = vld [vmem:[#allocation15_spill] sm:$0xff] }
 0x73a   : > { %v2039_v42 = vrot.slane %v2038_v54, 2 }
 0x73c   : > { %v2040_v15 = vmax.f32 %v2038_v54, %v2039_v42 }
 0x73e   : > { %v2041_v22 = vrot.slane %v2040_v15, 1 }
 0x740   : > { %v2042_v63 = vmax.f32 %v2040_v15, %v2041_v22 }
 0x742   : > { %v2043_v60 = vsub.f32 %v2011_v3, %v2042_v63 }
 0x744   : > { %v2044_v55 = vmul.f32 1.442695, %v2043_v60 }
 0x746   : > { %7261 = vpow2.f32 %v2044_v55  ;;  %v9554_v55 = vld [vmem:[#allocation11_spill] sm:$0xff] }
 0x747   : > { %7263 = vrcp.f32 %v2032_v52  ;;  %v9560_v52 = vld [vmem:[#allocation18_spill] sm:$0xff] }
 0x750   : > { %v7262_v10 = vpop.eup %7261 }
 0x751   : > { %v2046_v57 = vsel %vm1284_vm11, %v7262_v10, 0.0  ;;  %v7264_v15 = vpop.eup %7263 }
 0x752   : > { %v2047_v2 = vrot.slane %v2046_v57, 4  ;;  %v2034_v3 = vmul.f32 %v7264_v15, %v7260_v18  ;;  %v9552_v18 = vld [vmem:[#allocation9_spill] sm:$0xff]  ;;  %v9564_v15 = vld [vmem:[#allocation24_spill] sm:$0xff] }
 0x754   : > { %v2048_v24 = vadd.f32 %v2047_v2, %v2046_v57  ;;  %v2035_v0 = vadd.f32 %v2034_v3, %v2015_v43  ;;  %v9553_v2 = vld [vmem:[#allocation10_spill] sm:$0xff]  ;;  %v9559_v57 = vld [vmem:[#allocation17_spill] sm:$0xff]  ;;  %v9566_v43 = vld [vmem:[#allocation27_spill] sm:$0xff] }
 0x755   : > { %v9565_v3 = vld [vmem:[#allocation26_spill] sm:$0xff] }
 0x756   : > { %v2049_v56 = vrot.slane %v2048_v24, 2 }
 0x758   : > { %v2050_v42 = vadd.f32 %v2049_v56, %v2048_v24  ;;  %v9550_v56 = vld [vmem:[#allocation4_spill] sm:$0xff] }
 0x759   : > { %v9561_v24 = vld [vmem:[#allocation20_spill] sm:$0xff] }
 0x75a   : > { %v2051_v54 = vrot.slane %v2050_v42, 1 }
 0x75c   : > { %v2052_v29 = vadd.f32 %v2051_v54, %v2050_v42  ;;  %v9562_v42 = vld [vmem:[#allocation21_spill] sm:$0xff]  ;;  %v9563_v54 = vld [vmem:[#allocation23_spill] sm:$0xff] }
 0x75e   : > { %7265 = vrcp.f32 %v2052_v29  ;;  %v9551_v29 = vld [vmem:[#allocation8_spill] sm:$0xff] }
 0x768   : > { %v7266_v22 = vpop.eup %7265 }
 0x769   : > { %v2054_v63 = vmul.f32 %v7266_v22, %v7262_v10  ;;  %v9557_v10 = vld [vmem:[#allocation14_spill] sm:$0xff]  ;;  %v9567_v22 = vld [vmem:[#allocation28_spill] sm:$0xff] }
 0x76b   : > { %v2055_v60 = vadd.f32 %v2054_v63, %v2035_v0  ;;  %v9568_v0 = vld [vmem:[#allocation30_spill] sm:$0xff]  ;;  %v9569_v63 = vld [vmem:[#allocation33_spill] sm:$0xff] }
 0x76d   : > { %6090 = vmatprep.subr.mxu1 %v2055_v60 }
 0x76e   : > { %6091 = vmatpush3.msra.mxu1 %v2055_v60  ;;  %v9570_v60 = vld [vmem:[#allocation34_spill] sm:$0xff] }
 0x76f   : > { %6093 = vmatmul.mubr.msk.f32.vlgmr.msra.gmra.mrb[62].mxu1 %vm1284_vm11, %v9549_v53  ;;  %6142 = vmatprep.subr.mxu1 %v9550_v56  ;;  %v9571_v53 = vld [vmem:[#allocation37_spill] sm:$0xff] }
 0x770   : > { %6143 = vmatpush3.msra.mxu1 %v9550_v56  ;;  %6095 = vmatprep.mubr.msk.f32.mxu1 %vm1284_vm11, %v9551_v29  ;;  %v9572_v56 = vld [vmem:[#allocation40_spill] sm:$0xff] }
 0x771   : > { %6844 = vmatprep.subr.bf16.mxu1 %v9466_v25  ;;  %v9573_v29 = vld [vmem:[#allocation44_spill] sm:$0xff] }
 0x773   : > { %6096 = vmatmul.mubr.msk.f32.gmra.mrb[64].mxu1 %vm1284_vm11, %v9552_v18  ;;  %v9574_v18 = vld [vmem:[#allocation46_spill] sm:$0xff] }
 0x774   : > { %6098 = vmatprep.mubr.msk.f32.mxu1 %vm1284_vm11, %v9553_v2  ;;  %v9575_v2 = vld [vmem:[#allocation48_spill] sm:$0xff] }
 0x777   : > { %6099 = vmatmul.mubr.msk.f32.gmra.mrb[66].mxu1 %vm1284_vm11, %v9554_v55  ;;  %v9576_v55 = vld [vmem:[#allocation16_spill] sm:$0xff] }
 0x778   : > { %6101 = vmatprep.mubr.msk.f32.mxu1 %vm1284_vm11, %v9555_v21  ;;  %v9577_v21 = vld [vmem:[#allocation50_spill] sm:$0xff] }
 0x77b   : > { %6102 = vmatmul.mubr.msk.f32.gmra.mrb[68].mxu1 %vm1284_vm11, %v9556_v49  ;;  %v9578_v49 = vld [vmem:[#allocation52_spill] sm:$0xff] }
 0x77c   : > { %6104 = vmatprep.mubr.msk.f32.mxu1 %vm1284_vm11, %v9557_v10  ;;  %v9579_v10 = vld [vmem:[#allocation19_spill] sm:$0xff] }
 0x77f   : > { %6105 = vmatmul.mubr.msk.f32.gmra.mrb[70].mxu1 %vm1284_vm11, %v9558_v17  ;;  %v9580_v17 = vld [vmem:[#allocation54_spill] sm:$0xff] }
 0x780   : > { %6107 = vmatprep.mubr.msk.f32.mxu1 %vm1284_vm11, %v9559_v57  ;;  %v9581_v57 = vld [vmem:[#allocation56_spill] sm:$0xff] }
 0x783   : > { %6108 = vmatmul.mubr.msk.f32.gmra.mrb[72].mxu1 %vm1284_vm11, %v9560_v52  ;;  %v9582_v52 = vld [vmem:[#allocation22_spill] sm:$0xff] }
 0x784   : > { %6110 = vmatprep.mubr.msk.f32.mxu1 %vm1284_vm11, %v9561_v24  ;;  %v9583_v24 = vld [vmem:[#allocation58_spill] sm:$0xff] }
 0x787   : > { %6111 = vmatmul.mubr.msk.f32.gmra.mrb[74].mxu1 %vm1284_vm11, %v9562_v42  ;;  %v9584_v42 = vld [vmem:[#allocation25_spill] sm:$0xff] }
 0x788   : > { %6113 = vmatprep.mubr.msk.f32.mxu1 %vm1284_vm11, %v9563_v54 }
 0x78b   : > { %6114 = vmatmul.mubr.msk.f32.gmra.mrb[76].mxu1 %vm1284_vm11, %v9564_v15 }
 0x78c   : > { %6144 = vmatprep.mubr.msk.f32.mxu1 %vm1284_vm11, %v9565_v3 }
 0x78f   : > { %6145 = vmatmul.mubr.msk.f32.vlgmr.msra.gmra.mrb[78].mxu1 %vm1284_vm11, %v9566_v43 }
 0x790   : > { %6147 = vmatprep.mubr.msk.f32.mxu1 %vm1284_vm11, %v9567_v22  ;;  %6846 = vmatpush3.bf16.msra.mxu1 %v7800_v8 }
 0x791   : > { %6847 = vmatprep.subr.bf16.mxu1 %v9466_v25 }
 0x793   : > { %6148 = vmatmul.mubr.msk.f32.gmra.mrb[80].mxu1 %vm1284_vm11, %v9568_v0 }
 0x794   : > { %6150 = vmatprep.mubr.msk.f32.mxu1 %vm1284_vm11, %v9569_v63  ;;  %6849 = vmatpush3.bf16.msra.mxu1 %v7816_v13 }
 0x795   : > { %6850 = vmatprep.subr.bf16.mxu1 %v9466_v25 }
 0x797   : > { %6151 = vmatmul.mubr.msk.f32.gmra.mrb[82].mxu1 %vm1284_vm11, %v9570_v60 }
 0x798   : > { %6153 = vmatprep.mubr.msk.f32.mxu1 %vm1284_vm11, %v9571_v53  ;;  %6852 = vmatpush3.bf16.msra.mxu1 %v7832_v30 }
 0x799   : > { %6853 = vmatprep.subr.bf16.mxu1 %v9466_v25 }
 0x79b   : > { %6154 = vmatmul.mubr.msk.f32.gmra.mrb[84].mxu1 %vm1284_vm11, %v9572_v56 }
 0x79c   : > { %6156 = vmatprep.mubr.msk.f32.mxu1 %vm1284_vm11, %v9573_v29  ;;  %6855 = vmatpush3.bf16.msra.mxu1 %v7848_v35 }
 0x79d   : > { %6856 = vmatprep.subr.bf16.mxu1 %v9466_v25 }
 0x79f   : > { %6157 = vmatmul.mubr.msk.f32.gmra.mrb[86].mxu1 %vm1284_vm11, %v9574_v18 }
 0x7a0   : > { %6159 = vmatprep.mubr.msk.f32.mxu1 %vm1284_vm11, %v9575_v2  ;;  %6858 = vmatpush3.bf16.msra.mxu1 %v9576_v55 }
 0x7a1   : > { %6859 = vmatprep.subr.bf16.mxu1 %v9466_v25 }
 0x7a3   : > { %6160 = vmatmul.mubr.msk.f32.gmra.mrb[88].mxu1 %vm1284_vm11, %v9577_v21 }
 0x7a4   : > { %6162 = vmatprep.mubr.msk.f32.mxu1 %vm1284_vm11, %v9578_v49  ;;  %6861 = vmatpush3.bf16.msra.mxu1 %v9579_v10 }
 0x7a5   : > { %6862 = vmatprep.subr.bf16.mxu1 %v9466_v25 }
 0x7a7   : > { %6163 = vmatmul.mubr.msk.f32.gmra.mrb[90].mxu1 %vm1284_vm11, %v9580_v17 }
 0x7a8   : > { %6165 = vmatprep.mubr.msk.f32.mxu1 %vm1284_vm11, %v9581_v57  ;;  %6864 = vmatpush3.bf16.msra.mxu1 %v9582_v52 }
 0x7a9   : > { %6865 = vmatprep.subr.bf16.mxu1 %v9466_v25 }
 0x7ab   : > { %6166 = vmatmul.mubr.msk.f32.gmra.mrb[92].mxu1 %vm1284_vm11, %v9583_v24 }
 0x7ac   : > { %6867 = vmatpush3.bf16.msra.mxu1 %v9584_v42  ;;  %6235 = vmatprep.mubr.msk.f32.mxu1 %vm7352_vm12, %v9474_v27 }
 0x7ad   : > { %6892 = vmatprep.subr.bf16.mxu1 %v9466_v25 }
 0x842   : > { %v6094_v54 = vpop.f32.mrb[62].mxu1 }
 0x843   : > { %v2170_v15 = vpop.f32.mrb[63].mxu1 }
 0x844   : > { %6118 = vmatprep.mubr.msk.f32.mxu0 %vm1284_vm11, %v2170_v15 }
 0x845   : > { %6119 = vmatmul.mubr.msk.f32.vlgmr.msra.gmra.mrb[50].mxu0 %vm1284_vm11, %v6094_v54 }
 0x846   : > { %v6097_v3 = vpop.f32.mrb[64].mxu1 }
 0x847   : > { %v2180_v43 = vpop.f32.mrb[65].mxu1 }
 0x848   : > { %6121 = vmatprep.mubr.msk.f32.mxu0 %vm1284_vm11, %v2180_v43 }
 0x849   : > { %6122 = vmatmul.mubr.msk.f32.gmra.mrb[52].mxu0 %vm1284_vm11, %v6097_v3 }
 0x84a   : > { %v6100_v22 = vpop.f32.mrb[66].mxu1 }
 0x84b   : > { %v2190_v0 = vpop.f32.mrb[67].mxu1 }
 0x84c   : > { %6124 = vmatprep.mubr.msk.f32.mxu0 %vm1284_vm11, %v2190_v0 }
 0x84d   : > { %6125 = vmatmul.mubr.msk.f32.gmra.mrb[54].mxu0 %vm1284_vm11, %v6100_v22 }
 0x84e   : > { %v6103_v63 = vpop.f32.mrb[68].mxu1 }
 0x84f   : > { %v2200_v60 = vpop.f32.mrb[69].mxu1 }
 0x850   : > { %6127 = vmatprep.mubr.msk.f32.mxu0 %vm1284_vm11, %v2200_v60 }
 0x851   : > { %6128 = vmatmul.mubr.msk.f32.gmra.mrb[56].mxu0 %vm1284_vm11, %v6103_v63 }
 0x852   : > { %v6106_v53 = vpop.f32.mrb[70].mxu1 }
 0x853   : > { %v2210_v56 = vpop.f32.mrb[71].mxu1 }
 0x854   : > { %6130 = vmatprep.mubr.msk.f32.mxu0 %vm1284_vm11, %v2210_v56 }
 0x855   : > { %6131 = vmatmul.mubr.msk.f32.gmra.mrb[58].mxu0 %vm1284_vm11, %v6106_v53 }
 0x856   : > { %v6109_v29 = vpop.f32.mrb[72].mxu1 }
 0x857   : > { %v2220_v18 = vpop.f32.mrb[73].mxu1 }
 0x858   : > { %6133 = vmatprep.mubr.msk.f32.mxu0 %vm1284_vm11, %v2220_v18 }
 0x859   : > { %6134 = vmatmul.mubr.msk.f32.gmra.mrb[60].mxu0 %vm1284_vm11, %v6109_v29 }
 0x85a   : > { %v6112_v2 = vpop.f32.mrb[74].mxu1 }
 0x85b   : > { %v2230_v21 = vpop.f32.mrb[75].mxu1 }
 0x85c   : > { %6136 = vmatprep.mubr.msk.f32.mxu0 %vm1284_vm11, %v2230_v21 }
 0x85d   : > { %6137 = vmatmul.mubr.msk.f32.gmra.mrb[62].mxu0 %vm1284_vm11, %v6112_v2 }
 0x85e   : > { %v6115_v49 = vpop.f32.mrb[76].mxu1 }
 0x85f   : > { %v2240_v17 = vpop.f32.mrb[77].mxu1 }
 0x860   : > { %6139 = vmatprep.mubr.msk.f32.mxu0 %vm1284_vm11, %v2240_v17 }
 0x861   : > { %6140 = vmatmul.mubr.msk.f32.gmra.mrb[64].mxu0 %vm1284_vm11, %v6115_v49 }
 0x862   : > { %v6146_v57 = vpop.f32.mrb[78].mxu1  ;;  %6200 = vmatprep.mubr.msk.f32.mxu0 %vm7352_vm12, %v9474_v27 }
 0x863   : > { %v2700_v24 = vmul.f32 %v6146_v57, %v7987_v20  ;;  %v2620_v54 = vpop.f32.mrb[79].mxu1 }
 0x864   : > { %v2699_v15 = vmul.f32 %v2620_v54, %v7995_v1 }
 0x866   : > { %v6821_v3 = vpack.c.bf16 %v2700_v24, %v2699_v15  ;;  %v6149_v43 = vpop.f32.mrb[80].mxu1 }
 0x867   : > { %v2702_v22 = vmul.f32 %v6149_v43, %v8005_v37  ;;  %v2630_v0 = vpop.f32.mrb[81].mxu1 }
 0x868   : > { %v2701_v63 = vmul.f32 %v2630_v0, %v8012_v14  ;;  %6822 = vmatpush3.bf16.msra.mxu0 %v6821_v3 }
 0x869   : > { %6823 = vmatprep.subr.bf16.mxu0 %v9466_v25 }
 0x86a   : > { %v6824_v60 = vpack.c.bf16 %v2702_v22, %v2701_v63  ;;  %v6152_v53 = vpop.f32.mrb[82].mxu1 }
 0x86b   : > { %v2704_v56 = vmul.f32 %v6152_v53, %v8025_v32  ;;  %v2640_v29 = vpop.f32.mrb[83].mxu1  ;;  %v9585_v53 = vld [vmem:[#allocation5_spill] sm:$0xff] }
 0x86c   : > { %v2703_v20 = vmul.f32 %v2640_v29, %v9539_v59  ;;  %6825 = vmatpush3.bf16.msra.mxu0 %v6824_v60  ;;  %v9590_v29 = vld [vmem:[#allocation51_spill] sm:$0xff] }
 0x86d   : > { %6826 = vmatprep.subr.bf16.mxu0 %v9466_v25 }
 0x86e   : > { %v6827_v1 = vpack.c.bf16 %v2704_v56, %v2703_v20  ;;  %v6155_v18 = vpop.f32.mrb[84].mxu1  ;;  %v9589_v56 = vld [vmem:[#allocation49_spill] sm:$0xff] }
 0x86f   : > { %v2706_v37 = vmul.f32 %v6155_v18, %v9540_v34  ;;  %v2650_v2 = vpop.f32.mrb[85].mxu1  ;;  %v9591_v20 = vld [vmem:[#allocation53_spill] sm:$0xff] }
 0x870   : > { %v2705_v14 = vmul.f32 %v2650_v2, %v9541_v5  ;;  %6828 = vmatpush3.bf16.msra.mxu0 %v6827_v1  ;;  %v9592_v1 = vld [vmem:[#allocation55_spill] sm:$0xff]  ;;  %v9593_v18 = vld [vmem:[#allocation57_spill] sm:$0xff]  ;;  %v9595_v2 = vld [vmem:[#allocation60_spill] sm:$0xff] }
 0x871   : > { %6829 = vmatprep.subr.bf16.mxu0 %v9466_v25 }
 0x872   : > { %v6830_v21 = vpack.c.bf16 %v2706_v37, %v2705_v14  ;;  %v6158_v49 = vpop.f32.mrb[86].mxu1  ;;  %v9594_v37 = vld [vmem:[#allocation59_spill] sm:$0xff]  ;;  %v9596_v14 = vld [vmem:[#allocation61_spill] sm:$0xff] }
 0x873   : > { %v2708_v32 = vmul.f32 %v6158_v49, %v9542_v40  ;;  %v2660_v17 = vpop.f32.mrb[87].mxu1  ;;  %v9598_v49 = vld [vmem:[#allocation63_spill] sm:$0xff] }
 0x874   : > { %v2707_v59 = vmul.f32 %v2660_v17, %v9543_v23  ;;  %6831 = vmatpush3.bf16.msra.mxu0 %v6830_v21  ;;  %v9597_v21 = vld [vmem:[#allocation62_spill] sm:$0xff]  ;;  %v9600_v17 = vld [vmem:[#allocation65_spill] sm:$0xff] }
 0x875   : > { %6832 = vmatprep.subr.bf16.mxu0 %v9466_v25 }
 0x876   : > { %v6833_v57 = vpack.c.bf16 %v2708_v32, %v2707_v59  ;;  %v6161_v24 = vpop.f32.mrb[88].mxu1  ;;  %v9599_v32 = vld [vmem:[#allocation64_spill] sm:$0xff]  ;;  %v9601_v59 = vld [vmem:[#allocation66_spill] sm:$0xff] }
 0x877   : > { %v2710_v34 = vmul.f32 %v6161_v24, %v9544_v51  ;;  %v2670_v54 = vpop.f32.mrb[89].mxu1  ;;  %v8639_v24 = vld [vmem:[%s9368_s3 + $0x8] sm:$0xff] }
 0x878   : > { %v2709_v5 = vmul.f32 %v2670_v54, %v9545_v6  ;;  %6834 = vmatpush3.bf16.msra.mxu0 %v6833_v57 }
 0x879   : > { %6835 = vmatprep.subr.bf16.mxu0 %v9466_v25 }
 0x87a   : > { %v6836_v15 = vpack.c.bf16 %v2710_v34, %v2709_v5  ;;  %v6164_v3 = vpop.f32.mrb[90].mxu1  ;;  %v8647_v5 = vld [vmem:[%s9368_s3] sm:$0xff] }
 0x87b   : > { %v2712_v40 = vmul.f32 %v6164_v3, %v9546_v7  ;;  %v2680_v43 = vpop.f32.mrb[91].mxu1  ;;  %v9588_v7 = vld [vmem:[#allocation47_spill] sm:$0xff] }
 0x87c   : > { %v2711_v23 = vmul.f32 %v2680_v43, %v9547_v9  ;;  %6837 = vmatpush3.bf16.msra.mxu0 %v6836_v15  ;;  %v8597_v9 = vld [vmem:[%s9367_s2] sm:$0xff]  ;;  %v8657_v43 = vld [vmem:[%s9368_s3 + $0x18] sm:$0xff] }
 0x87d   : > { %6838 = vmatprep.subr.bf16.mxu0 %v9466_v25  ;;  %v8765_v3 = vld [vmem:[%s9368_s3 + $0x78] sm:$0xff] }
 0x87e   : > { %v6839_v22 = vpack.c.bf16 %v2712_v40, %v2711_v23  ;;  %v6167_v0 = vpop.f32.mrb[92].mxu1 }
 0x87f   : > { %v2714_v51 = vmul.f32 %v6167_v0, %v8128_v45  ;;  %v2690_v63 = vpop.f32.mrb[93].mxu1  ;;  %v9586_v45 = vld [vmem:[#allocation41_spill] sm:$0xff]  ;;  %v8665_v0 = vld [vmem:[%s9368_s3 + $0x10] sm:$0xff] }
 0x880   : > { %v2713_v6 = vmul.f32 %v2690_v63, %v8133_v47  ;;  %6840 = vmatpush3.bf16.msra.mxu0 %v6839_v22  ;;  %v9587_v47 = vld [vmem:[#allocation45_spill] sm:$0xff] }
 0x881   : > { %6841 = vmatprep.subr.bf16.mxu0 %v9466_v25 }
 0x882   : > { %v6842_v60 = vpack.c.bf16 %v2714_v51, %v2713_v6 }
 0x884   : > { %6843 = vmatpush3.bf16.msra.mxu0 %v6842_v60  ;;  %v8675_v60 = vld [vmem:[%s9368_s3 + $0x28] sm:$0xff] }
 0x885   : > { %6238 = vmatprep.subr.mxu0 %v9585_v53 }
 0x887   : > { %6201 = vmatmul.mubr.f32.vlgmr.msra.gmra.mrb[66].mxu0 %v8597_v9 }
 0x888   : > { %6239 = vmatpush3.msra.mxu0 %v9585_v53  ;;  %6240 = vmatprep.mubr.msk.f32.mxu0 %vm1284_vm11, %v9586_v45 }
 0x889   : > { %6868 = vmatprep.subr.bf16.mxu0 %v9466_v25 }
 0x88b   : > { %6241 = vmatmul.mubr.msk.f32.vlgmr.msra.gmra.mrb[68].mxu0 %vm1284_vm11, %v9587_v47  ;;  %v8683_v47 = vld [vmem:[%s9368_s3 + $0x20] sm:$0xff] }
 0x88c   : > { %6243 = vmatprep.mubr.msk.f32.mxu0 %vm1284_vm11, %v9588_v7 }
 0x88f   : > { %6244 = vmatmul.mubr.msk.f32.gmra.mrb[70].mxu0 %vm1284_vm11, %v9589_v56  ;;  %v8755_v56 = vld [vmem:[%s9368_s3 + $0x60] sm:$0xff] }
 0x890   : > { %6246 = vmatprep.mubr.msk.f32.mxu0 %vm1284_vm11, %v9590_v29 }
 0x893   : > { %6247 = vmatmul.mubr.msk.f32.gmra.mrb[72].mxu0 %vm1284_vm11, %v9591_v20  ;;  %v8693_v20 = vld [vmem:[%s9368_s3 + $0x38] sm:$0xff] }
 0x894   : > { %6249 = vmatprep.mubr.msk.f32.mxu0 %vm1284_vm11, %v9592_v1 }
 0x897   : > { %6250 = vmatmul.mubr.msk.f32.gmra.mrb[74].mxu0 %vm1284_vm11, %v9593_v18 }
 0x898   : > { %6252 = vmatprep.mubr.msk.f32.mxu0 %vm1284_vm11, %v9594_v37  ;;  %v8701_v37 = vld [vmem:[%s9368_s3 + $0x30] sm:$0xff] }
 0x89b   : > { %6253 = vmatmul.mubr.msk.f32.gmra.mrb[76].mxu0 %vm1284_vm11, %v9595_v2 }
 0x89c   : > { %6255 = vmatprep.mubr.msk.f32.mxu0 %vm1284_vm11, %v9596_v14 }
 0x89f   : > { %6256 = vmatmul.mubr.msk.f32.gmra.mrb[78].mxu0 %vm1284_vm11, %v9597_v21 }
 0x8a0   : > { %6258 = vmatprep.mubr.msk.f32.mxu0 %vm1284_vm11, %v9598_v49  ;;  %v8711_v49 = vld [vmem:[%s9368_s3 + $0x48] sm:$0xff] }
 0x8a3   : > { %6259 = vmatmul.mubr.msk.f32.gmra.mrb[80].mxu0 %vm1284_vm11, %v9599_v32 }
 0x8a4   : > { %6261 = vmatprep.mubr.msk.f32.mxu0 %vm1284_vm11, %v9600_v17 }
 0x8a7   : > { %6262 = vmatmul.mubr.msk.f32.gmra.mrb[82].mxu0 %vm1284_vm11, %v9601_v59  ;;  %v8719_v59 = vld [vmem:[%s9368_s3 + $0x40] sm:$0xff] }
 0x8a8   : > { %6296 = vmatprep.mubr.msk.f32.mxu0 %vm7352_vm12, %v9474_v27 }
 0x918   : > { %v6120_v57 = vpop.f32.mrb[50].mxu0 }
 0x919   : > { %v8642_v34 = vmul.f32 %v8639_v24, %v6120_v57  ;;  %v2363_v54 = vpop.f32.mrb[51].mxu0 }
 0x91a   : > { %v8650_v15 = vmul.f32 %v8647_v5, %v2363_v54  ;;  %v8747_v54 = vld [vmem:[%s9368_s3 + $0x68] sm:$0xff] }
 0x91b   : > { %9602 = vst [vmem:[#allocation29_spill] sm:$0xff] %v8642_v34 }
 0x91c   : > { %9603 = vst [vmem:[#allocation31_spill] sm:$0xff] %v8650_v15  ;;  %v6123_v40 = vpop.f32.mrb[52].mxu0 }
 0x91d   : > { %v8660_v23 = vmul.f32 %v8657_v43, %v6123_v40  ;;  %v2373_v22 = vpop.f32.mrb[53].mxu0 }
 0x91e   : > { %v8668_v51 = vmul.f32 %v8665_v0, %v2373_v22  ;;  %v8729_v22 = vld [vmem:[%s9368_s3 + $0x58] sm:$0xff] }
 0x91f   : > { %9604 = vst [vmem:[#allocation32_spill] sm:$0xff] %v8660_v23 }
 0x920   : > { %9605 = vst [vmem:[#allocation35_spill] sm:$0xff] %v8668_v51  ;;  %v6126_v6 = vpop.f32.mrb[54].mxu0 }
 0x921   : > { %v8678_v53 = vmul.f32 %v8675_v60, %v6126_v6  ;;  %v2383_v45 = vpop.f32.mrb[55].mxu0 }
 0x922   : > { %v8686_v7 = vmul.f32 %v8683_v47, %v2383_v45 }
 0x923   : > { %9606 = vst [vmem:[#allocation36_spill] sm:$0xff] %v8678_v53 }
 0x924   : > { %9607 = vst [vmem:[#allocation38_spill] sm:$0xff] %v8686_v7  ;;  %v6129_v29 = vpop.f32.mrb[56].mxu0 }
 0x925   : > { %v8696_v1 = vmul.f32 %v8693_v20, %v6129_v29  ;;  %v2393_v18 = vpop.f32.mrb[57].mxu0  ;;  %v8737_v29 = vld [vmem:[%s9368_s3 + $0x50] sm:$0xff] }
 0x926   : > { %v8704_v2 = vmul.f32 %v8701_v37, %v2393_v18 }
 0x927   : > { %9608 = vst [vmem:[#allocation39_spill] sm:$0xff] %v8696_v1 }
 0x928   : > { %9609 = vst [vmem:[#allocation42_spill] sm:$0xff] %v8704_v2  ;;  %v6132_v21 = vpop.f32.mrb[58].mxu0 }
 0x929   : > { %v8714_v32 = vmul.f32 %v8711_v49, %v6132_v21  ;;  %v2403_v17 = vpop.f32.mrb[59].mxu0 }
 0x92a   : > { %v8722_v57 = vmul.f32 %v8719_v59, %v2403_v17 }
 0x92b   : > { %9610 = vst [vmem:[#allocation43_spill] sm:$0xff] %v8714_v32 }
 0x92c   : > { %9611 = vst [vmem:[#allocation6_spill] sm:$0xff] %v8722_v57  ;;  %v6135_v40 = vpop.f32.mrb[60].mxu0 }
 0x92d   : > { %v8732_v6 = vmul.f32 %v8729_v22, %v6135_v40  ;;  %v2413_v45 = vpop.f32.mrb[61].mxu0 }
 0x92e   : > { %v8740_v18 = vmul.f32 %v8737_v29, %v2413_v45 }
 0x92f   : > { %9612 = vst [vmem:[#allocation7_spill] sm:$0xff] %v8732_v6  ;;  %v8773_v6 = vld [vmem:[%s9368_s3 + $0x70] sm:$0xff] }
 0x930   : > { %9613 = vst [vmem:[#allocation4_spill] sm:$0xff] %v8740_v18  ;;  %v6138_v17 = vpop.f32.mrb[62].mxu0 }
 0x931   : > { %v8750_v40 = vmul.f32 %v8747_v54, %v6138_v17  ;;  %v2423_v14 = vpop.f32.mrb[63].mxu0 }
 0x932   : > { %v8758_v45 = vmul.f32 %v8755_v56, %v2423_v14 }
 0x933   : > { %9614 = vst [vmem:[#allocation8_spill] sm:$0xff] %v8750_v40 }
 0x934   : > { %9615 = vst [vmem:[#allocation9_spill] sm:$0xff] %v8758_v45  ;;  %v6141_v63 = vpop.f32.mrb[64].mxu0 }
 0x935   : > { %v8768_v17 = vmul.f32 %v8765_v3, %v6141_v63  ;;  %v2433_v18 = vpop.f32.mrb[65].mxu0 }
 0x936   : > { %v8776_v14 = vmul.f32 %v8773_v6, %v2433_v18 }
 0x937   : > { %9616 = vst [vmem:[#allocation10_spill] sm:$0xff] %v8768_v17 }
 0x938   : > { %9617 = vst [vmem:[#allocation11_spill] sm:$0xff] %v8776_v14 }
 0x95a   : > { %v2781_v45 = vpop.f32.mrb[66].mxu0 }
 0x95b   : > { %v6202_v40 = vpop.f32.mrb[67].mxu0  ;;  %6236 = vmatmul.mubr.f32.vlgmr.msra.gmra.mrb[94].mxu1 %v2781_v45 }
 0x95c   : > { %6894 = vmatpush3.bf16.msra.mxu1 %v7800_v8  ;;  %6331 = vmatprep.mubr.msk.f32.mxu1 %vm7352_vm12, %v9474_v27 }
 0x95d   : > { %6895 = vmatprep.subr.bf16.mxu1 %v9466_v25 }
 0x95e   : > { %v6242_v63 = vpop.f32.mrb[68].mxu0 }
 0x95f   : > { %v3081_v57 = vmul.f32 %v8639_v24, %v6242_v63  ;;  %v3001_v32 = vpop.f32.mrb[69].mxu0 }
 0x960   : > { %v3080_v18 = vmul.f32 %v8647_v5, %v3001_v32  ;;  %6897 = vmatpush3.bf16.msra.mxu1 %v7816_v13 }
 0x961   : > { %6898 = vmatprep.subr.bf16.mxu1 %v9466_v25 }
 0x962   : > { %v6869_v21 = vpack.c.bf16 %v3081_v57, %v3080_v18  ;;  %v6245_v40 = vpop.f32.mrb[70].mxu0 }
 0x963   : > { %v3083_v45 = vmul.f32 %v8657_v43, %v6245_v40  ;;  %v3011_v14 = vpop.f32.mrb[71].mxu0 }
 0x964   : > { %v3082_v17 = vmul.f32 %v8665_v0, %v3011_v14  ;;  %6870 = vmatpush3.bf16.msra.mxu0 %v6869_v21  ;;  %6900 = vmatpush3.bf16.msra.mxu1 %v7832_v30 }
 0x965   : > { %6871 = vmatprep.subr.bf16.mxu0 %v9466_v25  ;;  %6901 = vmatprep.subr.bf16.mxu1 %v9466_v25 }
 0x966   : > { %v6872_v63 = vpack.c.bf16 %v3083_v45, %v3082_v17  ;;  %v6248_v32 = vpop.f32.mrb[72].mxu0 }
 0x967   : > { %v3085_v2 = vmul.f32 %v8675_v60, %v6248_v32  ;;  %v3021_v1 = vpop.f32.mrb[73].mxu0 }
 0x968   : > { %v3084_v57 = vmul.f32 %v8683_v47, %v3021_v1  ;;  %6873 = vmatpush3.bf16.msra.mxu0 %v6872_v63  ;;  %6903 = vmatpush3.bf16.msra.mxu1 %v7848_v35 }
 0x969   : > { %6874 = vmatprep.subr.bf16.mxu0 %v9466_v25  ;;  %6904 = vmatprep.subr.bf16.mxu1 %v9466_v25 }
 0x96a   : > { %v6875_v21 = vpack.c.bf16 %v3085_v2, %v3084_v57  ;;  %v6251_v14 = vpop.f32.mrb[74].mxu0 }
 0x96b   : > { %v3087_v18 = vmul.f32 %v8693_v20, %v6251_v14  ;;  %v3031_v40 = vpop.f32.mrb[75].mxu0 }
 0x96c   : > { %v3086_v17 = vmul.f32 %v8701_v37, %v3031_v40  ;;  %6876 = vmatpush3.bf16.msra.mxu0 %v6875_v21  ;;  %6906 = vmatpush3.bf16.msra.mxu1 %v9576_v55 }
 0x96d   : > { %6877 = vmatprep.subr.bf16.mxu0 %v9466_v25  ;;  %6907 = vmatprep.subr.bf16.mxu1 %v9466_v25 }
 0x96e   : > { %v6878_v1 = vpack.c.bf16 %v3087_v18, %v3086_v17  ;;  %v6254_v45 = vpop.f32.mrb[76].mxu0 }
 0x96f   : > { %v3089_v63 = vmul.f32 %v8711_v49, %v6254_v45  ;;  %v3041_v32 = vpop.f32.mrb[77].mxu0 }
 0x970   : > { %v3088_v2 = vmul.f32 %v8719_v59, %v3041_v32  ;;  %6879 = vmatpush3.bf16.msra.mxu0 %v6878_v1  ;;  %6909 = vmatpush3.bf16.msra.mxu1 %v9579_v10 }
 0x971   : > { %6880 = vmatprep.subr.bf16.mxu0 %v9466_v25  ;;  %6910 = vmatprep.subr.bf16.mxu1 %v9466_v25 }
 0x972   : > { %v6881_v57 = vpack.c.bf16 %v3089_v63, %v3088_v2  ;;  %v6257_v21 = vpop.f32.mrb[78].mxu0 }
 0x973   : > { %v3091_v14 = vmul.f32 %v8729_v22, %v6257_v21  ;;  %v3051_v40 = vpop.f32.mrb[79].mxu0 }
 0x974   : > { %v3090_v18 = vmul.f32 %v8737_v29, %v3051_v40  ;;  %6882 = vmatpush3.bf16.msra.mxu0 %v6881_v57  ;;  %6912 = vmatpush3.bf16.msra.mxu1 %v9582_v52 }
 0x975   : > { %6883 = vmatprep.subr.bf16.mxu0 %v9466_v25  ;;  %6913 = vmatprep.subr.bf16.mxu1 %v9466_v25 }
 0x976   : > { %v6884_v17 = vpack.c.bf16 %v3091_v14, %v3090_v18  ;;  %v6260_v1 = vpop.f32.mrb[80].mxu0 }
 0x977   : > { %v3093_v45 = vmul.f32 %v8747_v54, %v6260_v1  ;;  %v3061_v32 = vpop.f32.mrb[81].mxu0 }
 0x978   : > { %v3092_v63 = vmul.f32 %v8755_v56, %v3061_v32  ;;  %6885 = vmatpush3.bf16.msra.mxu0 %v6884_v17  ;;  %6915 = vmatpush3.bf16.msra.mxu1 %v9584_v42  ;;  %v8825_v17 = vld [vmem:[%s9366_s1] sm:$0xff] }
 0x979   : > { %6886 = vmatprep.subr.bf16.mxu0 %v9466_v25  ;;  %6360 = vmatprep.subr.mxu1 %v8597_v9  ;;  %9618 = vst [vmem:[#allocation12_spill] sm:$0xff] %v8825_v17 }
 0x97a   : > { %v6887_v2 = vpack.c.bf16 %v3093_v45, %v3092_v63  ;;  %v6263_v57 = vpop.f32.mrb[82].mxu0 }
 0x97b   : > { %v3095_v21 = vmul.f32 %v8765_v3, %v6263_v57  ;;  %v3071_v40 = vpop.f32.mrb[83].mxu0 }
 0x97c   : > { %v3094_v14 = vmul.f32 %v8773_v6, %v3071_v40  ;;  %6888 = vmatpush3.bf16.msra.mxu0 %v6887_v2 }
 0x97d   : > { %6889 = vmatprep.subr.bf16.mxu0 %v9466_v25 }
 0x97e   : > { %v6890_v18 = vpack.c.bf16 %v3095_v21, %v3094_v14 }
 0x980   : > { %6891 = vmatpush3.bf16.msra.mxu0 %v6890_v18 }
 0x983   : > { %6297 = vmatmul.mubr.f32.vlgmr.msra.gmra.mrb[84].mxu0 %v8597_v9 }
 0x984   : > { %6336 = vmatprep.mubr.msk.f32.mxu0 %vm1284_vm11, %v8825_v17 }
 0xa2e   : > { %v2851_v1 = vpop.f32.mrb[94].mxu1 }
 0xa2f   : > { %v6237_v45 = vpop.f32.mrb[95].mxu1  ;;  %v3238_v2 = vsel %vm1284_vm11, %v2851_v1, -inf }
 0xa30   : > { %v3239_v57 = vrot.slane %v3238_v2, 4 }
 0xa32   : > { %v3240_v21 = vmax.f32 %v3238_v2, %v3239_v57 }
 0xa34   : > { %v3241_v40 = vrot.slane %v3240_v21, 2 }
 0xa36   : > { %v3242_v14 = vmax.f32 %v3240_v21, %v3241_v40 }
 0xa38   : > { %v3243_v18 = vrot.slane %v3242_v14, 1 }
 0xa3a   : > { %v3244_v7 = vmax.f32 %v3242_v14, %v3243_v18 }
 0xa3c   : > { %v3245_v53 = vsub.f32 %v2851_v1, %v3244_v7 }
 0xa3e   : > { %v3246_v51 = vmul.f32 1.442695, %v3245_v53 }
 0xa40   : > { %7267 = vpow2.f32 %v3246_v51 }
 0xa4a   : > { %v7268_v34 = vpop.eup %7267 }
 0xa4b   : > { %v3248_v46 = vsel %vm1284_vm11, %v7268_v34, 0.0 }
 0xa4c   : > { %v3249_v2 = vrot.slane %v3248_v46, 4 }
 0xa4e   : > { %v3250_v40 = vadd.f32 %v3249_v2, %v3248_v46  ;;  %v5252_v46 = vld [vmem:[%s9369_s4 + $0x8] sm:$0xff] }
 0xa50   : > { %v3251_v53 = vrot.slane %v3250_v40, 2 }
 0xa52   : > { %v3252_v51 = vadd.f32 %v3251_v53, %v3250_v40  ;;  %v8858_v40 = vld [vmem:[%s9366_s1 + $0x18] sm:$0xff]  ;;  %v8872_v53 = vld [vmem:[%s9366_s1 + $0x28] sm:$0xff] }
 0xa54   : > { %v3253_v1 = vrot.slane %v3252_v51, 1 }
 0xa56   : > { %v3162_v32 = vpop.f32.mrb[84].mxu0 }
 0xa57   : > { %v6298_v63 = vpop.f32.mrb[85].mxu0  ;;  %6332 = vmatmul.mubr.f32.vlgmr.msra.gmra.mrb[96].mxu1 %v3162_v32 }
 0xa58   : > { %6361 = vmatpush3.msra.mxu1 %v8597_v9 }
 0xa59   : > { %6916 = vmatprep.subr.bf16.mxu1 %v9466_v25 }
 0xb2a   : > { %v3232_v23 = vpop.f32.mrb[96].mxu1 }
 0xb2b   : > { %v3258_v45 = vsel %vm1284_vm11, %v3232_v23, -inf  ;;  %v6333_v63 = vpop.f32.mrb[97].mxu1 }
 0xb2c   : > { %v3259_v32 = vrot.slane %v3258_v45, 4 }
 0xb2e   : > { %v3260_v15 = vmax.f32 %v3258_v45, %v3259_v32  ;;  %v3254_v45 = vadd.f32 %v3253_v1, %v3252_v51  ;;  %v8879_v51 = vld [vmem:[%s9366_s1 + $0x30] sm:$0xff]  ;;  %v8893_v1 = vld [vmem:[%s9366_s1 + $0x40] sm:$0xff] }
 0xb30   : > { %v3261_v17 = vrot.slane %v3260_v15, 2 }
 0xb32   : > { %v3262_v62 = vmax.f32 %v3260_v15, %v3261_v17 }
 0xb34   : > { %v3263_v16 = vrot.slane %v3262_v62, 1 }
 0xb36   : > { %v3264_v57 = vmax.f32 %v3262_v62, %v3263_v16 }
 0xb38   : > { %v3265_v21 = vsub.f32 %v3232_v23, %v3264_v57 }
 0xb3a   : > { %v3266_v14 = vmul.f32 1.442695, %v3265_v21 }
 0xb3c   : > { %7269 = vpow2.f32 %v3266_v14  ;;  %v8865_v14 = vld [vmem:[%s9366_s1 + $0x20] sm:$0xff] }
 0xb3d   : > { %7271 = vrcp.f32 %v3254_v45  ;;  %v8914_v45 = vld [vmem:[%s9366_s1 + $0x58] sm:$0xff] }
 0xb46   : > { %v7270_v7 = vpop.eup %7269 }
 0xb47   : > { %v3268_v18 = vsel %vm1284_vm11, %v7270_v7, 0.0  ;;  %v7272_v16 = vpop.eup %7271 }
 0xb48   : > { %v3269_v63 = vrot.slane %v3268_v18, 4  ;;  %v3256_v62 = vmul.f32 %v7272_v16, %v7268_v34  ;;  %v8850_v34 = vld [vmem:[%s9366_s1 + $0x10] sm:$0xff]  ;;  %v8942_v16 = vld [vmem:[%s9366_s1 + $0x78] sm:$0xff] }
 0xb49   : > { %9620 = vst [vmem:[#allocation13_spill] sm:$0xff] %v8942_v16 }
 0xb4a   : > { %v3270_v32 = vadd.f32 %v3269_v63, %v3268_v18  ;;  %v3257_v2 = vadd.f32 %v5252_v46, %v3256_v62  ;;  %v8900_v18 = vld [vmem:[%s9366_s1 + $0x48] sm:$0xff]  ;;  %v8907_v63 = vld [vmem:[%s9366_s1 + $0x50] sm:$0xff] }
 0xb4b   : > { %v9621_v62 = vld [vmem:[#allocation69_spill] sm:$0xff]  ;;  %v9622_v46 = vld [vmem:[#allocation70_spill] sm:$0xff] }
 0xb4c   : > { %v3271_v11 = vrot.slane %v3270_v32, 2 }
 0xb4e   : > { %v3272_v15 = vadd.f32 %v3271_v11, %v3270_v32  ;;  %v8841_v11 = vld [vmem:[%s9366_s1 + $0x8] sm:$0xff]  ;;  %v8921_v32 = vld [vmem:[%s9366_s1 + $0x60] sm:$0xff] }
 0xb50   : > { %v3273_v17 = vrot.slane %v3272_v15, 1 }
 0xb52   : > { %v3274_v19 = vadd.f32 %v3273_v17, %v3272_v15  ;;  %v8928_v15 = vld [vmem:[%s9366_s1 + $0x68] sm:$0xff]  ;;  %v8935_v17 = vld [vmem:[%s9366_s1 + $0x70] sm:$0xff] }
 0xb54   : > { %7273 = vrcp.f32 %v3274_v19  ;;  %v9619_v19 = vld [vmem:[#allocation67_spill] sm:$0xff] }
 0xb5e   : > { %v7274_v23 = vpop.eup %7273 }
 0xb5f   : > { %v3276_v57 = vmul.f32 %v7274_v23, %v7270_v7  ;;  %v8886_v7 = vld [vmem:[%s9366_s1 + $0x38] sm:$0xff] }
 0xb60   : > { %v9623_v23 = vld [vmem:[#allocation71_spill] sm:$0xff] }
 0xb61   : > { %v3277_v21 = vadd.f32 %v3276_v57, %v3257_v2  ;;  %v9624_v2 = vld [vmem:[#allocation72_spill] sm:$0xff]  ;;  %v9625_v57 = vld [vmem:[#allocation73_spill] sm:$0xff] }
 0xb63   : > { %6334 = vmatprep.subr.mxu0 %v3277_v21 }
 0xb64   : > { %6335 = vmatpush3.msra.mxu0 %v3277_v21  ;;  %v9626_v21 = vld [vmem:[#allocation74_spill] sm:$0xff] }
 0xb65   : > { %6337 = vmatmul.mubr.msk.f32.vlgmr.msra.gmra.mrb[86].mxu0 %vm1284_vm11, %v8841_v11  ;;  %6386 = vmatprep.subr.mxu0 %v9619_v19 }
 0xb66   : > { %6387 = vmatpush3.msra.mxu0 %v9619_v19  ;;  %6339 = vmatprep.mubr.msk.f32.mxu0 %vm1284_vm11, %v8850_v34  ;;  %v9627_v19 = vld [vmem:[#allocation75_spill] sm:$0xff] }
 0xb67   : > { %6940 = vmatprep.subr.bf16.mxu0 %v9466_v25 }
 0xb69   : > { %6340 = vmatmul.mubr.msk.f32.gmra.mrb[88].mxu0 %vm1284_vm11, %v8858_v40 }
 0xb6a   : > { %6342 = vmatprep.mubr.msk.f32.mxu0 %vm1284_vm11, %v8865_v14 }
 0xb6d   : > { %6343 = vmatmul.mubr.msk.f32.gmra.mrb[90].mxu0 %vm1284_vm11, %v8872_v53 }
 0xb6e   : > { %6345 = vmatprep.mubr.msk.f32.mxu0 %vm1284_vm11, %v8879_v51 }
 0xb71   : > { %6346 = vmatmul.mubr.msk.f32.gmra.mrb[92].mxu0 %vm1284_vm11, %v8886_v7 }
 0xb72   : > { %6348 = vmatprep.mubr.msk.f32.mxu0 %vm1284_vm11, %v8893_v1 }
 0xb75   : > { %6349 = vmatmul.mubr.msk.f32.gmra.mrb[94].mxu0 %vm1284_vm11, %v8900_v18 }
 0xb76   : > { %6351 = vmatprep.mubr.msk.f32.mxu0 %vm1284_vm11, %v8907_v63 }
 0xb79   : > { %6352 = vmatmul.mubr.msk.f32.gmra.mrb[96].mxu0 %vm1284_vm11, %v8914_v45 }
 0xb7a   : > { %6354 = vmatprep.mubr.msk.f32.mxu0 %vm1284_vm11, %v8921_v32 }
 0xb7d   : > { %6355 = vmatmul.mubr.msk.f32.gmra.mrb[98].mxu0 %vm1284_vm11, %v8928_v15 }
 0xb7e   : > { %6357 = vmatprep.mubr.msk.f32.mxu0 %vm1284_vm11, %v8935_v17 }
 0xb81   : > { %6358 = vmatmul.mubr.msk.f32.gmra.mrb[100].mxu0 %vm1284_vm11, %v8942_v16 }
 0xb82   : > { %6388 = vmatprep.mubr.msk.f32.mxu0 %vm1284_vm11, %v9621_v62 }
 0xb85   : > { %6389 = vmatmul.mubr.msk.f32.vlgmr.msra.gmra.mrb[102].mxu0 %vm1284_vm11, %v9622_v46 }
 0xb86   : > { %6391 = vmatprep.mubr.msk.f32.mxu0 %vm1284_vm11, %v9623_v23  ;;  %6942 = vmatpush3.bf16.msra.mxu0 %v7800_v8 }
 0xb87   : > { %6943 = vmatprep.subr.bf16.mxu0 %v9466_v25 }
 0xb89   : > { %6392 = vmatmul.mubr.msk.f32.gmra.mrb[104].mxu0 %vm1284_vm11, %v9624_v2 }
 0xb8a   : > { %6394 = vmatprep.mubr.msk.f32.mxu0 %vm1284_vm11, %v9625_v57  ;;  %6945 = vmatpush3.bf16.msra.mxu0 %v7816_v13 }
 0xb8b   : > { %6946 = vmatprep.subr.bf16.mxu0 %v9466_v25 }
 0xb8d   : > { %6395 = vmatmul.mubr.msk.f32.gmra.mrb[106].mxu0 %vm1284_vm11, %v9626_v21 }
 0xb8e   : > { %6397 = vmatprep.mubr.msk.f32.mxu0 %vm1284_vm11, %v9627_v19  ;;  %6948 = vmatpush3.bf16.msra.mxu0 %v7832_v30 }
 0xb8f   : > { %6949 = vmatprep.subr.bf16.mxu0 %v9466_v25 }
 0xb91   : > { %6398 = vmatmul.mubr.msk.f32.gmra.mrb[108].mxu0 %vm1284_vm11, %v8293_v12 }
 0xb92   : > { %6400 = vmatprep.mubr.msk.f32.mxu0 %vm1284_vm11, %v8298_v50  ;;  %6951 = vmatpush3.bf16.msra.mxu0 %v7848_v35 }
 0xb93   : > { %6952 = vmatprep.subr.bf16.mxu0 %v9466_v25 }
 0xb95   : > { %6401 = vmatmul.mubr.msk.f32.gmra.mrb[110].mxu0 %vm1284_vm11, %v8300_v44 }
 0xb96   : > { %6403 = vmatprep.mubr.msk.f32.mxu0 %vm1284_vm11, %v8308_v41  ;;  %6954 = vmatpush3.bf16.msra.mxu0 %v9576_v55 }
 0xb97   : > { %6955 = vmatprep.subr.bf16.mxu0 %v9466_v25 }
 0xb99   : > { %6404 = vmatmul.mubr.msk.f32.gmra.mrb[112].mxu0 %vm1284_vm11, %v8318_v4 }
 0xb9a   : > { %6406 = vmatprep.mubr.msk.f32.mxu0 %vm1284_vm11, %v8328_v28  ;;  %6957 = vmatpush3.bf16.msra.mxu0 %v9579_v10 }
 0xb9b   : > { %6958 = vmatprep.subr.bf16.mxu0 %v9466_v25 }
 0xb9d   : > { %6407 = vmatmul.mubr.msk.f32.gmra.mrb[114].mxu0 %vm1284_vm11, %v8338_v33 }
 0xb9e   : > { %6409 = vmatprep.mubr.msk.f32.mxu0 %vm1284_vm11, %v8348_v38  ;;  %6960 = vmatpush3.bf16.msra.mxu0 %v9582_v52 }
 0xb9f   : > { %6961 = vmatprep.subr.bf16.mxu0 %v9466_v25 }
 0xba1   : > { %6410 = vmatmul.mubr.msk.f32.gmra.mrb[116].mxu0 %vm1284_vm11, %v8358_v58 }
 0xba2   : > { %6963 = vmatpush3.bf16.msra.mxu0 %v9584_v42  ;;  %6479 = vmatprep.mubr.msk.f32.mxu0 %vm7352_vm12, %v9474_v27 }
 0xba3   : > { %6988 = vmatprep.subr.bf16.mxu0 %v9466_v25 }
 0xc38   : > { %v6338_v44 = vpop.f32.mrb[86].mxu0 }
 0xc39   : > { %v3344_v50 = vpop.f32.mrb[87].mxu0 }
 0xc3a   : > { %6362 = vmatprep.mubr.msk.f32.mxu1 %vm1284_vm11, %v3344_v50 }
 0xc3b   : > { %6363 = vmatmul.mubr.msk.f32.vlgmr.msra.gmra.mrb[98].mxu1 %vm1284_vm11, %v6338_v44 }
 0xc3c   : > { %v6341_v12 = vpop.f32.mrb[88].mxu0 }
 0xc3d   : > { %v3354_v41 = vpop.f32.mrb[89].mxu0 }
 0xc3e   : > { %6365 = vmatprep.mubr.msk.f32.mxu1 %vm1284_vm11, %v3354_v41 }
 0xc3f   : > { %6366 = vmatmul.mubr.msk.f32.gmra.mrb[100].mxu1 %vm1284_vm11, %v6341_v12 }
 0xc40   : > { %v6344_v4 = vpop.f32.mrb[90].mxu0 }
 0xc41   : > { %v3364_v28 = vpop.f32.mrb[91].mxu0 }
 0xc42   : > { %6368 = vmatprep.mubr.msk.f32.mxu1 %vm1284_vm11, %v3364_v28 }
 0xc43   : > { %6369 = vmatmul.mubr.msk.f32.gmra.mrb[102].mxu1 %vm1284_vm11, %v6344_v4 }
 0xc44   : > { %v6347_v33 = vpop.f32.mrb[92].mxu0 }
 0xc45   : > { %v3374_v38 = vpop.f32.mrb[93].mxu0 }
 0xc46   : > { %6371 = vmatprep.mubr.msk.f32.mxu1 %vm1284_vm11, %v3374_v38 }
 0xc47   : > { %6372 = vmatmul.mubr.msk.f32.gmra.mrb[104].mxu1 %vm1284_vm11, %v6347_v33 }
 0xc48   : > { %v6350_v58 = vpop.f32.mrb[94].mxu0 }
 0xc49   : > { %v3384_v62 = vpop.f32.mrb[95].mxu0 }
 0xc4a   : > { %6374 = vmatprep.mubr.msk.f32.mxu1 %vm1284_vm11, %v3384_v62 }
 0xc4b   : > { %6375 = vmatmul.mubr.msk.f32.gmra.mrb[106].mxu1 %vm1284_vm11, %v6350_v58 }
 0xc4c   : > { %v6353_v46 = vpop.f32.mrb[96].mxu0 }
 0xc4d   : > { %v3394_v23 = vpop.f32.mrb[97].mxu0 }
 0xc4e   : > { %6377 = vmatprep.mubr.msk.f32.mxu1 %vm1284_vm11, %v3394_v23 }
 0xc4f   : > { %6378 = vmatmul.mubr.msk.f32.gmra.mrb[108].mxu1 %vm1284_vm11, %v6353_v46 }
 0xc50   : > { %v6356_v2 = vpop.f32.mrb[98].mxu0 }
 0xc51   : > { %v3404_v57 = vpop.f32.mrb[99].mxu0 }
 0xc52   : > { %6380 = vmatprep.mubr.msk.f32.mxu1 %vm1284_vm11, %v3404_v57 }
 0xc53   : > { %6381 = vmatmul.mubr.msk.f32.gmra.mrb[110].mxu1 %vm1284_vm11, %v6356_v2 }
 0xc54   : > { %v6359_v21 = vpop.f32.mrb[100].mxu0 }
 0xc55   : > { %v3414_v19 = vpop.f32.mrb[101].mxu0 }
 0xc56   : > { %6383 = vmatprep.mubr.msk.f32.mxu1 %vm1284_vm11, %v3414_v19 }
 0xc57   : > { %6384 = vmatmul.mubr.msk.f32.gmra.mrb[112].mxu1 %vm1284_vm11, %v6359_v21 }
 0xc58   : > { %v6390_v44 = vpop.f32.mrb[102].mxu0  ;;  %6444 = vmatprep.mubr.msk.f32.mxu1 %vm7352_vm12, %v9474_v27 }
 0xc59   : > { %v3874_v50 = vmul.f32 %v8639_v24, %v6390_v44  ;;  %v3794_v12 = vpop.f32.mrb[103].mxu0 }
 0xc5a   : > { %v3873_v41 = vmul.f32 %v8647_v5, %v3794_v12 }
 0xc5c   : > { %v6917_v4 = vpack.c.bf16 %v3874_v50, %v3873_v41  ;;  %v6393_v28 = vpop.f32.mrb[104].mxu0 }
 0xc5d   : > { %v3876_v33 = vmul.f32 %v8657_v43, %v6393_v28  ;;  %v3804_v38 = vpop.f32.mrb[105].mxu0 }
 0xc5e   : > { %v3875_v58 = vmul.f32 %v8665_v0, %v3804_v38  ;;  %6918 = vmatpush3.bf16.msra.mxu1 %v6917_v4 }
 0xc5f   : > { %6919 = vmatprep.subr.bf16.mxu1 %v9466_v25 }
 0xc60   : > { %v6920_v62 = vpack.c.bf16 %v3876_v33, %v3875_v58  ;;  %v6396_v46 = vpop.f32.mrb[106].mxu0 }
 0xc61   : > { %v3878_v23 = vmul.f32 %v8675_v60, %v6396_v46  ;;  %v3814_v2 = vpop.f32.mrb[107].mxu0 }
 0xc62   : > { %v3877_v57 = vmul.f32 %v8683_v47, %v3814_v2  ;;  %6921 = vmatpush3.bf16.msra.mxu1 %v6920_v62 }
 0xc63   : > { %6922 = vmatprep.subr.bf16.mxu1 %v9466_v25 }
 0xc64   : > { %v6923_v21 = vpack.c.bf16 %v3878_v23, %v3877_v57  ;;  %v6399_v19 = vpop.f32.mrb[108].mxu0 }
 0xc65   : > { %v3880_v44 = vmul.f32 %v8693_v20, %v6399_v19  ;;  %v3824_v50 = vpop.f32.mrb[109].mxu0 }
 0xc66   : > { %v3879_v12 = vmul.f32 %v8701_v37, %v3824_v50  ;;  %6924 = vmatpush3.bf16.msra.mxu1 %v6923_v21 }
 0xc67   : > { %6925 = vmatprep.subr.bf16.mxu1 %v9466_v25 }
 0xc68   : > { %v6926_v41 = vpack.c.bf16 %v3880_v44, %v3879_v12  ;;  %v6402_v4 = vpop.f32.mrb[110].mxu0 }
 0xc69   : > { %v3882_v28 = vmul.f32 %v8711_v49, %v6402_v4  ;;  %v3834_v33 = vpop.f32.mrb[111].mxu0 }
 0xc6a   : > { %v3881_v38 = vmul.f32 %v8719_v59, %v3834_v33  ;;  %6927 = vmatpush3.bf16.msra.mxu1 %v6926_v41 }
 0xc6b   : > { %6928 = vmatprep.subr.bf16.mxu1 %v9466_v25 }
 0xc6c   : > { %v6929_v58 = vpack.c.bf16 %v3882_v28, %v3881_v38  ;;  %v6405_v62 = vpop.f32.mrb[112].mxu0 }
 0xc6d   : > { %v3884_v46 = vmul.f32 %v8729_v22, %v6405_v62  ;;  %v3844_v23 = vpop.f32.mrb[113].mxu0  ;;  %v9629_v62 = vld [vmem:[#allocation76_spill] sm:$0xff] }
 0xc6e   : > { %v3883_v2 = vmul.f32 %v8737_v29, %v3844_v23  ;;  %6930 = vmatpush3.bf16.msra.mxu1 %v6929_v58  ;;  %v9628_v58 = vld [vmem:[#allocation68_spill] sm:$0xff]  ;;  %v9637_v23 = vld [vmem:[#allocation93_spill] sm:$0xff] }
 0xc6f   : > { %6931 = vmatprep.subr.bf16.mxu1 %v9466_v25 }
 0xc70   : > { %v6932_v57 = vpack.c.bf16 %v3884_v46, %v3883_v2  ;;  %v6408_v21 = vpop.f32.mrb[114].mxu0  ;;  %v9631_v46 = vld [vmem:[#allocation81_spill] sm:$0xff]  ;;  %v9638_v2 = vld [vmem:[#allocation94_spill] sm:$0xff] }
 0xc71   : > { %v3886_v19 = vmul.f32 %v8747_v54, %v6408_v21  ;;  %v3854_v44 = vpop.f32.mrb[115].mxu0 }
 0xc72   : > { %v3885_v50 = vmul.f32 %v8755_v56, %v3854_v44  ;;  %6933 = vmatpush3.bf16.msra.mxu1 %v6932_v57 }
 0xc73   : > { %6934 = vmatprep.subr.bf16.mxu1 %v9466_v25 }
 0xc74   : > { %v6935_v12 = vpack.c.bf16 %v3886_v19, %v3885_v50  ;;  %v6411_v41 = vpop.f32.mrb[116].mxu0 }
 0xc75   : > { %v3888_v4 = vmul.f32 %v8765_v3, %v6411_v41  ;;  %v3864_v28 = vpop.f32.mrb[117].mxu0 }
 0xc76   : > { %v3887_v33 = vmul.f32 %v8773_v6, %v3864_v28  ;;  %6936 = vmatpush3.bf16.msra.mxu1 %v6935_v12 }
 0xc77   : > { %6937 = vmatprep.subr.bf16.mxu1 %v9466_v25 }
 0xc78   : > { %v6938_v38 = vpack.c.bf16 %v3888_v4, %v3887_v33 }
 0xc7a   : > { %6939 = vmatpush3.bf16.msra.mxu1 %v6938_v38 }
 0xc7b   : > { %6482 = vmatprep.subr.mxu1 %v9628_v58 }
 0xc7d   : > { %6445 = vmatmul.mubr.f32.vlgmr.msra.gmra.mrb[114].mxu1 %v8597_v9 }
 0xc7e   : > { %6483 = vmatpush3.msra.mxu1 %v9628_v58  ;;  %6484 = vmatprep.mubr.msk.f32.mxu1 %vm1284_vm11, %v8312_v39  ;;  %v9630_v39 = vld [vmem:[#allocation79_spill] sm:$0xff] }
 0xc7f   : > { %6964 = vmatprep.subr.bf16.mxu1 %v9466_v25 }
 0xc81   : > { %6485 = vmatmul.mubr.msk.f32.vlgmr.msra.gmra.mrb[116].mxu1 %vm1284_vm11, %v8320_v26  ;;  %v9632_v26 = vld [vmem:[#allocation84_spill] sm:$0xff] }
 0xc82   : > { %6487 = vmatprep.mubr.msk.f32.mxu1 %vm1284_vm11, %v8332_v31  ;;  %v9633_v31 = vld [vmem:[#allocation86_spill] sm:$0xff] }
 0xc85   : > { %6488 = vmatmul.mubr.msk.f32.gmra.mrb[118].mxu1 %vm1284_vm11, %v8340_v36  ;;  %v9634_v36 = vld [vmem:[#allocation89_spill] sm:$0xff] }
 0xc86   : > { %6490 = vmatprep.mubr.msk.f32.mxu1 %vm1284_vm11, %v8352_v48  ;;  %v9635_v48 = vld [vmem:[#allocation91_spill] sm:$0xff] }
 0xc89   : > { %6491 = vmatmul.mubr.msk.f32.gmra.mrb[120].mxu1 %vm1284_vm11, %v8360_v61  ;;  %v9636_v61 = vld [vmem:[#allocation92_spill] sm:$0xff] }
 0xc8a   : > { %6493 = vmatprep.mubr.msk.f32.mxu1 %vm1284_vm11, %v9629_v62 }
 0xc8d   : > { %6494 = vmatmul.mubr.msk.f32.gmra.mrb[122].mxu1 %vm1284_vm11, %v9630_v39 }
 0xc8e   : > { %6496 = vmatprep.mubr.msk.f32.mxu1 %vm1284_vm11, %v9631_v46 }
 0xc91   : > { %6497 = vmatmul.mubr.msk.f32.gmra.mrb[124].mxu1 %vm1284_vm11, %v9632_v26 }
 0xc92   : > { %6499 = vmatprep.mubr.msk.f32.mxu1 %vm1284_vm11, %v9633_v31 }
 0xc95   : > { %6500 = vmatmul.mubr.msk.f32.gmra.mrb[126].mxu1 %vm1284_vm11, %v9634_v36 }
 0xc96   : > { %6502 = vmatprep.mubr.msk.f32.mxu1 %vm1284_vm11, %v9635_v48 }
 0xc99   : > { %6503 = vmatmul.mubr.msk.f32.gmra.mrb[128].mxu1 %vm1284_vm11, %v9636_v61 }
 0xc9a   : > { %6505 = vmatprep.mubr.msk.f32.mxu1 %vm1284_vm11, %v9637_v23 }
 0xc9d   : > { %6506 = vmatmul.mubr.msk.f32.gmra.mrb[130].mxu1 %vm1284_vm11, %v9638_v2 }
 0xc9e   : > { %6540 = vmatprep.mubr.msk.f32.mxu1 %vm7352_vm12, %v9474_v27 }
 0xd0e   : > { %v6364_v57 = vpop.f32.mrb[98].mxu1 }
 0xd0f   : > { %v9076_v21 = vmul.f32 %v8639_v24, %v6364_v57  ;;  %v3537_v19 = vpop.f32.mrb[99].mxu1 }
 0xd10   : > { %v9079_v44 = vmul.f32 %v8647_v5, %v3537_v19 }
 0xd12   : > { %v6367_v12 = vpop.f32.mrb[100].mxu1 }
 0xd13   : > { %v9084_v41 = vmul.f32 %v8657_v43, %v6367_v12  ;;  %v3547_v4 = vpop.f32.mrb[101].mxu1 }
 0xd14   : > { %v9087_v28 = vmul.f32 %v8665_v0, %v3547_v4 }
 0xd16   : > { %v6370_v38 = vpop.f32.mrb[102].mxu1 }
 0xd17   : > { %v9092_v58 = vmul.f32 %v8675_v60, %v6370_v38  ;;  %v3557_v62 = vpop.f32.mrb[103].mxu1 }
 0xd18   : > { %v9095_v39 = vmul.f32 %v8683_v47, %v3557_v62 }
 0xd1a   : > { %v6373_v26 = vpop.f32.mrb[104].mxu1 }
 0xd1b   : > { %v9100_v31 = vmul.f32 %v8693_v20, %v6373_v26  ;;  %v3567_v36 = vpop.f32.mrb[105].mxu1 }
 0xd1c   : > { %v9103_v48 = vmul.f32 %v8701_v37, %v3567_v36 }
 0xd1e   : > { %v6376_v23 = vpop.f32.mrb[106].mxu1 }
 0xd1f   : > { %v9108_v2 = vmul.f32 %v8711_v49, %v6376_v23  ;;  %v3577_v57 = vpop.f32.mrb[107].mxu1 }
 0xd20   : > { %v9111_v19 = vmul.f32 %v8719_v59, %v3577_v57 }
 0xd22   : > { %v6379_v4 = vpop.f32.mrb[108].mxu1 }
 0xd23   : > { %v9116_v38 = vmul.f32 %v8729_v22, %v6379_v4  ;;  %v3587_v62 = vpop.f32.mrb[109].mxu1 }
 0xd24   : > { %v9119_v26 = vmul.f32 %v8737_v29, %v3587_v62 }
 0xd26   : > { %v6382_v23 = vpop.f32.mrb[110].mxu1 }
 0xd27   : > { %v9124_v61 = vmul.f32 %v8747_v54, %v6382_v23  ;;  %v3597_v57 = vpop.f32.mrb[111].mxu1 }
 0xd28   : > { %v9127_v46 = vmul.f32 %v8755_v56, %v3597_v57 }
 0xd2a   : > { %v6385_v4 = vpop.f32.mrb[112].mxu1 }
 0xd2b   : > { %v9132_v33 = vmul.f32 %v8765_v3, %v6385_v4  ;;  %v3607_v62 = vpop.f32.mrb[113].mxu1 }
 0xd2c   : > { %v9135_v50 = vmul.f32 %v8773_v6, %v3607_v62 }
 0xd2e   : > { %9639 = vst [vmem:[#allocation14_spill] sm:$0xff] %v9135_v50 }
 0xd50   : > { %v3955_v23 = vpop.f32.mrb[114].mxu1 }
 0xd51   : > { %v6446_v16 = vpop.f32.mrb[115].mxu1  ;;  %6480 = vmatmul.mubr.f32.vlgmr.msra.gmra.mrb[118].mxu0 %v3955_v23 }
 0xd52   : > { %6990 = vmatpush3.bf16.msra.mxu0 %v7800_v8  ;;  %6575 = vmatprep.mubr.msk.f32.mxu0 %vm7352_vm12, %v9474_v27 }
 0xd53   : > { %6991 = vmatprep.subr.bf16.mxu0 %v9466_v25 }
 0xd54   : > { %v6486_v57 = vpop.f32.mrb[116].mxu1 }
 0xd55   : > { %v4255_v4 = vmul.f32 %v8639_v24, %v6486_v57  ;;  %v4175_v12 = vpop.f32.mrb[117].mxu1 }
 0xd56   : > { %v4254_v62 = vmul.f32 %v8647_v5, %v4175_v12  ;;  %6993 = vmatpush3.bf16.msra.mxu0 %v7816_v13 }
 0xd57   : > { %6994 = vmatprep.subr.bf16.mxu0 %v9466_v25 }
 0xd58   : > { %v6965_v36 = vpack.c.bf16 %v4255_v4, %v4254_v62  ;;  %v6489_v16 = vpop.f32.mrb[118].mxu1 }
 0xd59   : > { %v4257_v23 = vmul.f32 %v8657_v43, %v6489_v16  ;;  %v4185_v8 = vpop.f32.mrb[119].mxu1 }
 0xd5a   : > { %v4256_v50 = vmul.f32 %v8665_v0, %v4185_v8  ;;  %6966 = vmatpush3.bf16.msra.mxu1 %v6965_v36  ;;  %6996 = vmatpush3.bf16.msra.mxu0 %v7832_v30 }
 0xd5b   : > { %6967 = vmatprep.subr.bf16.mxu1 %v9466_v25  ;;  %6997 = vmatprep.subr.bf16.mxu0 %v9466_v25 }
 0xd5c   : > { %v6968_v27 = vpack.c.bf16 %v4257_v23, %v4256_v50  ;;  %v6492_v24 = vpop.f32.mrb[120].mxu1 }
 0xd5d   : > { %v4259_v13 = vmul.f32 %v8675_v60, %v6492_v24  ;;  %v4195_v5 = vpop.f32.mrb[121].mxu1 }
 0xd5e   : > { %v4258_v12 = vmul.f32 %v8683_v47, %v4195_v5  ;;  %6969 = vmatpush3.bf16.msra.mxu1 %v6968_v27  ;;  %6999 = vmatpush3.bf16.msra.mxu0 %v7848_v35 }
 0xd5f   : > { %6970 = vmatprep.subr.bf16.mxu1 %v9466_v25  ;;  %7000 = vmatprep.subr.bf16.mxu0 %v9466_v25 }
 0xd60   : > { %v6971_v43 = vpack.c.bf16 %v4259_v13, %v4258_v12  ;;  %v6495_v30 = vpop.f32.mrb[122].mxu1 }
 0xd61   : > { %v4261_v0 = vmul.f32 %v8693_v20, %v6495_v30  ;;  %v4205_v36 = vpop.f32.mrb[123].mxu1 }
 0xd62   : > { %v4260_v50 = vmul.f32 %v8701_v37, %v4205_v36  ;;  %6972 = vmatpush3.bf16.msra.mxu1 %v6971_v43  ;;  %7002 = vmatpush3.bf16.msra.mxu0 %v9576_v55 }
 0xd63   : > { %6973 = vmatprep.subr.bf16.mxu1 %v9466_v25  ;;  %7003 = vmatprep.subr.bf16.mxu0 %v9466_v25 }
 0xd64   : > { %v6974_v60 = vpack.c.bf16 %v4261_v0, %v4260_v50  ;;  %v6498_v35 = vpop.f32.mrb[124].mxu1 }
 0xd65   : > { %v4263_v47 = vmul.f32 %v8711_v49, %v6498_v35  ;;  %v4215_v57 = vpop.f32.mrb[125].mxu1 }
 0xd66   : > { %v4262_v4 = vmul.f32 %v8719_v59, %v4215_v57  ;;  %6975 = vmatpush3.bf16.msra.mxu1 %v6974_v60  ;;  %7005 = vmatpush3.bf16.msra.mxu0 %v9579_v10 }
 0xd67   : > { %6976 = vmatprep.subr.bf16.mxu1 %v9466_v25  ;;  %7006 = vmatprep.subr.bf16.mxu0 %v9466_v25 }
 0xd68   : > { %v6977_v20 = vpack.c.bf16 %v4263_v47, %v4262_v4  ;;  %v6501_v55 = vpop.f32.mrb[126].mxu1 }
 0xd69   : > { %v4265_v37 = vmul.f32 %v8729_v22, %v6501_v55  ;;  %v4225_v62 = vpop.f32.mrb[127].mxu1 }
 0xd6a   : > { %v4264_v16 = vmul.f32 %v8737_v29, %v4225_v62  ;;  %6978 = vmatpush3.bf16.msra.mxu1 %v6977_v20  ;;  %7008 = vmatpush3.bf16.msra.mxu0 %v9582_v52 }
 0xd6b   : > { %6979 = vmatprep.subr.bf16.mxu1 %v9466_v25  ;;  %7009 = vmatprep.subr.bf16.mxu0 %v9466_v25 }
 0xd6c   : > { %v6980_v49 = vpack.c.bf16 %v4265_v37, %v4264_v16  ;;  %v6504_v10 = vpop.f32.mrb[128].mxu1 }
 0xd6d   : > { %v4267_v59 = vmul.f32 %v8747_v54, %v6504_v10  ;;  %v4235_v23 = vpop.f32.mrb[129].mxu1 }
 0xd6e   : > { %v4266_v8 = vmul.f32 %v8755_v56, %v4235_v23  ;;  %6981 = vmatpush3.bf16.msra.mxu1 %v6980_v49  ;;  %7011 = vmatpush3.bf16.msra.mxu0 %v9584_v42  ;;  %v9640_v56 = vld [vmem:[#allocation12_spill] sm:$0xff] }
 0xd6f   : > { %6982 = vmatprep.subr.bf16.mxu1 %v9466_v25  ;;  %6604 = vmatprep.subr.mxu0 %v8597_v9 }
 0xd70   : > { %v6983_v22 = vpack.c.bf16 %v4267_v59, %v4266_v8  ;;  %v6507_v52 = vpop.f32.mrb[130].mxu1 }
 0xd71   : > { %v4269_v29 = vmul.f32 %v8765_v3, %v6507_v52  ;;  %v4245_v27 = vpop.f32.mrb[131].mxu1 }
 0xd72   : > { %v4268_v24 = vmul.f32 %v8773_v6, %v4245_v27  ;;  %6984 = vmatpush3.bf16.msra.mxu1 %v6983_v22 }
 0xd73   : > { %6985 = vmatprep.subr.bf16.mxu1 %v9466_v25 }
 0xd74   : > { %v6986_v54 = vpack.c.bf16 %v4269_v29, %v4268_v24 }
 0xd76   : > { %6987 = vmatpush3.bf16.msra.mxu1 %v6986_v54 }
 0xd79   : > { %6541 = vmatmul.mubr.f32.vlgmr.msra.gmra.mrb[132].mxu1 %v8597_v9 }
 0xd7a   : > { %6580 = vmatprep.mubr.msk.f32.mxu1 %vm1284_vm11, %v9640_v56 }
 0xe24   : > { %v4025_v42 = vpop.f32.mrb[118].mxu0 }
 0xe25   : > { %v6481_v13 = vpop.f32.mrb[119].mxu0  ;;  %v4412_v3 = vsel %vm1284_vm11, %v4025_v42, -inf }
 0xe26   : > { %v4413_v6 = vrot.slane %v4412_v3, 4 }
 0xe28   : > { %v4414_v43 = vmax.f32 %v4412_v3, %v4413_v6 }
 0xe2a   : > { %v4415_v30 = vrot.slane %v4414_v43, 2 }
 0xe2c   : > { %v4416_v25 = vmax.f32 %v4414_v43, %v4415_v30  ;;  %v5317_v30 = vld [vmem:[%s9369_s4 + $0x10] sm:$0xff] }
 0xe2e   : > { %v4417_v0 = vrot.slane %v4416_v25, 1 }
 0xe30   : > { %v4418_v36 = vmax.f32 %v4416_v25, %v4417_v0 }
 0xe32   : > { %v4419_v50 = vsub.f32 %v4025_v42, %v4418_v36 }
 0xe34   : > { %v4420_v60 = vmul.f32 1.442695, %v4419_v50 }
 0xe36   : > { %7275 = vpow2.f32 %v4420_v60  ;;  %v9641_v60 = vpack.c.bf16 %v9076_v21, %v9079_v44  ;;  %v9649_v21 = vpack.c.bf16 %v9092_v58, %v9095_v39  ;;  %v9651_v44 = vld [vmem:[#allocation38_spill] sm:$0xff] }
 0xe37   : > { %v9659_v39 = vld [vmem:[#allocation6_spill] sm:$0xff] }
 0xe40   : > { %v7276_v55 = vpop.eup %7275 }
 0xe41   : > { %v4422_v62 = vsel %vm1284_vm11, %v7276_v55, 0.0 }
 0xe42   : > { %v4423_v49 = vrot.slane %v4422_v62, 4 }
 0xe44   : > { %v4424_v23 = vadd.f32 %v4423_v49, %v4422_v62  ;;  %v9677_v62 = vld [vmem:[#allocation78_spill] sm:$0xff]  ;;  %v9680_v49 = vld [vmem:[#allocation83_spill] sm:$0xff] }
 0xe46   : > { %v4425_v22 = vrot.slane %v4424_v23, 2 }
 0xe48   : > { %v4426_v52 = vadd.f32 %v4425_v22, %v4424_v23 }
 0xe4a   : > { %v4427_v27 = vrot.slane %v4426_v52, 1 }
 0xe4c   : > { %v4336_v5 = vpop.f32.mrb[132].mxu1  ;;  %v4428_v56 = vadd.f32 %v4427_v27, %v4426_v52 }
 0xe4d   : > { %v6542_v12 = vpop.f32.mrb[133].mxu1  ;;  %6576 = vmatmul.mubr.f32.vlgmr.msra.gmra.mrb[120].mxu0 %v4336_v5 }
 0xe4e   : > { %6605 = vmatpush3.msra.mxu0 %v8597_v9 }
 0xf20   : > { %v4406_v35 = vpop.f32.mrb[120].mxu0 }
 0xf21   : > { %v4432_v47 = vsel %vm1284_vm11, %v4406_v35, -inf  ;;  %v6577_v57 = vpop.f32.mrb[121].mxu0 }
 0xf22   : > { %v4433_v4 = vrot.slane %v4432_v47, 4 }
 0xf24   : > { %v4434_v20 = vmax.f32 %v4432_v47, %v4433_v4  ;;  %v9643_v47 = vld [vmem:[#allocation31_spill] sm:$0xff]  ;;  %v9645_v4 = vpack.c.bf16 %v9084_v41, %v9087_v28  ;;  %v9655_v28 = vld [vmem:[#allocation42_spill] sm:$0xff] }
 0xf26   : > { %v4435_v37 = vrot.slane %v4434_v20, 2 }
 0xf28   : > { %v4436_v9 = vmax.f32 %v4434_v20, %v4435_v37  ;;  %v9646_v20 = vld [vmem:[#allocation32_spill] sm:$0xff]  ;;  %v9671_v37 = vld [vmem:[#allocation13_spill] sm:$0xff] }
 0xf2a   : > { %v4437_v16 = vrot.slane %v4436_v9, 1 }
 0xf2c   : > { %v4438_v10 = vmax.f32 %v4436_v9, %v4437_v16  ;;  %v9675_v9 = vld [vmem:[#allocation77_spill] sm:$0xff]  ;;  %v9678_v16 = vld [vmem:[#allocation80_spill] sm:$0xff] }
 0xf2e   : > { %v4439_v59 = vsub.f32 %v4406_v35, %v4438_v10  ;;  %v9642_v35 = vld [vmem:[#allocation29_spill] sm:$0xff]  ;;  %v9682_v10 = vld [vmem:[#allocation88_spill] sm:$0xff] }
 0xf2f   : > { %v9644_v57 = vpack.c.bf16 %v9642_v35, %v9643_v47 }
 0xf30   : > { %v4440_v8 = vmul.f32 1.442695, %v4439_v59 }
 0xf32   : > { %7277 = vpow2.f32 %v4440_v8 }
 0xf33   : > { %7279 = vrcp.f32 %v4428_v56 }
 0xf3c   : > { %v7278_v29 = vpop.eup %7277 }
 0xf3d   : > { %v4442_v24 = vsel %vm1284_vm11, %v7278_v29, 0.0  ;;  %v7280_v6 = vpop.eup %7279 }
 0xf3e   : > { %v4443_v54 = vrot.slane %v4442_v24, 4  ;;  %v4430_v43 = vmul.f32 %v7280_v6, %v7276_v55 }
 0xf40   : > { %v4444_v42 = vadd.f32 %v4443_v54, %v4442_v24  ;;  %v4431_v0 = vadd.f32 %v5317_v30, %v4430_v43  ;;  %v9683_v30 = vld [vmem:[#allocation87_spill] sm:$0xff] }
 0xf42   : > { %v4445_v13 = vrot.slane %v4444_v42, 2 }
 0xf44   : > { %v4446_v5 = vadd.f32 %v4445_v13, %v4444_v42 }
 0xf46   : > { %v4447_v12 = vrot.slane %v4446_v5, 1 }
 0xf48   : > { %v4448_v3 = vadd.f32 %v4447_v12, %v4446_v5 }
 0xf4a   : > { %7281 = vrcp.f32 %v4448_v3 }
 0xf54   : > { %v7282_v25 = vpop.eup %7281 }
 0xf55   : > { %v4450_v36 = vmul.f32 %v7282_v25, %v7278_v29 }
 0xf57   : > { %v4451_v50 = vadd.f32 %v4450_v36, %v4431_v0 }
 0xf59   : > { %6578 = vmatprep.subr.mxu1 %v4451_v50 }
 0xf5a   : > { %6579 = vmatpush3.msra.mxu1 %v4451_v50 }
 0xf5b   : > { %6581 = vmatmul.mubr.msk.f32.vlgmr.msra.gmra.mrb[134].mxu1 %vm1284_vm11, %v8841_v11  ;;  %7013 = vmatprep.subr.bf16.mxu1 %v9641_v60  ;;  %v9647_v11 = vld [vmem:[#allocation35_spill] sm:$0xff] }
 0xf5c   : > { %7015 = vmatpush3.bf16.msra.mxu1 %v9644_v57  ;;  %6583 = vmatprep.mubr.msk.f32.mxu1 %vm1284_vm11, %v8850_v34  ;;  %v9648_v55 = vpack.c.bf16 %v9646_v20, %v9647_v11  ;;  %v9650_v34 = vld [vmem:[#allocation36_spill] sm:$0xff] }
 0xf5d   : > { %7017 = vmatprep.subr.bf16.mxu1 %v9645_v4  ;;  %v9652_v41 = vpack.c.bf16 %v9650_v34, %v9651_v44 }
 0xf5f   : > { %6584 = vmatmul.mubr.msk.f32.gmra.mrb[136].mxu1 %vm1284_vm11, %v8858_v40  ;;  %v9653_v40 = vpack.c.bf16 %v9100_v31, %v9103_v48  ;;  %v9663_v48 = vld [vmem:[#allocation4_spill] sm:$0xff] }
 0xf60   : > { %7019 = vmatpush3.bf16.msra.mxu1 %v9648_v55  ;;  %6586 = vmatprep.mubr.msk.f32.mxu1 %vm1284_vm11, %v8865_v14  ;;  %v9654_v14 = vld [vmem:[#allocation39_spill] sm:$0xff] }
 0xf61   : > { %7021 = vmatprep.subr.bf16.mxu1 %v9649_v21  ;;  %v9656_v58 = vpack.c.bf16 %v9654_v14, %v9655_v28  ;;  %v7316_v21 = vld [vmem:[%s9368_s3 + $0x8] sm:$0xff] }
 0xf63   : > { %6587 = vmatmul.mubr.msk.f32.gmra.mrb[138].mxu1 %vm1284_vm11, %v8872_v53  ;;  %v9657_v53 = vpack.c.bf16 %v9108_v2, %v9111_v19  ;;  %v9667_v19 = vld [vmem:[#allocation9_spill] sm:$0xff] }
 0xf64   : > { %7023 = vmatpush3.bf16.msra.mxu1 %v9652_v41  ;;  %6589 = vmatprep.mubr.msk.f32.mxu1 %vm1284_vm11, %v8879_v51  ;;  %v9658_v51 = vld [vmem:[#allocation43_spill] sm:$0xff]  ;;  %v7317_v41 = vld [vmem:[%s9368_s3] sm:$0xff] }
 0xf65   : > { %7025 = vmatprep.subr.bf16.mxu1 %v9653_v40  ;;  %v9660_v31 = vpack.c.bf16 %v9658_v51, %v9659_v39  ;;  %v7319_v39 = vld [vmem:[%s9368_s3 + $0x10] sm:$0xff] }
 0xf67   : > { %6590 = vmatmul.mubr.msk.f32.gmra.mrb[140].mxu1 %vm1284_vm11, %v8886_v7  ;;  %v9661_v7 = vpack.c.bf16 %v9116_v38, %v9119_v26 }
 0xf68   : > { %7027 = vmatpush3.bf16.msra.mxu1 %v9656_v58  ;;  %6592 = vmatprep.mubr.msk.f32.mxu1 %vm1284_vm11, %v8893_v1  ;;  %v9662_v1 = vld [vmem:[#allocation7_spill] sm:$0xff] }
 0xf69   : > { %7029 = vmatprep.subr.bf16.mxu1 %v9657_v53  ;;  %v9664_v2 = vpack.c.bf16 %v9662_v1, %v9663_v48  ;;  %v7318_v58 = vld [vmem:[%s9368_s3 + $0x18] sm:$0xff]  ;;  %v7320_v48 = vld [vmem:[%s9368_s3 + $0x28] sm:$0xff] }
 0xf6b   : > { %6593 = vmatmul.mubr.msk.f32.gmra.mrb[142].mxu1 %vm1284_vm11, %v8900_v18  ;;  %v9665_v18 = vpack.c.bf16 %v9124_v61, %v9127_v46  ;;  %v9673_v46 = vld [vmem:[#allocation11_spill] sm:$0xff] }
 0xf6c   : > { %7031 = vmatpush3.bf16.msra.mxu1 %v9660_v31  ;;  %6595 = vmatprep.mubr.msk.f32.mxu1 %vm1284_vm11, %v8907_v63  ;;  %v9666_v63 = vld [vmem:[#allocation8_spill] sm:$0xff] }
 0xf6d   : > { %7033 = vmatprep.subr.bf16.mxu1 %v9661_v7  ;;  %v9668_v38 = vpack.c.bf16 %v9666_v63, %v9667_v19  ;;  %v7321_v63 = vld [vmem:[%s9368_s3 + $0x20] sm:$0xff] }
 0xf6f   : > { %6596 = vmatmul.mubr.msk.f32.gmra.mrb[144].mxu1 %vm1284_vm11, %v8914_v45  ;;  %v9669_v45 = vld [vmem:[#allocation14_spill] sm:$0xff] }
 0xf70   : > { %7035 = vmatpush3.bf16.msra.mxu1 %v9664_v2  ;;  %6598 = vmatprep.mubr.msk.f32.mxu1 %vm1284_vm11, %v8921_v32  ;;  %v9670_v26 = vpack.c.bf16 %v9132_v33, %v9669_v45  ;;  %v9672_v32 = vld [vmem:[#allocation10_spill] sm:$0xff]  ;;  %v9681_v33 = vld [vmem:[#allocation85_spill] sm:$0xff] }
 0xf71   : > { %7037 = vmatprep.subr.bf16.mxu1 %v9665_v18  ;;  %v9674_v61 = vpack.c.bf16 %v9672_v32, %v9673_v46  ;;  %v7323_v46 = vld [vmem:[%s9368_s3 + $0x30] sm:$0xff] }
 0xf73   : > { %6599 = vmatmul.mubr.msk.f32.gmra.mrb[146].mxu1 %vm1284_vm11, %v8928_v15  ;;  %v9676_v15 = vld [vmem:[#allocation95_spill] sm:$0xff] }
 0xf74   : > { %7039 = vmatpush3.bf16.msra.mxu1 %v9668_v38  ;;  %6601 = vmatprep.mubr.msk.f32.mxu1 %vm1284_vm11, %v8935_v17  ;;  %v9679_v17 = vld [vmem:[#allocation82_spill] sm:$0xff] }
 0xf75   : > { %7041 = vmatprep.subr.bf16.mxu1 %v9670_v26  ;;  %v7322_v26 = vld [vmem:[%s9368_s3 + $0x38] sm:$0xff] }
 0xf77   : > { %6602 = vmatmul.mubr.msk.f32.gmra.mrb[148].mxu1 %vm1284_vm11, %v9671_v37 }
 0xf78   : > { %7043 = vmatpush3.bf16.msra.mxu1 %v9674_v61  ;;  %4958 = vmatprep.mubr.f32.mxu1 %v9675_v9 }
 0xf7b   : > { %4959 = vmatmul.mubr.f32.vlgmr.msra.gmra.mrb[150].mxu1 %v9676_v15 }
 0xf7c   : > { %4963 = vmatprep.mubr.f32.mxu1 %v9677_v62  ;;  %v7324_v62 = vld [vmem:[%s9368_s3 + $0x48] sm:$0xff] }
 0xf7f   : > { %4964 = vmatmul.mubr.f32.gmra.mrb[152].mxu1 %v9678_v16 }
 0xf80   : > { %4968 = vmatprep.mubr.f32.mxu1 %v9679_v17 }
 0xf83   : > { %4969 = vmatmul.mubr.f32.gmra.mrb[154].mxu1 %v9680_v49  ;;  %v7325_v49 = vld [vmem:[%s9368_s3 + $0x40] sm:$0xff] }
 0xf84   : > { %4973 = vmatprep.mubr.f32.mxu1 %v9681_v33 }
 0xf87   : > { %4974 = vmatmul.mubr.f32.gmra.mrb[156].mxu1 %v9682_v10 }
0x102e   : > { %v6582_v59 = vpop.f32.mrb[134].mxu1 }
0x102f   : > { %v4518_v23 = vpop.f32.mrb[135].mxu1 }
0x1030   : > { %6606 = vmatprep.mubr.msk.f32.mxu0 %vm1284_vm11, %v4518_v23  ;;  %v7326_v23 = vld [vmem:[%s9368_s3 + $0x58] sm:$0xff] }
0x1031   : > { %6607 = vmatmul.mubr.msk.f32.vlgmr.msra.gmra.mrb[122].mxu0 %vm1284_vm11, %v6582_v59 }
0x1032   : > { %v6585_v8 = vpop.f32.mrb[136].mxu1 }
0x1033   : > { %v4528_v22 = vpop.f32.mrb[137].mxu1 }
0x1034   : > { %6609 = vmatprep.mubr.msk.f32.mxu0 %vm1284_vm11, %v4528_v22 }
0x1035   : > { %6610 = vmatmul.mubr.msk.f32.gmra.mrb[124].mxu0 %vm1284_vm11, %v6585_v8 }
0x1036   : > { %v6588_v52 = vpop.f32.mrb[138].mxu1 }
0x1037   : > { %v4538_v29 = vpop.f32.mrb[139].mxu1 }
0x1038   : > { %6612 = vmatprep.mubr.msk.f32.mxu0 %vm1284_vm11, %v4538_v29 }
0x1039   : > { %6613 = vmatmul.mubr.msk.f32.gmra.mrb[126].mxu0 %vm1284_vm11, %v6588_v52  ;;  %v7327_v52 = vld [vmem:[%s9368_s3 + $0x50] sm:$0xff] }
0x103a   : > { %v6591_v27 = vpop.f32.mrb[140].mxu1 }
0x103b   : > { %v4548_v24 = vpop.f32.mrb[141].mxu1 }
0x103c   : > { %6615 = vmatprep.mubr.msk.f32.mxu0 %vm1284_vm11, %v4548_v24 }
0x103d   : > { %6616 = vmatmul.mubr.msk.f32.gmra.mrb[128].mxu0 %vm1284_vm11, %v6591_v27 }
0x103e   : > { %v6594_v54 = vpop.f32.mrb[142].mxu1 }
0x103f   : > { %v4558_v56 = vpop.f32.mrb[143].mxu1 }
0x1040   : > { %6618 = vmatprep.mubr.msk.f32.mxu0 %vm1284_vm11, %v4558_v56 }
0x1041   : > { %6619 = vmatmul.mubr.msk.f32.gmra.mrb[130].mxu0 %vm1284_vm11, %v6594_v54  ;;  %v7328_v54 = vld [vmem:[%s9368_s3 + $0x68] sm:$0xff] }
0x1042   : > { %v6597_v42 = vpop.f32.mrb[144].mxu1 }
0x1043   : > { %v4568_v13 = vpop.f32.mrb[145].mxu1 }
0x1044   : > { %6621 = vmatprep.mubr.msk.f32.mxu0 %vm1284_vm11, %v4568_v13  ;;  %v7329_v13 = vld [vmem:[%s9368_s3 + $0x60] sm:$0xff] }
0x1045   : > { %6622 = vmatmul.mubr.msk.f32.gmra.mrb[132].mxu0 %vm1284_vm11, %v6597_v42 }
0x1046   : > { %v6600_v5 = vpop.f32.mrb[146].mxu1 }
0x1047   : > { %v4578_v12 = vpop.f32.mrb[147].mxu1 }
0x1048   : > { %6624 = vmatprep.mubr.msk.f32.mxu0 %vm1284_vm11, %v4578_v12 }
0x1049   : > { %6625 = vmatmul.mubr.msk.f32.gmra.mrb[134].mxu0 %vm1284_vm11, %v6600_v5 }
0x104a   : > { %v6603_v3 = vpop.f32.mrb[148].mxu1 }
0x104b   : > { %v4588_v6 = vpop.f32.mrb[149].mxu1 }
0x104c   : > { %6627 = vmatprep.mubr.msk.f32.mxu0 %vm1284_vm11, %v4588_v6  ;;  %v7330_v6 = vld [vmem:[%s9368_s3 + $0x78] sm:$0xff] }
0x104d   : > { %6628 = vmatmul.mubr.msk.f32.gmra.mrb[136].mxu0 %vm1284_vm11, %v6603_v3 }
0x104e   : > { %v5822_v43 = vpop.f32.mrb[150].mxu1  ;;  %6662 = vmatprep.mubr.f32.mxu0 %v9683_v30 }
0x104f   : > { %v5823_v25 = vpop.f32.mrb[151].mxu1 }
0x1050   : > { %v9294_v0 = vadd.f32 %v5823_v25, %v5822_v43  ;;  %v7331_v25 = vld [vmem:[%s9368_s3 + $0x70] sm:$0xff] }
0x1052   : > { %v5825_v36 = vpop.f32.mrb[152].mxu1 }
0x1053   : > { %v5826_v50 = vpop.f32.mrb[153].mxu1 }
0x1054   : > { %v9296_v60 = vadd.f32 %v5826_v50, %v5825_v36 }
0x1056   : > { %v5828_v35 = vpop.f32.mrb[154].mxu1 }
0x1057   : > { %v5829_v47 = vpop.f32.mrb[155].mxu1 }
0x1058   : > { %v9298_v57 = vadd.f32 %v5829_v47, %v5828_v35  ;;  %v9684_v35 = vld [vmem:[#allocation96_spill] sm:$0xff]  ;;  %v9685_v47 = vld [vmem:[#allocation90_spill] sm:$0xff] }
0x105a   : > { %v5831_v4 = vpop.f32.mrb[156].mxu1 }
0x105b   : > { %v5832_v20 = vpop.f32.mrb[157].mxu1 }
0x105c   : > { %v9300_v11 = vadd.f32 %v5832_v20, %v5831_v4  ;;  %v9686_v4 = vld [vmem:[#allocation97_spill] sm:$0xff]  ;;  %v4882_v20 = vpop.permute.xlu0 %4881 }
0x1104   : > { %v6608_v55 = vpop.f32.mrb[122].mxu0 }
0x1105   : > { %v4791_v34 = vmul.f32 %v7316_v21, %v6608_v55  ;;  %v4711_v44 = vpop.f32.mrb[123].mxu0  ;;  %v4877_v55 = vpop.permute.xlu1 %4876  ;;  %v4966_v21 = vadd.f32 %v9296_v60, %v4882_v20 }
0x1106   : > { %v4790_v40 = vmul.f32 %v7317_v41, %v4711_v44  ;;  %v4961_v44 = vadd.f32 %v9294_v0, %v4877_v55 }
0x1108   : > { %v7044_v14 = vpack.c.bf16 %v4791_v34, %v4790_v40  ;;  %v6611_v28 = vpop.f32.mrb[124].mxu0 }
0x1109   : > { %v4793_v53 = vmul.f32 %v7318_v58, %v6611_v28  ;;  %v4721_v51 = vpop.f32.mrb[125].mxu0  ;;  %v4887_v58 = vpop.permute.xlu1 %4886 }
0x110a   : > { %v4792_v31 = vmul.f32 %v7319_v39, %v4721_v51  ;;  %7045 = vmatprep.subr.bf16.mxu0 %v7044_v14  ;;  %v4971_v60 = vadd.f32 %v9298_v57, %v4887_v58 }
0x110b   : > { %7047 = vmatpush3.bf16.msra.mxu0 %v7044_v14  ;;  %v4892_v14 = vpop.permute.xlu0 %4891 }
0x110c   : > { %v7048_v7 = vpack.c.bf16 %v4793_v53, %v4792_v31  ;;  %v6614_v1 = vpop.f32.mrb[126].mxu0  ;;  %v4976_v53 = vadd.f32 %v9300_v11, %v4892_v14 }
0x110d   : > { %v4795_v2 = vmul.f32 %v7320_v48, %v6614_v1  ;;  %v4731_v18 = vpop.f32.mrb[127].mxu0 }
0x110e   : > { %v4794_v19 = vmul.f32 %v7321_v63, %v4731_v18  ;;  %7049 = vmatprep.subr.bf16.mxu0 %v7048_v7 }
0x110f   : > { %7051 = vmatpush3.bf16.msra.mxu0 %v7048_v7 }
0x1110   : > { %v7052_v38 = vpack.c.bf16 %v4795_v2, %v4794_v19  ;;  %v6617_v45 = vpop.f32.mrb[128].mxu0 }
0x1111   : > { %v4797_v37 = vmul.f32 %v7322_v26, %v6617_v45  ;;  %v4741_v32 = vpop.f32.mrb[129].mxu0 }
0x1112   : > { %v4796_v61 = vmul.f32 %v7323_v46, %v4741_v32  ;;  %7053 = vmatprep.subr.bf16.mxu0 %v7052_v38 }
0x1113   : > { %7055 = vmatpush3.bf16.msra.mxu0 %v7052_v38 }
0x1114   : > { %v7056_v9 = vpack.c.bf16 %v4797_v37, %v4796_v61  ;;  %v6620_v15 = vpop.f32.mrb[130].mxu0 }
0x1115   : > { %v4799_v16 = vmul.f32 %v7324_v62, %v6620_v15  ;;  %v4751_v17 = vpop.f32.mrb[131].mxu0 }
0x1116   : > { %v4798_v33 = vmul.f32 %v7325_v49, %v4751_v17  ;;  %7057 = vmatprep.subr.bf16.mxu0 %v7056_v9 }
0x1117   : > { %7059 = vmatpush3.bf16.msra.mxu0 %v7056_v9 }
0x1118   : > { %v7060_v10 = vpack.c.bf16 %v4799_v16, %v4798_v33  ;;  %v6623_v59 = vpop.f32.mrb[132].mxu0 }
0x1119   : > { %v4801_v8 = vmul.f32 %v7326_v23, %v6623_v59  ;;  %v4761_v22 = vpop.f32.mrb[133].mxu0 }
0x111a   : > { %v4800_v29 = vmul.f32 %v7327_v52, %v4761_v22  ;;  %7061 = vmatprep.subr.bf16.mxu0 %v7060_v10 }
0x111b   : > { %7063 = vmatpush3.bf16.msra.mxu0 %v7060_v10 }
0x111c   : > { %v7064_v27 = vpack.c.bf16 %v4801_v8, %v4800_v29  ;;  %v6626_v24 = vpop.f32.mrb[134].mxu0 }
0x111d   : > { %v4803_v56 = vmul.f32 %v7328_v54, %v6626_v24  ;;  %v4771_v42 = vpop.f32.mrb[135].mxu0 }
0x111e   : > { %v4802_v5 = vmul.f32 %v7329_v13, %v4771_v42  ;;  %7065 = vmatprep.subr.bf16.mxu0 %v7064_v27 }
0x111f   : > { %7067 = vmatpush3.bf16.msra.mxu0 %v7064_v27 }
0x1120   : > { %v7068_v12 = vpack.c.bf16 %v4803_v56, %v4802_v5  ;;  %v6629_v3 = vpop.f32.mrb[136].mxu0 }
0x1121   : > { %v4805_v43 = vmul.f32 %v7330_v6, %v6629_v3  ;;  %v4781_v30 = vpop.f32.mrb[137].mxu0 }
0x1122   : > { %v4804_v36 = vmul.f32 %v7331_v25, %v4781_v30  ;;  %7069 = vmatprep.subr.bf16.mxu0 %v7068_v12 }
0x1123   : > { %7071 = vmatpush3.bf16.msra.mxu0 %v7068_v12 }
0x1124   : > { %v7072_v50 = vpack.c.bf16 %v4805_v43, %v4804_v36 }
0x1126   : > { %7073 = vmatprep.subr.bf16.mxu0 %v7072_v50 }
0x1127   : > { %7075 = vmatpush3.bf16.msra.mxu0 %v7072_v50 }
0x112a   : > { %6663 = vmatmul.mubr.f32.vlgmr.msra.gmra.mrb[138].mxu0 %v9684_v35 }
0x112b   : > { %6665 = vmatprep.mubr.f32.mxu0 %v9685_v47 }
0x112e   : > { %6666 = vmatmul.mubr.f32.gmra.mrb[140].mxu0 %v9686_v4 }
0x11fd   : > { %v6664_v34 = vpop.f32.mrb[138].mxu0 }
0x11fe   : > { %v5051_v41 = vadd.f32 %v6664_v34, %v4966_v21  ;;  %v5045_v40 = vpop.f32.mrb[139].mxu0 }
0x11ff   : > { %v5046_v28 = vadd.f32 %v5045_v40, %v4961_v44 }
0x1200   : > { %5065 = vst [vmem:[%s305_s12 + $0x8] sm:$0xff] %v5051_v41 }
0x1201   : > { %5064 = vst [vmem:[%s305_s12] sm:$0xff] %v5046_v28  ;;  %v6667_v51 = vpop.f32.mrb[140].mxu0 }
0x1202   : > { %v5061_v39 = vadd.f32 %v6667_v51, %v4976_v53  ;;  %v5055_v31 = vpop.f32.mrb[141].mxu0 }
0x1203   : > { %v5056_v7 = vadd.f32 %v5055_v31, %v4971_v60 }
0x1204   : > { %5067 = vst [vmem:[%s305_s12 + $0x18] sm:$0xff] %v5061_v39 }
0x1205   : > { %5066 = vst [vmem:[%s305_s12 + $0x10] sm:$0xff] %v5056_v7 }
0x1206 PF: > { %s18_s27 = sadd.s32 1, %s7338_s27  }
0x1207   : > { %p15_p4 = scmp.ge.s32.totalorder %s18_s27, 4  }
0x1209   :  { %17 = sbr.rel (!%p15_p4) target bundleno = 1 (0x1), region = 84 }

</bundles_post_ra>
